<compile_context>
chip_gen: v5e
topology: v5e:2x2
jax: 0.10.0
libtpu: 0.0.40
codegen_flags: <defaults>
</compile_context>

<pallas_src>
import functools

import jax
import jax.numpy as jnp
from jax import lax
from jax.experimental import pallas as pl
from jax.experimental.pallas import tpu as pltpu


def _round_up(x, m):
    return ((x + m - 1) // m) * m


# Safe on v7x (64 MiB physical, default scoped limit 32 MiB); also above the
# v5e/v6e defaults.  TODO(synk): raise toward ~96 MiB on v6e / v5e per-generation.
_VMEM_LIMIT_BYTES = 48 << 20
# Budget for the double-buffered sequence streams of the recurrent kernel.
_SEQ_VMEM_BUDGET = 32 << 20


# --------------------------------------------------------------------------- #
# Kernel 1: fused x-side projection  xp = x2d @ [Wrx|Wzx|Wsx]_pad + bias        #
# --------------------------------------------------------------------------- #
def _xproj_kernel(x_ref, w_ref, b_ref, o_ref):
    # Cast in-vreg (free on the VPU) instead of a separate XLA convert in HBM.
    acc = jnp.dot(x_ref[...].astype(w_ref.dtype), w_ref[...],
                  preferred_element_type=jnp.float32) + b_ref[...]
    o_ref[...] = acc.astype(o_ref.dtype)


def _choose_row_block(rows, target=512):
    if rows <= target:
        return rows
    start = min(target, rows)
    start -= start % 8
    for rb in range(start, 7, -8):
        if rows % rb == 0:
            return rb
    return rows   # fallback: single block


def xproj_pallas(x2d, w_all, b_all, out_dtype):
    """Row-tiled fused gate projection; gates at lane offsets 0 / Hp / 2*Hp."""
    TB, Nin = x2d.shape
    K3 = w_all.shape[1]
    rb = _choose_row_block(TB)
    grid = (TB // rb,)
    cost = pl.CostEstimate(
        flops=2 * TB * Nin * K3,
        transcendentals=0,
        bytes_accessed=int(TB * Nin * x2d.dtype.itemsize
                           + Nin * K3 * w_all.dtype.itemsize + 4 * K3
                           + TB * K3 * jnp.dtype(out_dtype).itemsize))
    return pl.pallas_call(
        _xproj_kernel,
        grid=grid,
        in_specs=[pl.BlockSpec((rb, Nin), lambda i: (i, 0)),
                  pl.BlockSpec((Nin, K3), lambda i: (0, 0)),   # resident weights
                  pl.BlockSpec((1, K3), lambda i: (0, 0))],
        out_specs=pl.BlockSpec((rb, K3), lambda i: (i, 0)),
        out_shape=jax.ShapeDtypeStruct((TB, K3), out_dtype),
        compiler_params=pltpu.CompilerParams(
            dimension_semantics=("parallel",),
            vmem_limit_bytes=_VMEM_LIMIT_BYTES),
        cost_estimate=cost,
    )(x2d, w_all, b_all)


# --------------------------------------------------------------------------- #
# Kernel 2: the serial recurrence, T-chunked with a persistent-h VMEM scratch   #
# --------------------------------------------------------------------------- #
def _gru_recurrent_kernel(xp_ref, w_rz_ref, w_s_ref, out_ref, hfin_ref, h_scr,
                          *, unroll):
    t_idx = pl.program_id(1)
    Tc = xp_ref.shape[0]
    Hp = w_s_ref.shape[0]

    @pl.when(t_idx == 0)
    def _():
        # Zero initial hidden (module default) — no h0 HBM input / DMA needed.
        h_scr[...] = jnp.zeros_like(h_scr)

    # Hoist loop-invariant weights out of the recurrence.
    w_rz = w_rz_ref[...]
    w_s = w_s_ref[...]

    def step(t, h):
        xp_t = xp_ref[t].astype(jnp.float32)                 # (Bb, 3*Hp), lane-dense
        # One fused lane-dense matmul for reset & update gates: h @ [Wrh | Wzh].
        g = jnp.dot(h.astype(w_rz.dtype), w_rz,
                    preferred_element_type=jnp.float32)       # (Bb, 2*Hp)
        r = jax.nn.sigmoid(xp_t[:, 0:Hp] + g[:, 0:Hp])
        z = jax.nn.sigmoid(xp_t[:, Hp:2 * Hp] + g[:, Hp:2 * Hp])
        # Candidate: tanh(x@Wsx + (r*h)@Wsh + bs) — reset applied BEFORE the matmul.
        s = jnp.tanh(xp_t[:, 2 * Hp:3 * Hp]
                     + jnp.dot((r * h).astype(w_s.dtype), w_s,
                               preferred_element_type=jnp.float32))
        h_new = z * h + (1.0 - z) * s
        out_ref[t] = h_new.astype(out_ref.dtype)              # lane-dense store
        return h_new

    h_fin = lax.fori_loop(0, Tc, step, h_scr[...], unroll=unroll)
    h_scr[...] = h_fin        # persists to the next T-chunk of this batch block
    hfin_ref[...] = h_fin     # resident output block; last chunk's value wins


def _choose_time_chunk(T, Bb, Hp, xp_itemsize, out_itemsize):
    # Double-buffered xp input + out output per timestep of a chunk.
    per_t = 2 * Bb * (3 * Hp * xp_itemsize + Hp * out_itemsize)
    max_tc = max(1, _SEQ_VMEM_BUDGET // per_t)
    tc = 1
    for d in range(1, T + 1):
        if T % d == 0 and d <= max_tc:
            tc = d
    return tc


def gru_recurrent_pallas(xp, w_rz, w_s, *, out_dtype, batch_block=None):
    T, B, K3 = xp.shape
    Hp = w_s.shape[0]
    assert K3 == 3 * Hp

    if batch_block is None:
        # >= 2 batch blocks lets the "parallel" axis split across v7x's 2 TCs;
        # negligible cost on v5e/v6e.
        batch_block = B // 2 if (B >= 16 and B % 16 == 0) else B
    assert B % batch_block == 0
    assert batch_block == B or batch_block % 8 == 0
    nb = B // batch_block

    Tc = _choose_time_chunk(T, batch_block, Hp, xp.dtype.itemsize,
                            jnp.dtype(out_dtype).itemsize)
    nt = T // Tc

    # vreg-pressure-aware unroll: each live (Bb, Hp) f32 tensor is Bb*Hp/1024 vregs.
    vregs_per_tensor = max(1, (batch_block * Hp) // 1024)
    if vregs_per_tensor >= 16:
        unroll = 2
    elif vregs_per_tensor >= 8:
        unroll = 4
    else:
        unroll = min(8, Tc)

    # TODO(synk): if xprof shows exposed DMA for the xp stream at small H /
    # large Bb, add pipeline_mode=pl.Buffered(3) to xp_spec (check VMEM budget).
    xp_spec = pl.BlockSpec((Tc, batch_block, K3), lambda b, t: (t, b, 0))
    out_spec = pl.BlockSpec((Tc, batch_block, Hp), lambda b, t: (t, b, 0))
    hfin_spec = pl.BlockSpec((batch_block, Hp), lambda b, t: (b, 0))
    w_rz_spec = pl.BlockSpec((Hp, 2 * Hp), lambda b, t: (0, 0))   # resident
    w_s_spec = pl.BlockSpec((Hp, Hp), lambda b, t: (0, 0))        # resident

    cost = pl.CostEstimate(
        flops=2 * T * B * Hp * (3 * Hp) + 12 * T * B * Hp,
        transcendentals=3 * T * B * Hp,
        bytes_accessed=int(T * B * K3 * xp.dtype.itemsize
                           + T * B * Hp * jnp.dtype(out_dtype).itemsize
                           + 4 * (B * Hp + 3 * Hp * Hp)))

    return pl.pallas_call(
        functools.partial(_gru_recurrent_kernel, unroll=unroll),
        grid=(nb, nt),
        in_specs=[xp_spec, w_rz_spec, w_s_spec],
        out_specs=(out_spec, hfin_spec),
        out_shape=(jax.ShapeDtypeStruct((T, B, Hp), out_dtype),
                   jax.ShapeDtypeStruct((B, Hp), jnp.float32)),
        scratch_shapes=[pltpu.VMEM((batch_block, Hp), jnp.float32)],
        compiler_params=pltpu.CompilerParams(
            dimension_semantics=("parallel", "arbitrary"),
            vmem_limit_bytes=_VMEM_LIMIT_BYTES),
        cost_estimate=cost,
    )(xp, w_rz, w_s)


# --------------------------------------------------------------------------- #
# Parameter handling (packing happens ONCE, outside jit)                        #
# --------------------------------------------------------------------------- #
def init_mono_gru_params(key, n_input, n_hidden, n_layers):
    """nn.Linear(in_dim + H, H)-shaped params, pre-split per layer into
       (Wr_x, Wr_h, br, Wz_x, Wz_h, bz, Ws_x, Ws_h, bs), column-major (x @ W)."""
    params = []
    for layer in range(n_layers):
        in_dim = n_input if layer == 0 else n_hidden
        fan_in = in_dim + n_hidden
        bound = 1.0 / jnp.sqrt(jnp.float32(fan_in))
        layer_p = []
        for _gate in range(3):  # reset, update, state
            key, kw, kb = jax.random.split(key, 3)
            w = jax.random.uniform(kw, (n_hidden, fan_in), jnp.float32,
                                   -bound, bound)
            b = jax.random.uniform(kb, (n_hidden,), jnp.float32, -bound, bound)
            layer_p += [w[:, :in_dim].T, w[:, in_dim:].T,
                        b.reshape(1, n_hidden)]
        params.append(tuple(layer_p))
    return params


def pack_layer_params(raw, compute_dtype, *, pad_input_rows_to=None):
    """Kernel-ready fused/padded weights.  Hidden (lane) dim padded to Hp=⌈H/128⌉·128
    so all stores / MXU columns are lane-dense; zero pads keep padded h lanes at
    exactly 0 through the recurrence (semantics preserved)."""
    (wrx, wrh, br, wzx, wzh, bz, wsx, wsh, bs) = raw
    in_dim, H = wrx.shape
    Hp = _round_up(max(H, 128), 128)
    in_p = in_dim if pad_input_rows_to is None else pad_input_rows_to

    def pad_x(w):   # (in_dim, H) -> (in_p, Hp)
        return jnp.zeros((in_p, Hp), jnp.float32).at[:in_dim, :H].set(w)

    def pad_h(w):   # (H, H) -> (Hp, Hp)
        return jnp.zeros((Hp, Hp), jnp.float32).at[:H, :H].set(w)

    def pad_b(b):   # (1, H) -> (1, Hp)
        return jnp.zeros((1, Hp), jnp.float32).at[:, :H].set(b)

    w_all = jnp.concatenate([pad_x(wrx), pad_x(wzx), pad_x(wsx)], axis=1)
    b_all = jnp.concatenate([pad_b(br), pad_b(bz), pad_b(bs)], axis=1)
    w_rz = jnp.concatenate([pad_h(wrh), pad_h(wzh)], axis=1)
    w_s = pad_h(wsh)
    return (w_all.astype(compute_dtype), b_all.astype(jnp.float32),
            w_rz.astype(compute_dtype), w_s.astype(compute_dtype))


def pack_mono_gru_params(raw_params, compute_dtype=jnp.float32):
    packed = []
    prev_hp = None
    for i, raw in enumerate(raw_params):
        p = pack_layer_params(raw, compute_dtype,
                              pad_input_rows_to=(prev_hp if i > 0 else None))
        prev_hp = p[3].shape[0]   # Hp of this layer's hidden
        packed.append(p)
    return packed


# --------------------------------------------------------------------------- #
# Forward                                                                       #
# --------------------------------------------------------------------------- #
def run_gru_layer(x, packed, *, out_dtype, batch_block=None):
    T, B, Nin = x.shape
    w_all, b_all, w_rz, w_s = packed
    Hp = w_s.shape[0]
    # One fused lane-dense xp stream, stored in the weight/compute dtype
    # (bf16 halves the dominant HBM stream in the bf16 path).
    xp = xproj_pallas(x.reshape(T * B, Nin), w_all, b_all, out_dtype=w_all.dtype)
    xp = xp.reshape(T, B, 3 * Hp)
    return gru_recurrent_pallas(xp, w_rz, w_s, out_dtype=out_dtype,
                                batch_block=batch_block)


def mono_gru_forward(x, packed_params, n_hidden, *, compute_dtype=jnp.float32,
                     batch_block=None):
    """Semantics of MonoGRU.forward(inps) with zero initial hidden."""
    n_layers = len(packed_params)
    inp = x
    hidds = []
    out = None
    for i, packed in enumerate(packed_params):
        last = (i == n_layers - 1)
        # Inter-layer activations stay in compute_dtype (halves the layer-to-layer
        # HBM round trip in bf16); the final layer emits f32.
        out_dtype = jnp.float32 if last else compute_dtype
        out, hfin = run_gru_layer(inp, packed, out_dtype=out_dtype,
                                  batch_block=batch_block)
        hidds.append(hfin)
        inp = out
    hidds = jnp.stack(hidds, axis=0)
    # Strip lane padding (no-op when n_hidden is already a multiple of 128).
    return out[..., :n_hidden], hidds[..., :n_hidden]


# --------------------------------------------------------------------------- #
# Pure-JAX reference                                                            #
# --------------------------------------------------------------------------- #
def mono_gru_reference(x, params_per_layer, n_hidden):
    T, B, _ = x.shape
    hidds = []
    inp = x
    out = None
    for (wrx, wrh, br, wzx, wzh, bz, wsx, wsh, bs) in params_per_layer:
        h = jnp.zeros((B, n_hidden), jnp.float32)
        outs = []
        for t in range(T):
            xt = inp[t]
            r = jax.nn.sigmoid(xt @ wrx + h @ wrh + br)
            z = jax.nn.sigmoid(xt @ wzx + h @ wzh + bz)
            s = jnp.tanh(xt @ wsx + (r * h) @ wsh + bs)
            h = z * h + (1.0 - z) * s
            outs.append(h)
        out = jnp.stack(outs, axis=0)
        hidds.append(h)
        inp = out
    return out, jnp.stack(hidds, axis=0)


# --------------------------------------------------------------------------- #
if __name__ == "__main__":
    T, B = 8, 2
    n_input, n_hidden, n_layers = 4, 32, 2

    key = jax.random.PRNGKey(0)
    key, kx = jax.random.split(key)
    x = jax.random.normal(kx, (T, B, n_input), jnp.float32)
    raw_params = init_mono_gru_params(key, n_input, n_hidden, n_layers)

    # Weight packing / fusing / lane-padding happens ONCE, outside jit.
    packed_f32 = pack_mono_gru_params(raw_params, jnp.float32)

    fwd_f32 = jax.jit(lambda xx, pp: mono_gru_forward(xx, pp, n_hidden))
    outs, hidds = jax.block_until_ready(fwd_f32(x, packed_f32))

    ref_outs, ref_hidds = mono_gru_reference(x, raw_params, n_hidden)

    assert outs.shape == (T, B, n_hidden)
    assert hidds.shape == (n_layers, B, n_hidden)
    assert jnp.allclose(outs, ref_outs, atol=1e-5, rtol=1e-5)
    assert jnp.allclose(hidds, ref_hidds, atol=1e-5, rtol=1e-5)

    # Optional bf16 path: bf16 weights / xp / inter-layer streams, f32 gate math.
    # At moderate H the recurrence is EUP-bound, so this buys HBM headroom rather
    # than MXU throughput; validated loosely (error compounds over long T).
    packed_bf16 = pack_mono_gru_params(raw_params, jnp.bfloat16)
    fwd_bf16 = jax.jit(lambda xx, pp: mono_gru_forward(
        xx, pp, n_hidden, compute_dtype=jnp.bfloat16))
    outs_bf, _ = jax.block_until_ready(fwd_bf16(x, packed_bf16))
    assert jnp.allclose(outs_bf, ref_outs, atol=1e-1, rtol=1e-1)

    # TODO(synk): BiGRU path (bidirectional=True) = two MonoGRU passes on x and
    # x[::-1] with concatenation; not exercised (module default is False).

    print("KERNEL_OK")
</pallas_src>

<mosaic_0001>
module attributes {stable_mosaic.version = 11 : i64} {
  func.func @_xproj_kernel(%arg0: i32, %arg1: memref<16x4xf32, #tpu.memory_space<vmem>>, %arg2: memref<4x384xf32, #tpu.memory_space<vmem>>, %arg3: memref<1x384xf32, #tpu.memory_space<vmem>>, %arg4: memref<16x384xf32, #tpu.memory_space<vmem>>) attributes {dimension_semantics = [#tpu.dimension_semantics<parallel>], iteration_bounds = array<i64: 1>, scalar_prefetch = 0 : i64, scratch_operands = 0 : i64, tpu.core_type = #tpu.core_type<tc>, window_params = [{transform_indices = @transform_0, window_bounds = array<i64: 16, 4>}, {pipeline_mode = #tpu.pipeline_mode<synchronous>, transform_indices = @transform_1, window_bounds = array<i64: 4, 384>}, {pipeline_mode = #tpu.pipeline_mode<synchronous>, transform_indices = @transform_2, window_bounds = array<i64: 1, 384>}, {transform_indices = @transform_3, window_bounds = array<i64: 16, 384>}]} {
    %c0 = arith.constant 0 : index
    %c0_0 = arith.constant 0 : index
    %0 = vector.load %arg1[%c0, %c0_0] : memref<16x4xf32, #tpu.memory_space<vmem>>, vector<16x4xf32>
    %c0_1 = arith.constant 0 : index
    %c0_2 = arith.constant 0 : index
    %1 = vector.load %arg2[%c0_1, %c0_2] : memref<4x384xf32, #tpu.memory_space<vmem>>, vector<4x384xf32>
    %cst = arith.constant dense<0.000000e+00> : vector<16x384xf32>
    %2 = tpu.matmul %0, %1, %cst {dimension_numbers = #tpu.dot_dimension_numbers<[1], [0], [0], [1], [0, 0, 1, 1], [], []>} : vector<16x4xf32>, vector<4x384xf32>, vector<16x384xf32> -> vector<16x384xf32>
    %c0_3 = arith.constant 0 : index
    %c0_4 = arith.constant 0 : index
    %3 = vector.load %arg3[%c0_3, %c0_4] : memref<1x384xf32, #tpu.memory_space<vmem>>, vector<1x384xf32>
    %4 = vector.broadcast %3 : vector<1x384xf32> to vector<16x384xf32>
    %5 = arith.addf %2, %4 : vector<16x384xf32>
    %c0_5 = arith.constant 0 : index
    %c0_6 = arith.constant 0 : index
    %6 = vector.load %arg4[%c0_5, %c0_6] : memref<16x384xf32, #tpu.memory_space<vmem>>, vector<16x384xf32>
    tpu.vector_store %arg4[%c0_5, %c0_6], %5 {strides = array<i32>} : memref<16x384xf32, #tpu.memory_space<vmem>>, vector<16x384xf32>,
    return
  }
  func.func @transform_0(%arg0: i32) -> (i32, i32) {
    %c0_i32 = arith.constant 0 : i32
    %c0_i32_0 = arith.constant 0 : i32
    return %arg0, %c0_i32 : i32, i32
  }
  func.func @transform_1(%arg0: i32) -> (i32, i32) {
    %c0_i32 = arith.constant 0 : i32
    %c0_i32_0 = arith.constant 0 : i32
    %c0_i32_1 = arith.constant 0 : i32
    return %c0_i32, %c0_i32_0 : i32, i32
  }
  func.func @transform_2(%arg0: i32) -> (i32, i32) {
    %c0_i32 = arith.constant 0 : i32
    %c0_i32_0 = arith.constant 0 : i32
    %c0_i32_1 = arith.constant 0 : i32
    return %c0_i32, %c0_i32_0 : i32, i32
  }
  func.func @transform_3(%arg0: i32) -> (i32, i32) {
    %c0_i32 = arith.constant 0 : i32
    %c0_i32_0 = arith.constant 0 : i32
    return %arg0, %c0_i32 : i32, i32
  }
}

module attributes {stable_mosaic.version = 11 : i64} {
  func.func @_gru_recurrent_kernel(%arg0: i32, %arg1: i32, %arg2: memref<8x2x384xf32, #tpu.memory_space<vmem>>, %arg3: memref<128x256xf32, #tpu.memory_space<vmem>>, %arg4: memref<128x128xf32, #tpu.memory_space<vmem>>, %arg5: memref<8x2x128xf32, #tpu.memory_space<vmem>>, %arg6: memref<2x128xf32, #tpu.memory_space<vmem>>, %arg7: memref<2x128xf32, #tpu.memory_space<vmem>>) attributes {dimension_semantics = [#tpu.dimension_semantics<parallel>, #tpu.dimension_semantics<arbitrary>], iteration_bounds = array<i64: 1, 1>, scalar_prefetch = 0 : i64, scratch_operands = 1 : i64, tpu.core_type = #tpu.core_type<tc>, window_params = [{transform_indices = @transform_0, window_bounds = array<i64: 8, 2, 384>}, {pipeline_mode = #tpu.pipeline_mode<synchronous>, transform_indices = @transform_1, window_bounds = array<i64: 128, 256>}, {pipeline_mode = #tpu.pipeline_mode<synchronous>, transform_indices = @transform_2, window_bounds = array<i64: 128, 128>}, {transform_indices = @transform_3, window_bounds = array<i64: 8, 2, 128>}, {transform_indices = @transform_4, window_bounds = array<i64: 2, 128>}]} {
    %c0_i32 = arith.constant 0 : i32
    %0 = arith.cmpi eq, %arg1, %c0_i32 : i32
    %1 = arith.extui %0 : i1 to i32
    %c0_i32_0 = arith.constant 0 : i32
    %2 = arith.cmpi ne, %1, %c0_i32_0 : i32
    scf.if %2 {
      %cst_82 = arith.constant 0.000000e+00 : f32
      %280 = vector.broadcast %cst_82 : f32 to vector<2x128xf32>
      %c0_83 = arith.constant 0 : index
      %c0_84 = arith.constant 0 : index
      %281 = vector.load %arg7[%c0_83, %c0_84] : memref<2x128xf32, #tpu.memory_space<vmem>>, vector<2x128xf32>
      tpu.vector_store %arg7[%c0_83, %c0_84], %280 {strides = array<i32>} : memref<2x128xf32, #tpu.memory_space<vmem>>, vector<2x128xf32>,
    } else {
    }
    %c0 = arith.constant 0 : index
    %c0_1 = arith.constant 0 : index
    %3 = vector.load %arg3[%c0, %c0_1] : memref<128x256xf32, #tpu.memory_space<vmem>>, vector<128x256xf32>
    %c0_2 = arith.constant 0 : index
    %c0_3 = arith.constant 0 : index
    %4 = vector.load %arg4[%c0_2, %c0_3] : memref<128x128xf32, #tpu.memory_space<vmem>>, vector<128x128xf32>
    %c0_4 = arith.constant 0 : index
    %c0_5 = arith.constant 0 : index
    %5 = vector.load %arg7[%c0_4, %c0_5] : memref<2x128xf32, #tpu.memory_space<vmem>>, vector<2x128xf32>
    %c0_i32_6 = arith.constant 0 : i32
    %6 = arith.index_cast %c0_i32_6 : i32 to index
    %c0_7 = arith.constant 0 : index
    %c0_8 = arith.constant 0 : index
    %7 = vector.load %arg2[%6, %c0_7, %c0_8] : memref<8x2x384xf32, #tpu.memory_space<vmem>>, vector<1x2x384xf32>
    %8 = vector.shape_cast %7 : vector<1x2x384xf32> to vector<2x384xf32>
    %cst = arith.constant dense<0.000000e+00> : vector<2x256xf32>
    %9 = tpu.matmul %5, %3, %cst {dimension_numbers = #tpu.dot_dimension_numbers<[1], [0], [0], [1], [0, 0, 1, 1], [], []>} : vector<2x128xf32>, vector<128x256xf32>, vector<2x256xf32> -> vector<2x256xf32>
    %10 = vector.extract_strided_slice %8 {offsets = [0, 0], sizes = [2, 128], strides = [1, 1]} : vector<2x384xf32> to vector<2x128xf32>
    %11 = vector.extract_strided_slice %9 {offsets = [0, 0], sizes = [2, 128], strides = [1, 1]} : vector<2x256xf32> to vector<2x128xf32>
    %12 = arith.addf %10, %11 : vector<2x128xf32>
    %13 = arith.negf %12 : vector<2x128xf32>
    %14 = math.exp %13 : vector<2x128xf32>
    %cst_9 = arith.constant 1.000000e+00 : f32
    %15 = vector.broadcast %cst_9 : f32 to vector<2x128xf32>
    %16 = arith.addf %15, %14 : vector<2x128xf32>
    %17 = arith.divf %15, %16 : vector<2x128xf32>
    %18 = vector.extract_strided_slice %8 {offsets = [0, 128], sizes = [2, 128], strides = [1, 1]} : vector<2x384xf32> to vector<2x128xf32>
    %19 = vector.extract_strided_slice %9 {offsets = [0, 128], sizes = [2, 128], strides = [1, 1]} : vector<2x256xf32> to vector<2x128xf32>
    %20 = arith.addf %18, %19 : vector<2x128xf32>
    %21 = arith.negf %20 : vector<2x128xf32>
    %22 = math.exp %21 : vector<2x128xf32>
    %cst_10 = arith.constant 1.000000e+00 : f32
    %23 = vector.broadcast %cst_10 : f32 to vector<2x128xf32>
    %24 = arith.addf %23, %22 : vector<2x128xf32>
    %25 = arith.divf %23, %24 : vector<2x128xf32>
    %26 = vector.extract_strided_slice %8 {offsets = [0, 256], sizes = [2, 128], strides = [1, 1]} : vector<2x384xf32> to vector<2x128xf32>
    %27 = arith.mulf %17, %5 : vector<2x128xf32>
    %cst_11 = arith.constant dense<0.000000e+00> : vector<2x128xf32>
    %28 = tpu.matmul %27, %4, %cst_11 {dimension_numbers = #tpu.dot_dimension_numbers<[1], [0], [0], [1], [0, 0, 1, 1], [], []>} : vector<2x128xf32>, vector<128x128xf32>, vector<2x128xf32> -> vector<2x128xf32>
    %29 = arith.addf %26, %28 : vector<2x128xf32>
    %30 = math.tanh %29 : vector<2x128xf32>
    %31 = arith.mulf %25, %5 : vector<2x128xf32>
    %cst_12 = arith.constant 1.000000e+00 : f32
    %32 = vector.broadcast %cst_12 : f32 to vector<2x128xf32>
    %33 = arith.subf %32, %25 : vector<2x128xf32>
    %34 = arith.mulf %33, %30 : vector<2x128xf32>
    %35 = arith.addf %31, %34 : vector<2x128xf32>
    %36 = arith.index_cast %c0_i32_6 : i32 to index
    %c0_13 = arith.constant 0 : index
    %c0_14 = arith.constant 0 : index
    %37 = vector.load %arg5[%36, %c0_13, %c0_14] : memref<8x2x128xf32, #tpu.memory_space<vmem>>, vector<1x2x128xf32>
    %38 = vector.shape_cast %37 : vector<1x2x128xf32> to vector<2x128xf32>
    %39 = vector.shape_cast %35 : vector<2x128xf32> to vector<1x2x128xf32>
    tpu.vector_store %arg5[%36, %c0_13, %c0_14], %39 {strides = array<i32>} : memref<8x2x128xf32, #tpu.memory_space<vmem>>, vector<1x2x128xf32>,
    %c1_i32 = arith.constant 1 : i32
    %40 = arith.index_cast %c1_i32 : i32 to index
    %c0_15 = arith.constant 0 : index
    %c0_16 = arith.constant 0 : index
    %41 = vector.load %arg2[%40, %c0_15, %c0_16] : memref<8x2x384xf32, #tpu.memory_space<vmem>>, vector<1x2x384xf32>
    %42 = vector.shape_cast %41 : vector<1x2x384xf32> to vector<2x384xf32>
    %cst_17 = arith.constant dense<0.000000e+00> : vector<2x256xf32>
    %43 = tpu.matmul %35, %3, %cst_17 {dimension_numbers = #tpu.dot_dimension_numbers<[1], [0], [0], [1], [0, 0, 1, 1], [], []>} : vector<2x128xf32>, vector<128x256xf32>, vector<2x256xf32> -> vector<2x256xf32>
    %44 = vector.extract_strided_slice %42 {offsets = [0, 0], sizes = [2, 128], strides = [1, 1]} : vector<2x384xf32> to vector<2x128xf32>
    %45 = vector.extract_strided_slice %43 {offsets = [0, 0], sizes = [2, 128], strides = [1, 1]} : vector<2x256xf32> to vector<2x128xf32>
    %46 = arith.addf %44, %45 : vector<2x128xf32>
    %47 = arith.negf %46 : vector<2x128xf32>
    %48 = math.exp %47 : vector<2x128xf32>
    %cst_18 = arith.constant 1.000000e+00 : f32
    %49 = vector.broadcast %cst_18 : f32 to vector<2x128xf32>
    %50 = arith.addf %49, %48 : vector<2x128xf32>
    %51 = arith.divf %49, %50 : vector<2x128xf32>
    %52 = vector.extract_strided_slice %42 {offsets = [0, 128], sizes = [2, 128], strides = [1, 1]} : vector<2x384xf32> to vector<2x128xf32>
    %53 = vector.extract_strided_slice %43 {offsets = [0, 128], sizes = [2, 128], strides = [1, 1]} : vector<2x256xf32> to vector<2x128xf32>
    %54 = arith.addf %52, %53 : vector<2x128xf32>
    %55 = arith.negf %54 : vector<2x128xf32>
    %56 = math.exp %55 : vector<2x128xf32>
    %cst_19 = arith.constant 1.000000e+00 : f32
    %57 = vector.broadcast %cst_19 : f32 to vector<2x128xf32>
    %58 = arith.addf %57, %56 : vector<2x128xf32>
    %59 = arith.divf %57, %58 : vector<2x128xf32>
    %60 = vector.extract_strided_slice %42 {offsets = [0, 256], sizes = [2, 128], strides = [1, 1]} : vector<2x384xf32> to vector<2x128xf32>
    %61 = arith.mulf %51, %35 : vector<2x128xf32>
    %cst_20 = arith.constant dense<0.000000e+00> : vector<2x128xf32>
    %62 = tpu.matmul %61, %4, %cst_20 {dimension_numbers = #tpu.dot_dimension_numbers<[1], [0], [0], [1], [0, 0, 1, 1], [], []>} : vector<2x128xf32>, vector<128x128xf32>, vector<2x128xf32> -> vector<2x128xf32>
    %63 = arith.addf %60, %62 : vector<2x128xf32>
    %64 = math.tanh %63 : vector<2x128xf32>
    %65 = arith.mulf %59, %35 : vector<2x128xf32>
    %cst_21 = arith.constant 1.000000e+00 : f32
    %66 = vector.broadcast %cst_21 : f32 to vector<2x128xf32>
    %67 = arith.subf %66, %59 : vector<2x128xf32>
    %68 = arith.mulf %67, %64 : vector<2x128xf32>
    %69 = arith.addf %65, %68 : vector<2x128xf32>
    %70 = arith.index_cast %c1_i32 : i32 to index
    %c0_22 = arith.constant 0 : index
    %c0_23 = arith.constant 0 : index
    %71 = vector.load %arg5[%70, %c0_22, %c0_23] : memref<8x2x128xf32, #tpu.memory_space<vmem>>, vector<1x2x128xf32>
    %72 = vector.shape_cast %71 : vector<1x2x128xf32> to vector<2x128xf32>
    %73 = vector.shape_cast %69 : vector<2x128xf32> to vector<1x2x128xf32>
    tpu.vector_store %arg5[%70, %c0_22, %c0_23], %73 {strides = array<i32>} : memref<8x2x128xf32, #tpu.memory_space<vmem>>, vector<1x2x128xf32>,
    %c2_i32 = arith.constant 2 : i32
    %74 = arith.index_cast %c2_i32 : i32 to index
    %c0_24 = arith.constant 0 : index
    %c0_25 = arith.constant 0 : index
    %75 = vector.load %arg2[%74, %c0_24, %c0_25] : memref<8x2x384xf32, #tpu.memory_space<vmem>>, vector<1x2x384xf32>
    %76 = vector.shape_cast %75 : vector<1x2x384xf32> to vector<2x384xf32>
    %cst_26 = arith.constant dense<0.000000e+00> : vector<2x256xf32>
    %77 = tpu.matmul %69, %3, %cst_26 {dimension_numbers = #tpu.dot_dimension_numbers<[1], [0], [0], [1], [0, 0, 1, 1], [], []>} : vector<2x128xf32>, vector<128x256xf32>, vector<2x256xf32> -> vector<2x256xf32>
    %78 = vector.extract_strided_slice %76 {offsets = [0, 0], sizes = [2, 128], strides = [1, 1]} : vector<2x384xf32> to vector<2x128xf32>
    %79 = vector.extract_strided_slice %77 {offsets = [0, 0], sizes = [2, 128], strides = [1, 1]} : vector<2x256xf32> to vector<2x128xf32>
    %80 = arith.addf %78, %79 : vector<2x128xf32>
    %81 = arith.negf %80 : vector<2x128xf32>
    %82 = math.exp %81 : vector<2x128xf32>
    %cst_27 = arith.constant 1.000000e+00 : f32
    %83 = vector.broadcast %cst_27 : f32 to vector<2x128xf32>
    %84 = arith.addf %83, %82 : vector<2x128xf32>
    %85 = arith.divf %83, %84 : vector<2x128xf32>
    %86 = vector.extract_strided_slice %76 {offsets = [0, 128], sizes = [2, 128], strides = [1, 1]} : vector<2x384xf32> to vector<2x128xf32>
    %87 = vector.extract_strided_slice %77 {offsets = [0, 128], sizes = [2, 128], strides = [1, 1]} : vector<2x256xf32> to vector<2x128xf32>
    %88 = arith.addf %86, %87 : vector<2x128xf32>
    %89 = arith.negf %88 : vector<2x128xf32>
    %90 = math.exp %89 : vector<2x128xf32>
    %cst_28 = arith.constant 1.000000e+00 : f32
    %91 = vector.broadcast %cst_28 : f32 to vector<2x128xf32>
    %92 = arith.addf %91, %90 : vector<2x128xf32>
    %93 = arith.divf %91, %92 : vector<2x128xf32>
    %94 = vector.extract_strided_slice %76 {offsets = [0, 256], sizes = [2, 128], strides = [1, 1]} : vector<2x384xf32> to vector<2x128xf32>
    %95 = arith.mulf %85, %69 : vector<2x128xf32>
    %cst_29 = arith.constant dense<0.000000e+00> : vector<2x128xf32>
    %96 = tpu.matmul %95, %4, %cst_29 {dimension_numbers = #tpu.dot_dimension_numbers<[1], [0], [0], [1], [0, 0, 1, 1], [], []>} : vector<2x128xf32>, vector<128x128xf32>, vector<2x128xf32> -> vector<2x128xf32>
    %97 = arith.addf %94, %96 : vector<2x128xf32>
    %98 = math.tanh %97 : vector<2x128xf32>
    %99 = arith.mulf %93, %69 : vector<2x128xf32>
    %cst_30 = arith.constant 1.000000e+00 : f32
    %100 = vector.broadcast %cst_30 : f32 to vector<2x128xf32>
    %101 = arith.subf %100, %93 : vector<2x128xf32>
    %102 = arith.mulf %101, %98 : vector<2x128xf32>
    %103 = arith.addf %99, %102 : vector<2x128xf32>
    %104 = arith.index_cast %c2_i32 : i32 to index
    %c0_31 = arith.constant 0 : index
    %c0_32 = arith.constant 0 : index
    %105 = vector.load %arg5[%104, %c0_31, %c0_32] : memref<8x2x128xf32, #tpu.memory_space<vmem>>, vector<1x2x128xf32>
    %106 = vector.shape_cast %105 : vector<1x2x128xf32> to vector<2x128xf32>
    %107 = vector.shape_cast %103 : vector<2x128xf32> to vector<1x2x128xf32>
    tpu.vector_store %arg5[%104, %c0_31, %c0_32], %107 {strides = array<i32>} : memref<8x2x128xf32, #tpu.memory_space<vmem>>, vector<1x2x128xf32>,
    %c3_i32 = arith.constant 3 : i32
    %108 = arith.index_cast %c3_i32 : i32 to index
    %c0_33 = arith.constant 0 : index
    %c0_34 = arith.constant 0 : index
    %109 = vector.load %arg2[%108, %c0_33, %c0_34] : memref<8x2x384xf32, #tpu.memory_space<vmem>>, vector<1x2x384xf32>
    %110 = vector.shape_cast %109 : vector<1x2x384xf32> to vector<2x384xf32>
    %cst_35 = arith.constant dense<0.000000e+00> : vector<2x256xf32>
    %111 = tpu.matmul %103, %3, %cst_35 {dimension_numbers = #tpu.dot_dimension_numbers<[1], [0], [0], [1], [0, 0, 1, 1], [], []>} : vector<2x128xf32>, vector<128x256xf32>, vector<2x256xf32> -> vector<2x256xf32>
    %112 = vector.extract_strided_slice %110 {offsets = [0, 0], sizes = [2, 128], strides = [1, 1]} : vector<2x384xf32> to vector<2x128xf32>
    %113 = vector.extract_strided_slice %111 {offsets = [0, 0], sizes = [2, 128], strides = [1, 1]} : vector<2x256xf32> to vector<2x128xf32>
    %114 = arith.addf %112, %113 : vector<2x128xf32>
    %115 = arith.negf %114 : vector<2x128xf32>
    %116 = math.exp %115 : vector<2x128xf32>
    %cst_36 = arith.constant 1.000000e+00 : f32
    %117 = vector.broadcast %cst_36 : f32 to vector<2x128xf32>
    %118 = arith.addf %117, %116 : vector<2x128xf32>
    %119 = arith.divf %117, %118 : vector<2x128xf32>
    %120 = vector.extract_strided_slice %110 {offsets = [0, 128], sizes = [2, 128], strides = [1, 1]} : vector<2x384xf32> to vector<2x128xf32>
    %121 = vector.extract_strided_slice %111 {offsets = [0, 128], sizes = [2, 128], strides = [1, 1]} : vector<2x256xf32> to vector<2x128xf32>
    %122 = arith.addf %120, %121 : vector<2x128xf32>
    %123 = arith.negf %122 : vector<2x128xf32>
    %124 = math.exp %123 : vector<2x128xf32>
    %cst_37 = arith.constant 1.000000e+00 : f32
    %125 = vector.broadcast %cst_37 : f32 to vector<2x128xf32>
    %126 = arith.addf %125, %124 : vector<2x128xf32>
    %127 = arith.divf %125, %126 : vector<2x128xf32>
    %128 = vector.extract_strided_slice %110 {offsets = [0, 256], sizes = [2, 128], strides = [1, 1]} : vector<2x384xf32> to vector<2x128xf32>
    %129 = arith.mulf %119, %103 : vector<2x128xf32>
    %cst_38 = arith.constant dense<0.000000e+00> : vector<2x128xf32>
    %130 = tpu.matmul %129, %4, %cst_38 {dimension_numbers = #tpu.dot_dimension_numbers<[1], [0], [0], [1], [0, 0, 1, 1], [], []>} : vector<2x128xf32>, vector<128x128xf32>, vector<2x128xf32> -> vector<2x128xf32>
    %131 = arith.addf %128, %130 : vector<2x128xf32>
    %132 = math.tanh %131 : vector<2x128xf32>
    %133 = arith.mulf %127, %103 : vector<2x128xf32>
    %cst_39 = arith.constant 1.000000e+00 : f32
    %134 = vector.broadcast %cst_39 : f32 to vector<2x128xf32>
    %135 = arith.subf %134, %127 : vector<2x128xf32>
    %136 = arith.mulf %135, %132 : vector<2x128xf32>
    %137 = arith.addf %133, %136 : vector<2x128xf32>
    %138 = arith.index_cast %c3_i32 : i32 to index
    %c0_40 = arith.constant 0 : index
    %c0_41 = arith.constant 0 : index
    %139 = vector.load %arg5[%138, %c0_40, %c0_41] : memref<8x2x128xf32, #tpu.memory_space<vmem>>, vector<1x2x128xf32>
    %140 = vector.shape_cast %139 : vector<1x2x128xf32> to vector<2x128xf32>
    %141 = vector.shape_cast %137 : vector<2x128xf32> to vector<1x2x128xf32>
    tpu.vector_store %arg5[%138, %c0_40, %c0_41], %141 {strides = array<i32>} : memref<8x2x128xf32, #tpu.memory_space<vmem>>, vector<1x2x128xf32>,
    %c4_i32 = arith.constant 4 : i32
    %142 = arith.index_cast %c4_i32 : i32 to index
    %c0_42 = arith.constant 0 : index
    %c0_43 = arith.constant 0 : index
    %143 = vector.load %arg2[%142, %c0_42, %c0_43] : memref<8x2x384xf32, #tpu.memory_space<vmem>>, vector<1x2x384xf32>
    %144 = vector.shape_cast %143 : vector<1x2x384xf32> to vector<2x384xf32>
    %cst_44 = arith.constant dense<0.000000e+00> : vector<2x256xf32>
    %145 = tpu.matmul %137, %3, %cst_44 {dimension_numbers = #tpu.dot_dimension_numbers<[1], [0], [0], [1], [0, 0, 1, 1], [], []>} : vector<2x128xf32>, vector<128x256xf32>, vector<2x256xf32> -> vector<2x256xf32>
    %146 = vector.extract_strided_slice %144 {offsets = [0, 0], sizes = [2, 128], strides = [1, 1]} : vector<2x384xf32> to vector<2x128xf32>
    %147 = vector.extract_strided_slice %145 {offsets = [0, 0], sizes = [2, 128], strides = [1, 1]} : vector<2x256xf32> to vector<2x128xf32>
    %148 = arith.addf %146, %147 : vector<2x128xf32>
    %149 = arith.negf %148 : vector<2x128xf32>
    %150 = math.exp %149 : vector<2x128xf32>
    %cst_45 = arith.constant 1.000000e+00 : f32
    %151 = vector.broadcast %cst_45 : f32 to vector<2x128xf32>
    %152 = arith.addf %151, %150 : vector<2x128xf32>
    %153 = arith.divf %151, %152 : vector<2x128xf32>
    %154 = vector.extract_strided_slice %144 {offsets = [0, 128], sizes = [2, 128], strides = [1, 1]} : vector<2x384xf32> to vector<2x128xf32>
    %155 = vector.extract_strided_slice %145 {offsets = [0, 128], sizes = [2, 128], strides = [1, 1]} : vector<2x256xf32> to vector<2x128xf32>
    %156 = arith.addf %154, %155 : vector<2x128xf32>
    %157 = arith.negf %156 : vector<2x128xf32>
    %158 = math.exp %157 : vector<2x128xf32>
    %cst_46 = arith.constant 1.000000e+00 : f32
    %159 = vector.broadcast %cst_46 : f32 to vector<2x128xf32>
    %160 = arith.addf %159, %158 : vector<2x128xf32>
    %161 = arith.divf %159, %160 : vector<2x128xf32>
    %162 = vector.extract_strided_slice %144 {offsets = [0, 256], sizes = [2, 128], strides = [1, 1]} : vector<2x384xf32> to vector<2x128xf32>
    %163 = arith.mulf %153, %137 : vector<2x128xf32>
    %cst_47 = arith.constant dense<0.000000e+00> : vector<2x128xf32>
    %164 = tpu.matmul %163, %4, %cst_47 {dimension_numbers = #tpu.dot_dimension_numbers<[1], [0], [0], [1], [0, 0, 1, 1], [], []>} : vector<2x128xf32>, vector<128x128xf32>, vector<2x128xf32> -> vector<2x128xf32>
    %165 = arith.addf %162, %164 : vector<2x128xf32>
    %166 = math.tanh %165 : vector<2x128xf32>
    %167 = arith.mulf %161, %137 : vector<2x128xf32>
    %cst_48 = arith.constant 1.000000e+00 : f32
    %168 = vector.broadcast %cst_48 : f32 to vector<2x128xf32>
    %169 = arith.subf %168, %161 : vector<2x128xf32>
    %170 = arith.mulf %169, %166 : vector<2x128xf32>
    %171 = arith.addf %167, %170 : vector<2x128xf32>
    %172 = arith.index_cast %c4_i32 : i32 to index
    %c0_49 = arith.constant 0 : index
    %c0_50 = arith.constant 0 : index
    %173 = vector.load %arg5[%172, %c0_49, %c0_50] : memref<8x2x128xf32, #tpu.memory_space<vmem>>, vector<1x2x128xf32>
    %174 = vector.shape_cast %173 : vector<1x2x128xf32> to vector<2x128xf32>
    %175 = vector.shape_cast %171 : vector<2x128xf32> to vector<1x2x128xf32>
    tpu.vector_store %arg5[%172, %c0_49, %c0_50], %175 {strides = array<i32>} : memref<8x2x128xf32, #tpu.memory_space<vmem>>, vector<1x2x128xf32>,
    %c5_i32 = arith.constant 5 : i32
    %176 = arith.index_cast %c5_i32 : i32 to index
    %c0_51 = arith.constant 0 : index
    %c0_52 = arith.constant 0 : index
    %177 = vector.load %arg2[%176, %c0_51, %c0_52] : memref<8x2x384xf32, #tpu.memory_space<vmem>>, vector<1x2x384xf32>
    %178 = vector.shape_cast %177 : vector<1x2x384xf32> to vector<2x384xf32>
    %cst_53 = arith.constant dense<0.000000e+00> : vector<2x256xf32>
    %179 = tpu.matmul %171, %3, %cst_53 {dimension_numbers = #tpu.dot_dimension_numbers<[1], [0], [0], [1], [0, 0, 1, 1], [], []>} : vector<2x128xf32>, vector<128x256xf32>, vector<2x256xf32> -> vector<2x256xf32>
    %180 = vector.extract_strided_slice %178 {offsets = [0, 0], sizes = [2, 128], strides = [1, 1]} : vector<2x384xf32> to vector<2x128xf32>
    %181 = vector.extract_strided_slice %179 {offsets = [0, 0], sizes = [2, 128], strides = [1, 1]} : vector<2x256xf32> to vector<2x128xf32>
    %182 = arith.addf %180, %181 : vector<2x128xf32>
    %183 = arith.negf %182 : vector<2x128xf32>
    %184 = math.exp %183 : vector<2x128xf32>
    %cst_54 = arith.constant 1.000000e+00 : f32
    %185 = vector.broadcast %cst_54 : f32 to vector<2x128xf32>
    %186 = arith.addf %185, %184 : vector<2x128xf32>
    %187 = arith.divf %185, %186 : vector<2x128xf32>
    %188 = vector.extract_strided_slice %178 {offsets = [0, 128], sizes = [2, 128], strides = [1, 1]} : vector<2x384xf32> to vector<2x128xf32>
    %189 = vector.extract_strided_slice %179 {offsets = [0, 128], sizes = [2, 128], strides = [1, 1]} : vector<2x256xf32> to vector<2x128xf32>
    %190 = arith.addf %188, %189 : vector<2x128xf32>
    %191 = arith.negf %190 : vector<2x128xf32>
    %192 = math.exp %191 : vector<2x128xf32>
    %cst_55 = arith.constant 1.000000e+00 : f32
    %193 = vector.broadcast %cst_55 : f32 to vector<2x128xf32>
    %194 = arith.addf %193, %192 : vector<2x128xf32>
    %195 = arith.divf %193, %194 : vector<2x128xf32>
    %196 = vector.extract_strided_slice %178 {offsets = [0, 256], sizes = [2, 128], strides = [1, 1]} : vector<2x384xf32> to vector<2x128xf32>
    %197 = arith.mulf %187, %171 : vector<2x128xf32>
    %cst_56 = arith.constant dense<0.000000e+00> : vector<2x128xf32>
    %198 = tpu.matmul %197, %4, %cst_56 {dimension_numbers = #tpu.dot_dimension_numbers<[1], [0], [0], [1], [0, 0, 1, 1], [], []>} : vector<2x128xf32>, vector<128x128xf32>, vector<2x128xf32> -> vector<2x128xf32>
    %199 = arith.addf %196, %198 : vector<2x128xf32>
    %200 = math.tanh %199 : vector<2x128xf32>
    %201 = arith.mulf %195, %171 : vector<2x128xf32>
    %cst_57 = arith.constant 1.000000e+00 : f32
    %202 = vector.broadcast %cst_57 : f32 to vector<2x128xf32>
    %203 = arith.subf %202, %195 : vector<2x128xf32>
    %204 = arith.mulf %203, %200 : vector<2x128xf32>
    %205 = arith.addf %201, %204 : vector<2x128xf32>
    %206 = arith.index_cast %c5_i32 : i32 to index
    %c0_58 = arith.constant 0 : index
    %c0_59 = arith.constant 0 : index
    %207 = vector.load %arg5[%206, %c0_58, %c0_59] : memref<8x2x128xf32, #tpu.memory_space<vmem>>, vector<1x2x128xf32>
    %208 = vector.shape_cast %207 : vector<1x2x128xf32> to vector<2x128xf32>
    %209 = vector.shape_cast %205 : vector<2x128xf32> to vector<1x2x128xf32>
    tpu.vector_store %arg5[%206, %c0_58, %c0_59], %209 {strides = array<i32>} : memref<8x2x128xf32, #tpu.memory_space<vmem>>, vector<1x2x128xf32>,
    %c6_i32 = arith.constant 6 : i32
    %210 = arith.index_cast %c6_i32 : i32 to index
    %c0_60 = arith.constant 0 : index
    %c0_61 = arith.constant 0 : index
    %211 = vector.load %arg2[%210, %c0_60, %c0_61] : memref<8x2x384xf32, #tpu.memory_space<vmem>>, vector<1x2x384xf32>
    %212 = vector.shape_cast %211 : vector<1x2x384xf32> to vector<2x384xf32>
    %cst_62 = arith.constant dense<0.000000e+00> : vector<2x256xf32>
    %213 = tpu.matmul %205, %3, %cst_62 {dimension_numbers = #tpu.dot_dimension_numbers<[1], [0], [0], [1], [0, 0, 1, 1], [], []>} : vector<2x128xf32>, vector<128x256xf32>, vector<2x256xf32> -> vector<2x256xf32>
    %214 = vector.extract_strided_slice %212 {offsets = [0, 0], sizes = [2, 128], strides = [1, 1]} : vector<2x384xf32> to vector<2x128xf32>
    %215 = vector.extract_strided_slice %213 {offsets = [0, 0], sizes = [2, 128], strides = [1, 1]} : vector<2x256xf32> to vector<2x128xf32>
    %216 = arith.addf %214, %215 : vector<2x128xf32>
    %217 = arith.negf %216 : vector<2x128xf32>
    %218 = math.exp %217 : vector<2x128xf32>
    %cst_63 = arith.constant 1.000000e+00 : f32
    %219 = vector.broadcast %cst_63 : f32 to vector<2x128xf32>
    %220 = arith.addf %219, %218 : vector<2x128xf32>
    %221 = arith.divf %219, %220 : vector<2x128xf32>
    %222 = vector.extract_strided_slice %212 {offsets = [0, 128], sizes = [2, 128], strides = [1, 1]} : vector<2x384xf32> to vector<2x128xf32>
    %223 = vector.extract_strided_slice %213 {offsets = [0, 128], sizes = [2, 128], strides = [1, 1]} : vector<2x256xf32> to vector<2x128xf32>
    %224 = arith.addf %222, %223 : vector<2x128xf32>
    %225 = arith.negf %224 : vector<2x128xf32>
    %226 = math.exp %225 : vector<2x128xf32>
    %cst_64 = arith.constant 1.000000e+00 : f32
    %227 = vector.broadcast %cst_64 : f32 to vector<2x128xf32>
    %228 = arith.addf %227, %226 : vector<2x128xf32>
    %229 = arith.divf %227, %228 : vector<2x128xf32>
    %230 = vector.extract_strided_slice %212 {offsets = [0, 256], sizes = [2, 128], strides = [1, 1]} : vector<2x384xf32> to vector<2x128xf32>
    %231 = arith.mulf %221, %205 : vector<2x128xf32>
    %cst_65 = arith.constant dense<0.000000e+00> : vector<2x128xf32>
    %232 = tpu.matmul %231, %4, %cst_65 {dimension_numbers = #tpu.dot_dimension_numbers<[1], [0], [0], [1], [0, 0, 1, 1], [], []>} : vector<2x128xf32>, vector<128x128xf32>, vector<2x128xf32> -> vector<2x128xf32>
    %233 = arith.addf %230, %232 : vector<2x128xf32>
    %234 = math.tanh %233 : vector<2x128xf32>
    %235 = arith.mulf %229, %205 : vector<2x128xf32>
    %cst_66 = arith.constant 1.000000e+00 : f32
    %236 = vector.broadcast %cst_66 : f32 to vector<2x128xf32>
    %237 = arith.subf %236, %229 : vector<2x128xf32>
    %238 = arith.mulf %237, %234 : vector<2x128xf32>
    %239 = arith.addf %235, %238 : vector<2x128xf32>
    %240 = arith.index_cast %c6_i32 : i32 to index
    %c0_67 = arith.constant 0 : index
    %c0_68 = arith.constant 0 : index
    %241 = vector.load %arg5[%240, %c0_67, %c0_68] : memref<8x2x128xf32, #tpu.memory_space<vmem>>, vector<1x2x128xf32>
    %242 = vector.shape_cast %241 : vector<1x2x128xf32> to vector<2x128xf32>
    %243 = vector.shape_cast %239 : vector<2x128xf32> to vector<1x2x128xf32>
    tpu.vector_store %arg5[%240, %c0_67, %c0_68], %243 {strides = array<i32>} : memref<8x2x128xf32, #tpu.memory_space<vmem>>, vector<1x2x128xf32>,
    %c7_i32 = arith.constant 7 : i32
    %244 = arith.index_cast %c7_i32 : i32 to index
    %c0_69 = arith.constant 0 : index
    %c0_70 = arith.constant 0 : index
    %245 = vector.load %arg2[%244, %c0_69, %c0_70] : memref<8x2x384xf32, #tpu.memory_space<vmem>>, vector<1x2x384xf32>
    %246 = vector.shape_cast %245 : vector<1x2x384xf32> to vector<2x384xf32>
    %cst_71 = arith.constant dense<0.000000e+00> : vector<2x256xf32>
    %247 = tpu.matmul %239, %3, %cst_71 {dimension_numbers = #tpu.dot_dimension_numbers<[1], [0], [0], [1], [0, 0, 1, 1], [], []>} : vector<2x128xf32>, vector<128x256xf32>, vector<2x256xf32> -> vector<2x256xf32>
    %248 = vector.extract_strided_slice %246 {offsets = [0, 0], sizes = [2, 128], strides = [1, 1]} : vector<2x384xf32> to vector<2x128xf32>
    %249 = vector.extract_strided_slice %247 {offsets = [0, 0], sizes = [2, 128], strides = [1, 1]} : vector<2x256xf32> to vector<2x128xf32>
    %250 = arith.addf %248, %249 : vector<2x128xf32>
    %251 = arith.negf %250 : vector<2x128xf32>
    %252 = math.exp %251 : vector<2x128xf32>
    %cst_72 = arith.constant 1.000000e+00 : f32
    %253 = vector.broadcast %cst_72 : f32 to vector<2x128xf32>
    %254 = arith.addf %253, %252 : vector<2x128xf32>
    %255 = arith.divf %253, %254 : vector<2x128xf32>
    %256 = vector.extract_strided_slice %246 {offsets = [0, 128], sizes = [2, 128], strides = [1, 1]} : vector<2x384xf32> to vector<2x128xf32>
    %257 = vector.extract_strided_slice %247 {offsets = [0, 128], sizes = [2, 128], strides = [1, 1]} : vector<2x256xf32> to vector<2x128xf32>
    %258 = arith.addf %256, %257 : vector<2x128xf32>
    %259 = arith.negf %258 : vector<2x128xf32>
    %260 = math.exp %259 : vector<2x128xf32>
    %cst_73 = arith.constant 1.000000e+00 : f32
    %261 = vector.broadcast %cst_73 : f32 to vector<2x128xf32>
    %262 = arith.addf %261, %260 : vector<2x128xf32>
    %263 = arith.divf %261, %262 : vector<2x128xf32>
    %264 = vector.extract_strided_slice %246 {offsets = [0, 256], sizes = [2, 128], strides = [1, 1]} : vector<2x384xf32> to vector<2x128xf32>
    %265 = arith.mulf %255, %239 : vector<2x128xf32>
    %cst_74 = arith.constant dense<0.000000e+00> : vector<2x128xf32>
    %266 = tpu.matmul %265, %4, %cst_74 {dimension_numbers = #tpu.dot_dimension_numbers<[1], [0], [0], [1], [0, 0, 1, 1], [], []>} : vector<2x128xf32>, vector<128x128xf32>, vector<2x128xf32> -> vector<2x128xf32>
    %267 = arith.addf %264, %266 : vector<2x128xf32>
    %268 = math.tanh %267 : vector<2x128xf32>
    %269 = arith.mulf %263, %239 : vector<2x128xf32>
    %cst_75 = arith.constant 1.000000e+00 : f32
    %270 = vector.broadcast %cst_75 : f32 to vector<2x128xf32>
    %271 = arith.subf %270, %263 : vector<2x128xf32>
    %272 = arith.mulf %271, %268 : vector<2x128xf32>
    %273 = arith.addf %269, %272 : vector<2x128xf32>
    %274 = arith.index_cast %c7_i32 : i32 to index
    %c0_76 = arith.constant 0 : index
    %c0_77 = arith.constant 0 : index
    %275 = vector.load %arg5[%274, %c0_76, %c0_77] : memref<8x2x128xf32, #tpu.memory_space<vmem>>, vector<1x2x128xf32>
    %276 = vector.shape_cast %275 : vector<1x2x128xf32> to vector<2x128xf32>
    %277 = vector.shape_cast %273 : vector<2x128xf32> to vector<1x2x128xf32>
    tpu.vector_store %arg5[%274, %c0_76, %c0_77], %277 {strides = array<i32>} : memref<8x2x128xf32, #tpu.memory_space<vmem>>, vector<1x2x128xf32>,
    %c8_i32 = arith.constant 8 : i32
    %c0_78 = arith.constant 0 : index
    %c0_79 = arith.constant 0 : index
    %278 = vector.load %arg7[%c0_78, %c0_79] : memref<2x128xf32, #tpu.memory_space<vmem>>, vector<2x128xf32>
    tpu.vector_store %arg7[%c0_78, %c0_79], %273 {strides = array<i32>} : memref<2x128xf32, #tpu.memory_space<vmem>>, vector<2x128xf32>,
    %c0_80 = arith.constant 0 : index
    %c0_81 = arith.constant 0 : index
    %279 = vector.load %arg6[%c0_80, %c0_81] : memref<2x128xf32, #tpu.memory_space<vmem>>, vector<2x128xf32>
    tpu.vector_store %arg6[%c0_80, %c0_81], %273 {strides = array<i32>} : memref<2x128xf32, #tpu.memory_space<vmem>>, vector<2x128xf32>,
    return
  }
  func.func @transform_0(%arg0: i32, %arg1: i32) -> (i32, i32, i32) {
    %c0_i32 = arith.constant 0 : i32
    %c0_i32_0 = arith.constant 0 : i32
    return %arg1, %arg0, %c0_i32 : i32, i32, i32
  }
  func.func @transform_1(%arg0: i32, %arg1: i32) -> (i32, i32) {
    %c0_i32 = arith.constant 0 : i32
    %c0_i32_0 = arith.constant 0 : i32
    %c0_i32_1 = arith.constant 0 : i32
    return %c0_i32, %c0_i32_0 : i32, i32
  }
  func.func @transform_2(%arg0: i32, %arg1: i32) -> (i32, i32) {
    %c0_i32 = arith.constant 0 : i32
    %c0_i32_0 = arith.constant 0 : i32
    %c0_i32_1 = arith.constant 0 : i32
    return %c0_i32, %c0_i32_0 : i32, i32
  }
  func.func @transform_3(%arg0: i32, %arg1: i32) -> (i32, i32, i32) {
    %c0_i32 = arith.constant 0 : i32
    %c0_i32_0 = arith.constant 0 : i32
    return %arg1, %arg0, %c0_i32 : i32, i32, i32
  }
  func.func @transform_4(%arg0: i32, %arg1: i32) -> (i32, i32) {
    %c0_i32 = arith.constant 0 : i32
    %c0_i32_0 = arith.constant 0 : i32
    return %arg0, %c0_i32 : i32, i32
  }
}

module attributes {stable_mosaic.version = 11 : i64} {
  func.func @_xproj_kernel(%arg0: i32, %arg1: memref<16x128xf32, #tpu.memory_space<vmem>>, %arg2: memref<128x384xf32, #tpu.memory_space<vmem>>, %arg3: memref<1x384xf32, #tpu.memory_space<vmem>>, %arg4: memref<16x384xf32, #tpu.memory_space<vmem>>) attributes {dimension_semantics = [#tpu.dimension_semantics<parallel>], iteration_bounds = array<i64: 1>, scalar_prefetch = 0 : i64, scratch_operands = 0 : i64, tpu.core_type = #tpu.core_type<tc>, window_params = [{transform_indices = @transform_0, window_bounds = array<i64: 16, 128>}, {pipeline_mode = #tpu.pipeline_mode<synchronous>, transform_indices = @transform_1, window_bounds = array<i64: 128, 384>}, {pipeline_mode = #tpu.pipeline_mode<synchronous>, transform_indices = @transform_2, window_bounds = array<i64: 1, 384>}, {transform_indices = @transform_3, window_bounds = array<i64: 16, 384>}]} {
    %c0 = arith.constant 0 : index
    %c0_0 = arith.constant 0 : index
    %0 = vector.load %arg1[%c0, %c0_0] : memref<16x128xf32, #tpu.memory_space<vmem>>, vector<16x128xf32>
    %c0_1 = arith.constant 0 : index
    %c0_2 = arith.constant 0 : index
    %1 = vector.load %arg2[%c0_1, %c0_2] : memref<128x384xf32, #tpu.memory_space<vmem>>, vector<128x384xf32>
    %cst = arith.constant dense<0.000000e+00> : vector<16x384xf32>
    %2 = tpu.matmul %0, %1, %cst {dimension_numbers = #tpu.dot_dimension_numbers<[1], [0], [0], [1], [0, 0, 1, 1], [], []>} : vector<16x128xf32>, vector<128x384xf32>, vector<16x384xf32> -> vector<16x384xf32>
    %c0_3 = arith.constant 0 : index
    %c0_4 = arith.constant 0 : index
    %3 = vector.load %arg3[%c0_3, %c0_4] : memref<1x384xf32, #tpu.memory_space<vmem>>, vector<1x384xf32>
    %4 = vector.broadcast %3 : vector<1x384xf32> to vector<16x384xf32>
    %5 = arith.addf %2, %4 : vector<16x384xf32>
    %c0_5 = arith.constant 0 : index
    %c0_6 = arith.constant 0 : index
    %6 = vector.load %arg4[%c0_5, %c0_6] : memref<16x384xf32, #tpu.memory_space<vmem>>, vector<16x384xf32>
    tpu.vector_store %arg4[%c0_5, %c0_6], %5 {strides = array<i32>} : memref<16x384xf32, #tpu.memory_space<vmem>>, vector<16x384xf32>,
    return
  }
  func.func @transform_0(%arg0: i32) -> (i32, i32) {
    %c0_i32 = arith.constant 0 : i32
    %c0_i32_0 = arith.constant 0 : i32
    return %arg0, %c0_i32 : i32, i32
  }
  func.func @transform_1(%arg0: i32) -> (i32, i32) {
    %c0_i32 = arith.constant 0 : i32
    %c0_i32_0 = arith.constant 0 : i32
    %c0_i32_1 = arith.constant 0 : i32
    return %c0_i32, %c0_i32_0 : i32, i32
  }
  func.func @transform_2(%arg0: i32) -> (i32, i32) {
    %c0_i32 = arith.constant 0 : i32
    %c0_i32_0 = arith.constant 0 : i32
    %c0_i32_1 = arith.constant 0 : i32
    return %c0_i32, %c0_i32_0 : i32, i32
  }
  func.func @transform_3(%arg0: i32) -> (i32, i32) {
    %c0_i32 = arith.constant 0 : i32
    %c0_i32_0 = arith.constant 0 : i32
    return %arg0, %c0_i32 : i32, i32
  }
}

module attributes {stable_mosaic.version = 11 : i64} {
  func.func @_gru_recurrent_kernel(%arg0: i32, %arg1: i32, %arg2: memref<8x2x384xf32, #tpu.memory_space<vmem>>, %arg3: memref<128x256xf32, #tpu.memory_space<vmem>>, %arg4: memref<128x128xf32, #tpu.memory_space<vmem>>, %arg5: memref<8x2x128xf32, #tpu.memory_space<vmem>>, %arg6: memref<2x128xf32, #tpu.memory_space<vmem>>, %arg7: memref<2x128xf32, #tpu.memory_space<vmem>>) attributes {dimension_semantics = [#tpu.dimension_semantics<parallel>, #tpu.dimension_semantics<arbitrary>], iteration_bounds = array<i64: 1, 1>, scalar_prefetch = 0 : i64, scratch_operands = 1 : i64, tpu.core_type = #tpu.core_type<tc>, window_params = [{transform_indices = @transform_0, window_bounds = array<i64: 8, 2, 384>}, {pipeline_mode = #tpu.pipeline_mode<synchronous>, transform_indices = @transform_1, window_bounds = array<i64: 128, 256>}, {pipeline_mode = #tpu.pipeline_mode<synchronous>, transform_indices = @transform_2, window_bounds = array<i64: 128, 128>}, {transform_indices = @transform_3, window_bounds = array<i64: 8, 2, 128>}, {transform_indices = @transform_4, window_bounds = array<i64: 2, 128>}]} {
    %c0_i32 = arith.constant 0 : i32
    %0 = arith.cmpi eq, %arg1, %c0_i32 : i32
    %1 = arith.extui %0 : i1 to i32
    %c0_i32_0 = arith.constant 0 : i32
    %2 = arith.cmpi ne, %1, %c0_i32_0 : i32
    scf.if %2 {
      %cst_82 = arith.constant 0.000000e+00 : f32
      %280 = vector.broadcast %cst_82 : f32 to vector<2x128xf32>
      %c0_83 = arith.constant 0 : index
      %c0_84 = arith.constant 0 : index
      %281 = vector.load %arg7[%c0_83, %c0_84] : memref<2x128xf32, #tpu.memory_space<vmem>>, vector<2x128xf32>
      tpu.vector_store %arg7[%c0_83, %c0_84], %280 {strides = array<i32>} : memref<2x128xf32, #tpu.memory_space<vmem>>, vector<2x128xf32>,
    } else {
    }
    %c0 = arith.constant 0 : index
    %c0_1 = arith.constant 0 : index
    %3 = vector.load %arg3[%c0, %c0_1] : memref<128x256xf32, #tpu.memory_space<vmem>>, vector<128x256xf32>
    %c0_2 = arith.constant 0 : index
    %c0_3 = arith.constant 0 : index
    %4 = vector.load %arg4[%c0_2, %c0_3] : memref<128x128xf32, #tpu.memory_space<vmem>>, vector<128x128xf32>
    %c0_4 = arith.constant 0 : index
    %c0_5 = arith.constant 0 : index
    %5 = vector.load %arg7[%c0_4, %c0_5] : memref<2x128xf32, #tpu.memory_space<vmem>>, vector<2x128xf32>
    %c0_i32_6 = arith.constant 0 : i32
    %6 = arith.index_cast %c0_i32_6 : i32 to index
    %c0_7 = arith.constant 0 : index
    %c0_8 = arith.constant 0 : index
    %7 = vector.load %arg2[%6, %c0_7, %c0_8] : memref<8x2x384xf32, #tpu.memory_space<vmem>>, vector<1x2x384xf32>
    %8 = vector.shape_cast %7 : vector<1x2x384xf32> to vector<2x384xf32>
    %cst = arith.constant dense<0.000000e+00> : vector<2x256xf32>
    %9 = tpu.matmul %5, %3, %cst {dimension_numbers = #tpu.dot_dimension_numbers<[1], [0], [0], [1], [0, 0, 1, 1], [], []>} : vector<2x128xf32>, vector<128x256xf32>, vector<2x256xf32> -> vector<2x256xf32>
    %10 = vector.extract_strided_slice %8 {offsets = [0, 0], sizes = [2, 128], strides = [1, 1]} : vector<2x384xf32> to vector<2x128xf32>
    %11 = vector.extract_strided_slice %9 {offsets = [0, 0], sizes = [2, 128], strides = [1, 1]} : vector<2x256xf32> to vector<2x128xf32>
    %12 = arith.addf %10, %11 : vector<2x128xf32>
    %13 = arith.negf %12 : vector<2x128xf32>
    %14 = math.exp %13 : vector<2x128xf32>
    %cst_9 = arith.constant 1.000000e+00 : f32
    %15 = vector.broadcast %cst_9 : f32 to vector<2x128xf32>
    %16 = arith.addf %15, %14 : vector<2x128xf32>
    %17 = arith.divf %15, %16 : vector<2x128xf32>
    %18 = vector.extract_strided_slice %8 {offsets = [0, 128], sizes = [2, 128], strides = [1, 1]} : vector<2x384xf32> to vector<2x128xf32>
    %19 = vector.extract_strided_slice %9 {offsets = [0, 128], sizes = [2, 128], strides = [1, 1]} : vector<2x256xf32> to vector<2x128xf32>
    %20 = arith.addf %18, %19 : vector<2x128xf32>
    %21 = arith.negf %20 : vector<2x128xf32>
    %22 = math.exp %21 : vector<2x128xf32>
    %cst_10 = arith.constant 1.000000e+00 : f32
    %23 = vector.broadcast %cst_10 : f32 to vector<2x128xf32>
    %24 = arith.addf %23, %22 : vector<2x128xf32>
    %25 = arith.divf %23, %24 : vector<2x128xf32>
    %26 = vector.extract_strided_slice %8 {offsets = [0, 256], sizes = [2, 128], strides = [1, 1]} : vector<2x384xf32> to vector<2x128xf32>
    %27 = arith.mulf %17, %5 : vector<2x128xf32>
    %cst_11 = arith.constant dense<0.000000e+00> : vector<2x128xf32>
    %28 = tpu.matmul %27, %4, %cst_11 {dimension_numbers = #tpu.dot_dimension_numbers<[1], [0], [0], [1], [0, 0, 1, 1], [], []>} : vector<2x128xf32>, vector<128x128xf32>, vector<2x128xf32> -> vector<2x128xf32>
    %29 = arith.addf %26, %28 : vector<2x128xf32>
    %30 = math.tanh %29 : vector<2x128xf32>
    %31 = arith.mulf %25, %5 : vector<2x128xf32>
    %cst_12 = arith.constant 1.000000e+00 : f32
    %32 = vector.broadcast %cst_12 : f32 to vector<2x128xf32>
    %33 = arith.subf %32, %25 : vector<2x128xf32>
    %34 = arith.mulf %33, %30 : vector<2x128xf32>
    %35 = arith.addf %31, %34 : vector<2x128xf32>
    %36 = arith.index_cast %c0_i32_6 : i32 to index
    %c0_13 = arith.constant 0 : index
    %c0_14 = arith.constant 0 : index
    %37 = vector.load %arg5[%36, %c0_13, %c0_14] : memref<8x2x128xf32, #tpu.memory_space<vmem>>, vector<1x2x128xf32>
    %38 = vector.shape_cast %37 : vector<1x2x128xf32> to vector<2x128xf32>
    %39 = vector.shape_cast %35 : vector<2x128xf32> to vector<1x2x128xf32>
    tpu.vector_store %arg5[%36, %c0_13, %c0_14], %39 {strides = array<i32>} : memref<8x2x128xf32, #tpu.memory_space<vmem>>, vector<1x2x128xf32>,
    %c1_i32 = arith.constant 1 : i32
    %40 = arith.index_cast %c1_i32 : i32 to index
    %c0_15 = arith.constant 0 : index
    %c0_16 = arith.constant 0 : index
    %41 = vector.load %arg2[%40, %c0_15, %c0_16] : memref<8x2x384xf32, #tpu.memory_space<vmem>>, vector<1x2x384xf32>
    %42 = vector.shape_cast %41 : vector<1x2x384xf32> to vector<2x384xf32>
    %cst_17 = arith.constant dense<0.000000e+00> : vector<2x256xf32>
    %43 = tpu.matmul %35, %3, %cst_17 {dimension_numbers = #tpu.dot_dimension_numbers<[1], [0], [0], [1], [0, 0, 1, 1], [], []>} : vector<2x128xf32>, vector<128x256xf32>, vector<2x256xf32> -> vector<2x256xf32>
    %44 = vector.extract_strided_slice %42 {offsets = [0, 0], sizes = [2, 128], strides = [1, 1]} : vector<2x384xf32> to vector<2x128xf32>
    %45 = vector.extract_strided_slice %43 {offsets = [0, 0], sizes = [2, 128], strides = [1, 1]} : vector<2x256xf32> to vector<2x128xf32>
    %46 = arith.addf %44, %45 : vector<2x128xf32>
    %47 = arith.negf %46 : vector<2x128xf32>
    %48 = math.exp %47 : vector<2x128xf32>
    %cst_18 = arith.constant 1.000000e+00 : f32
    %49 = vector.broadcast %cst_18 : f32 to vector<2x128xf32>
    %50 = arith.addf %49, %48 : vector<2x128xf32>
    %51 = arith.divf %49, %50 : vector<2x128xf32>
    %52 = vector.extract_strided_slice %42 {offsets = [0, 128], sizes = [2, 128], strides = [1, 1]} : vector<2x384xf32> to vector<2x128xf32>
    %53 = vector.extract_strided_slice %43 {offsets = [0, 128], sizes = [2, 128], strides = [1, 1]} : vector<2x256xf32> to vector<2x128xf32>
    %54 = arith.addf %52, %53 : vector<2x128xf32>
    %55 = arith.negf %54 : vector<2x128xf32>
    %56 = math.exp %55 : vector<2x128xf32>
    %cst_19 = arith.constant 1.000000e+00 : f32
    %57 = vector.broadcast %cst_19 : f32 to vector<2x128xf32>
    %58 = arith.addf %57, %56 : vector<2x128xf32>
    %59 = arith.divf %57, %58 : vector<2x128xf32>
    %60 = vector.extract_strided_slice %42 {offsets = [0, 256], sizes = [2, 128], strides = [1, 1]} : vector<2x384xf32> to vector<2x128xf32>
    %61 = arith.mulf %51, %35 : vector<2x128xf32>
    %cst_20 = arith.constant dense<0.000000e+00> : vector<2x128xf32>
    %62 = tpu.matmul %61, %4, %cst_20 {dimension_numbers = #tpu.dot_dimension_numbers<[1], [0], [0], [1], [0, 0, 1, 1], [], []>} : vector<2x128xf32>, vector<128x128xf32>, vector<2x128xf32> -> vector<2x128xf32>
    %63 = arith.addf %60, %62 : vector<2x128xf32>
    %64 = math.tanh %63 : vector<2x128xf32>
    %65 = arith.mulf %59, %35 : vector<2x128xf32>
    %cst_21 = arith.constant 1.000000e+00 : f32
    %66 = vector.broadcast %cst_21 : f32 to vector<2x128xf32>
    %67 = arith.subf %66, %59 : vector<2x128xf32>
    %68 = arith.mulf %67, %64 : vector<2x128xf32>
    %69 = arith.addf %65, %68 : vector<2x128xf32>
    %70 = arith.index_cast %c1_i32 : i32 to index
    %c0_22 = arith.constant 0 : index
    %c0_23 = arith.constant 0 : index
    %71 = vector.load %arg5[%70, %c0_22, %c0_23] : memref<8x2x128xf32, #tpu.memory_space<vmem>>, vector<1x2x128xf32>
    %72 = vector.shape_cast %71 : vector<1x2x128xf32> to vector<2x128xf32>
    %73 = vector.shape_cast %69 : vector<2x128xf32> to vector<1x2x128xf32>
    tpu.vector_store %arg5[%70, %c0_22, %c0_23], %73 {strides = array<i32>} : memref<8x2x128xf32, #tpu.memory_space<vmem>>, vector<1x2x128xf32>,
    %c2_i32 = arith.constant 2 : i32
    %74 = arith.index_cast %c2_i32 : i32 to index
    %c0_24 = arith.constant 0 : index
    %c0_25 = arith.constant 0 : index
    %75 = vector.load %arg2[%74, %c0_24, %c0_25] : memref<8x2x384xf32, #tpu.memory_space<vmem>>, vector<1x2x384xf32>
    %76 = vector.shape_cast %75 : vector<1x2x384xf32> to vector<2x384xf32>
    %cst_26 = arith.constant dense<0.000000e+00> : vector<2x256xf32>
    %77 = tpu.matmul %69, %3, %cst_26 {dimension_numbers = #tpu.dot_dimension_numbers<[1], [0], [0], [1], [0, 0, 1, 1], [], []>} : vector<2x128xf32>, vector<128x256xf32>, vector<2x256xf32> -> vector<2x256xf32>
    %78 = vector.extract_strided_slice %76 {offsets = [0, 0], sizes = [2, 128], strides = [1, 1]} : vector<2x384xf32> to vector<2x128xf32>
    %79 = vector.extract_strided_slice %77 {offsets = [0, 0], sizes = [2, 128], strides = [1, 1]} : vector<2x256xf32> to vector<2x128xf32>
    %80 = arith.addf %78, %79 : vector<2x128xf32>
    %81 = arith.negf %80 : vector<2x128xf32>
    %82 = math.exp %81 : vector<2x128xf32>
    %cst_27 = arith.constant 1.000000e+00 : f32
    %83 = vector.broadcast %cst_27 : f32 to vector<2x128xf32>
    %84 = arith.addf %83, %82 : vector<2x128xf32>
    %85 = arith.divf %83, %84 : vector<2x128xf32>
    %86 = vector.extract_strided_slice %76 {offsets = [0, 128], sizes = [2, 128], strides = [1, 1]} : vector<2x384xf32> to vector<2x128xf32>
    %87 = vector.extract_strided_slice %77 {offsets = [0, 128], sizes = [2, 128], strides = [1, 1]} : vector<2x256xf32> to vector<2x128xf32>
    %88 = arith.addf %86, %87 : vector<2x128xf32>
    %89 = arith.negf %88 : vector<2x128xf32>
    %90 = math.exp %89 : vector<2x128xf32>
    %cst_28 = arith.constant 1.000000e+00 : f32
    %91 = vector.broadcast %cst_28 : f32 to vector<2x128xf32>
    %92 = arith.addf %91, %90 : vector<2x128xf32>
    %93 = arith.divf %91, %92 : vector<2x128xf32>
    %94 = vector.extract_strided_slice %76 {offsets = [0, 256], sizes = [2, 128], strides = [1, 1]} : vector<2x384xf32> to vector<2x128xf32>
    %95 = arith.mulf %85, %69 : vector<2x128xf32>
    %cst_29 = arith.constant dense<0.000000e+00> : vector<2x128xf32>
    %96 = tpu.matmul %95, %4, %cst_29 {dimension_numbers = #tpu.dot_dimension_numbers<[1], [0], [0], [1], [0, 0, 1, 1], [], []>} : vector<2x128xf32>, vector<128x128xf32>, vector<2x128xf32> -> vector<2x128xf32>
    %97 = arith.addf %94, %96 : vector<2x128xf32>
    %98 = math.tanh %97 : vector<2x128xf32>
    %99 = arith.mulf %93, %69 : vector<2x128xf32>
    %cst_30 = arith.constant 1.000000e+00 : f32
    %100 = vector.broadcast %cst_30 : f32 to vector<2x128xf32>
    %101 = arith.subf %100, %93 : vector<2x128xf32>
    %102 = arith.mulf %101, %98 : vector<2x128xf32>
    %103 = arith.addf %99, %102 : vector<2x128xf32>
    %104 = arith.index_cast %c2_i32 : i32 to index
    %c0_31 = arith.constant 0 : index
    %c0_32 = arith.constant 0 : index
    %105 = vector.load %arg5[%104, %c0_31, %c0_32] : memref<8x2x128xf32, #tpu.memory_space<vmem>>, vector<1x2x128xf32>
    %106 = vector.shape_cast %105 : vector<1x2x128xf32> to vector<2x128xf32>
    %107 = vector.shape_cast %103 : vector<2x128xf32> to vector<1x2x128xf32>
    tpu.vector_store %arg5[%104, %c0_31, %c0_32], %107 {strides = array<i32>} : memref<8x2x128xf32, #tpu.memory_space<vmem>>, vector<1x2x128xf32>,
    %c3_i32 = arith.constant 3 : i32
    %108 = arith.index_cast %c3_i32 : i32 to index
    %c0_33 = arith.constant 0 : index
    %c0_34 = arith.constant 0 : index
    %109 = vector.load %arg2[%108, %c0_33, %c0_34] : memref<8x2x384xf32, #tpu.memory_space<vmem>>, vector<1x2x384xf32>
    %110 = vector.shape_cast %109 : vector<1x2x384xf32> to vector<2x384xf32>
    %cst_35 = arith.constant dense<0.000000e+00> : vector<2x256xf32>
    %111 = tpu.matmul %103, %3, %cst_35 {dimension_numbers = #tpu.dot_dimension_numbers<[1], [0], [0], [1], [0, 0, 1, 1], [], []>} : vector<2x128xf32>, vector<128x256xf32>, vector<2x256xf32> -> vector<2x256xf32>
    %112 = vector.extract_strided_slice %110 {offsets = [0, 0], sizes = [2, 128], strides = [1, 1]} : vector<2x384xf32> to vector<2x128xf32>
    %113 = vector.extract_strided_slice %111 {offsets = [0, 0], sizes = [2, 128], strides = [1, 1]} : vector<2x256xf32> to vector<2x128xf32>
    %114 = arith.addf %112, %113 : vector<2x128xf32>
    %115 = arith.negf %114 : vector<2x128xf32>
    %116 = math.exp %115 : vector<2x128xf32>
    %cst_36 = arith.constant 1.000000e+00 : f32
    %117 = vector.broadcast %cst_36 : f32 to vector<2x128xf32>
    %118 = arith.addf %117, %116 : vector<2x128xf32>
    %119 = arith.divf %117, %118 : vector<2x128xf32>
    %120 = vector.extract_strided_slice %110 {offsets = [0, 128], sizes = [2, 128], strides = [1, 1]} : vector<2x384xf32> to vector<2x128xf32>
    %121 = vector.extract_strided_slice %111 {offsets = [0, 128], sizes = [2, 128], strides = [1, 1]} : vector<2x256xf32> to vector<2x128xf32>
    %122 = arith.addf %120, %121 : vector<2x128xf32>
    %123 = arith.negf %122 : vector<2x128xf32>
    %124 = math.exp %123 : vector<2x128xf32>
    %cst_37 = arith.constant 1.000000e+00 : f32
    %125 = vector.broadcast %cst_37 : f32 to vector<2x128xf32>
    %126 = arith.addf %125, %124 : vector<2x128xf32>
    %127 = arith.divf %125, %126 : vector<2x128xf32>
    %128 = vector.extract_strided_slice %110 {offsets = [0, 256], sizes = [2, 128], strides = [1, 1]} : vector<2x384xf32> to vector<2x128xf32>
    %129 = arith.mulf %119, %103 : vector<2x128xf32>
    %cst_38 = arith.constant dense<0.000000e+00> : vector<2x128xf32>
    %130 = tpu.matmul %129, %4, %cst_38 {dimension_numbers = #tpu.dot_dimension_numbers<[1], [0], [0], [1], [0, 0, 1, 1], [], []>} : vector<2x128xf32>, vector<128x128xf32>, vector<2x128xf32> -> vector<2x128xf32>
    %131 = arith.addf %128, %130 : vector<2x128xf32>
    %132 = math.tanh %131 : vector<2x128xf32>
    %133 = arith.mulf %127, %103 : vector<2x128xf32>
    %cst_39 = arith.constant 1.000000e+00 : f32
    %134 = vector.broadcast %cst_39 : f32 to vector<2x128xf32>
    %135 = arith.subf %134, %127 : vector<2x128xf32>
    %136 = arith.mulf %135, %132 : vector<2x128xf32>
    %137 = arith.addf %133, %136 : vector<2x128xf32>
    %138 = arith.index_cast %c3_i32 : i32 to index
    %c0_40 = arith.constant 0 : index
    %c0_41 = arith.constant 0 : index
    %139 = vector.load %arg5[%138, %c0_40, %c0_41] : memref<8x2x128xf32, #tpu.memory_space<vmem>>, vector<1x2x128xf32>
    %140 = vector.shape_cast %139 : vector<1x2x128xf32> to vector<2x128xf32>
    %141 = vector.shape_cast %137 : vector<2x128xf32> to vector<1x2x128xf32>
    tpu.vector_store %arg5[%138, %c0_40, %c0_41], %141 {strides = array<i32>} : memref<8x2x128xf32, #tpu.memory_space<vmem>>, vector<1x2x128xf32>,
    %c4_i32 = arith.constant 4 : i32
    %142 = arith.index_cast %c4_i32 : i32 to index
    %c0_42 = arith.constant 0 : index
    %c0_43 = arith.constant 0 : index
    %143 = vector.load %arg2[%142, %c0_42, %c0_43] : memref<8x2x384xf32, #tpu.memory_space<vmem>>, vector<1x2x384xf32>
    %144 = vector.shape_cast %143 : vector<1x2x384xf32> to vector<2x384xf32>
    %cst_44 = arith.constant dense<0.000000e+00> : vector<2x256xf32>
    %145 = tpu.matmul %137, %3, %cst_44 {dimension_numbers = #tpu.dot_dimension_numbers<[1], [0], [0], [1], [0, 0, 1, 1], [], []>} : vector<2x128xf32>, vector<128x256xf32>, vector<2x256xf32> -> vector<2x256xf32>
    %146 = vector.extract_strided_slice %144 {offsets = [0, 0], sizes = [2, 128], strides = [1, 1]} : vector<2x384xf32> to vector<2x128xf32>
    %147 = vector.extract_strided_slice %145 {offsets = [0, 0], sizes = [2, 128], strides = [1, 1]} : vector<2x256xf32> to vector<2x128xf32>
    %148 = arith.addf %146, %147 : vector<2x128xf32>
    %149 = arith.negf %148 : vector<2x128xf32>
    %150 = math.exp %149 : vector<2x128xf32>
    %cst_45 = arith.constant 1.000000e+00 : f32
    %151 = vector.broadcast %cst_45 : f32 to vector<2x128xf32>
    %152 = arith.addf %151, %150 : vector<2x128xf32>
    %153 = arith.divf %151, %152 : vector<2x128xf32>
    %154 = vector.extract_strided_slice %144 {offsets = [0, 128], sizes = [2, 128], strides = [1, 1]} : vector<2x384xf32> to vector<2x128xf32>
    %155 = vector.extract_strided_slice %145 {offsets = [0, 128], sizes = [2, 128], strides = [1, 1]} : vector<2x256xf32> to vector<2x128xf32>
    %156 = arith.addf %154, %155 : vector<2x128xf32>
    %157 = arith.negf %156 : vector<2x128xf32>
    %158 = math.exp %157 : vector<2x128xf32>
    %cst_46 = arith.constant 1.000000e+00 : f32
    %159 = vector.broadcast %cst_46 : f32 to vector<2x128xf32>
    %160 = arith.addf %159, %158 : vector<2x128xf32>
    %161 = arith.divf %159, %160 : vector<2x128xf32>
    %162 = vector.extract_strided_slice %144 {offsets = [0, 256], sizes = [2, 128], strides = [1, 1]} : vector<2x384xf32> to vector<2x128xf32>
    %163 = arith.mulf %153, %137 : vector<2x128xf32>
    %cst_47 = arith.constant dense<0.000000e+00> : vector<2x128xf32>
    %164 = tpu.matmul %163, %4, %cst_47 {dimension_numbers = #tpu.dot_dimension_numbers<[1], [0], [0], [1], [0, 0, 1, 1], [], []>} : vector<2x128xf32>, vector<128x128xf32>, vector<2x128xf32> -> vector<2x128xf32>
    %165 = arith.addf %162, %164 : vector<2x128xf32>
    %166 = math.tanh %165 : vector<2x128xf32>
    %167 = arith.mulf %161, %137 : vector<2x128xf32>
    %cst_48 = arith.constant 1.000000e+00 : f32
    %168 = vector.broadcast %cst_48 : f32 to vector<2x128xf32>
    %169 = arith.subf %168, %161 : vector<2x128xf32>
    %170 = arith.mulf %169, %166 : vector<2x128xf32>
    %171 = arith.addf %167, %170 : vector<2x128xf32>
    %172 = arith.index_cast %c4_i32 : i32 to index
    %c0_49 = arith.constant 0 : index
    %c0_50 = arith.constant 0 : index
    %173 = vector.load %arg5[%172, %c0_49, %c0_50] : memref<8x2x128xf32, #tpu.memory_space<vmem>>, vector<1x2x128xf32>
    %174 = vector.shape_cast %173 : vector<1x2x128xf32> to vector<2x128xf32>
    %175 = vector.shape_cast %171 : vector<2x128xf32> to vector<1x2x128xf32>
    tpu.vector_store %arg5[%172, %c0_49, %c0_50], %175 {strides = array<i32>} : memref<8x2x128xf32, #tpu.memory_space<vmem>>, vector<1x2x128xf32>,
    %c5_i32 = arith.constant 5 : i32
    %176 = arith.index_cast %c5_i32 : i32 to index
    %c0_51 = arith.constant 0 : index
    %c0_52 = arith.constant 0 : index
    %177 = vector.load %arg2[%176, %c0_51, %c0_52] : memref<8x2x384xf32, #tpu.memory_space<vmem>>, vector<1x2x384xf32>
    %178 = vector.shape_cast %177 : vector<1x2x384xf32> to vector<2x384xf32>
    %cst_53 = arith.constant dense<0.000000e+00> : vector<2x256xf32>
    %179 = tpu.matmul %171, %3, %cst_53 {dimension_numbers = #tpu.dot_dimension_numbers<[1], [0], [0], [1], [0, 0, 1, 1], [], []>} : vector<2x128xf32>, vector<128x256xf32>, vector<2x256xf32> -> vector<2x256xf32>
    %180 = vector.extract_strided_slice %178 {offsets = [0, 0], sizes = [2, 128], strides = [1, 1]} : vector<2x384xf32> to vector<2x128xf32>
    %181 = vector.extract_strided_slice %179 {offsets = [0, 0], sizes = [2, 128], strides = [1, 1]} : vector<2x256xf32> to vector<2x128xf32>
    %182 = arith.addf %180, %181 : vector<2x128xf32>
    %183 = arith.negf %182 : vector<2x128xf32>
    %184 = math.exp %183 : vector<2x128xf32>
    %cst_54 = arith.constant 1.000000e+00 : f32
    %185 = vector.broadcast %cst_54 : f32 to vector<2x128xf32>
    %186 = arith.addf %185, %184 : vector<2x128xf32>
    %187 = arith.divf %185, %186 : vector<2x128xf32>
    %188 = vector.extract_strided_slice %178 {offsets = [0, 128], sizes = [2, 128], strides = [1, 1]} : vector<2x384xf32> to vector<2x128xf32>
    %189 = vector.extract_strided_slice %179 {offsets = [0, 128], sizes = [2, 128], strides = [1, 1]} : vector<2x256xf32> to vector<2x128xf32>
    %190 = arith.addf %188, %189 : vector<2x128xf32>
    %191 = arith.negf %190 : vector<2x128xf32>
    %192 = math.exp %191 : vector<2x128xf32>
    %cst_55 = arith.constant 1.000000e+00 : f32
    %193 = vector.broadcast %cst_55 : f32 to vector<2x128xf32>
    %194 = arith.addf %193, %192 : vector<2x128xf32>
    %195 = arith.divf %193, %194 : vector<2x128xf32>
    %196 = vector.extract_strided_slice %178 {offsets = [0, 256], sizes = [2, 128], strides = [1, 1]} : vector<2x384xf32> to vector<2x128xf32>
    %197 = arith.mulf %187, %171 : vector<2x128xf32>
    %cst_56 = arith.constant dense<0.000000e+00> : vector<2x128xf32>
    %198 = tpu.matmul %197, %4, %cst_56 {dimension_numbers = #tpu.dot_dimension_numbers<[1], [0], [0], [1], [0, 0, 1, 1], [], []>} : vector<2x128xf32>, vector<128x128xf32>, vector<2x128xf32> -> vector<2x128xf32>
    %199 = arith.addf %196, %198 : vector<2x128xf32>
    %200 = math.tanh %199 : vector<2x128xf32>
    %201 = arith.mulf %195, %171 : vector<2x128xf32>
    %cst_57 = arith.constant 1.000000e+00 : f32
    %202 = vector.broadcast %cst_57 : f32 to vector<2x128xf32>
    %203 = arith.subf %202, %195 : vector<2x128xf32>
    %204 = arith.mulf %203, %200 : vector<2x128xf32>
    %205 = arith.addf %201, %204 : vector<2x128xf32>
    %206 = arith.index_cast %c5_i32 : i32 to index
    %c0_58 = arith.constant 0 : index
    %c0_59 = arith.constant 0 : index
    %207 = vector.load %arg5[%206, %c0_58, %c0_59] : memref<8x2x128xf32, #tpu.memory_space<vmem>>, vector<1x2x128xf32>
    %208 = vector.shape_cast %207 : vector<1x2x128xf32> to vector<2x128xf32>
    %209 = vector.shape_cast %205 : vector<2x128xf32> to vector<1x2x128xf32>
    tpu.vector_store %arg5[%206, %c0_58, %c0_59], %209 {strides = array<i32>} : memref<8x2x128xf32, #tpu.memory_space<vmem>>, vector<1x2x128xf32>,
    %c6_i32 = arith.constant 6 : i32
    %210 = arith.index_cast %c6_i32 : i32 to index
    %c0_60 = arith.constant 0 : index
    %c0_61 = arith.constant 0 : index
    %211 = vector.load %arg2[%210, %c0_60, %c0_61] : memref<8x2x384xf32, #tpu.memory_space<vmem>>, vector<1x2x384xf32>
    %212 = vector.shape_cast %211 : vector<1x2x384xf32> to vector<2x384xf32>
    %cst_62 = arith.constant dense<0.000000e+00> : vector<2x256xf32>
    %213 = tpu.matmul %205, %3, %cst_62 {dimension_numbers = #tpu.dot_dimension_numbers<[1], [0], [0], [1], [0, 0, 1, 1], [], []>} : vector<2x128xf32>, vector<128x256xf32>, vector<2x256xf32> -> vector<2x256xf32>
    %214 = vector.extract_strided_slice %212 {offsets = [0, 0], sizes = [2, 128], strides = [1, 1]} : vector<2x384xf32> to vector<2x128xf32>
    %215 = vector.extract_strided_slice %213 {offsets = [0, 0], sizes = [2, 128], strides = [1, 1]} : vector<2x256xf32> to vector<2x128xf32>
    %216 = arith.addf %214, %215 : vector<2x128xf32>
    %217 = arith.negf %216 : vector<2x128xf32>
    %218 = math.exp %217 : vector<2x128xf32>
    %cst_63 = arith.constant 1.000000e+00 : f32
    %219 = vector.broadcast %cst_63 : f32 to vector<2x128xf32>
    %220 = arith.addf %219, %218 : vector<2x128xf32>
    %221 = arith.divf %219, %220 : vector<2x128xf32>
    %222 = vector.extract_strided_slice %212 {offsets = [0, 128], sizes = [2, 128], strides = [1, 1]} : vector<2x384xf32> to vector<2x128xf32>
    %223 = vector.extract_strided_slice %213 {offsets = [0, 128], sizes = [2, 128], strides = [1, 1]} : vector<2x256xf32> to vector<2x128xf32>
    %224 = arith.addf %222, %223 : vector<2x128xf32>
    %225 = arith.negf %224 : vector<2x128xf32>
    %226 = math.exp %225 : vector<2x128xf32>
    %cst_64 = arith.constant 1.000000e+00 : f32
    %227 = vector.broadcast %cst_64 : f32 to vector<2x128xf32>
    %228 = arith.addf %227, %226 : vector<2x128xf32>
    %229 = arith.divf %227, %228 : vector<2x128xf32>
    %230 = vector.extract_strided_slice %212 {offsets = [0, 256], sizes = [2, 128], strides = [1, 1]} : vector<2x384xf32> to vector<2x128xf32>
    %231 = arith.mulf %221, %205 : vector<2x128xf32>
    %cst_65 = arith.constant dense<0.000000e+00> : vector<2x128xf32>
    %232 = tpu.matmul %231, %4, %cst_65 {dimension_numbers = #tpu.dot_dimension_numbers<[1], [0], [0], [1], [0, 0, 1, 1], [], []>} : vector<2x128xf32>, vector<128x128xf32>, vector<2x128xf32> -> vector<2x128xf32>
    %233 = arith.addf %230, %232 : vector<2x128xf32>
    %234 = math.tanh %233 : vector<2x128xf32>
    %235 = arith.mulf %229, %205 : vector<2x128xf32>
    %cst_66 = arith.constant 1.000000e+00 : f32
    %236 = vector.broadcast %cst_66 : f32 to vector<2x128xf32>
    %237 = arith.subf %236, %229 : vector<2x128xf32>
    %238 = arith.mulf %237, %234 : vector<2x128xf32>
    %239 = arith.addf %235, %238 : vector<2x128xf32>
    %240 = arith.index_cast %c6_i32 : i32 to index
    %c0_67 = arith.constant 0 : index
    %c0_68 = arith.constant 0 : index
    %241 = vector.load %arg5[%240, %c0_67, %c0_68] : memref<8x2x128xf32, #tpu.memory_space<vmem>>, vector<1x2x128xf32>
    %242 = vector.shape_cast %241 : vector<1x2x128xf32> to vector<2x128xf32>
    %243 = vector.shape_cast %239 : vector<2x128xf32> to vector<1x2x128xf32>
    tpu.vector_store %arg5[%240, %c0_67, %c0_68], %243 {strides = array<i32>} : memref<8x2x128xf32, #tpu.memory_space<vmem>>, vector<1x2x128xf32>,
    %c7_i32 = arith.constant 7 : i32
    %244 = arith.index_cast %c7_i32 : i32 to index
    %c0_69 = arith.constant 0 : index
    %c0_70 = arith.constant 0 : index
    %245 = vector.load %arg2[%244, %c0_69, %c0_70] : memref<8x2x384xf32, #tpu.memory_space<vmem>>, vector<1x2x384xf32>
    %246 = vector.shape_cast %245 : vector<1x2x384xf32> to vector<2x384xf32>
    %cst_71 = arith.constant dense<0.000000e+00> : vector<2x256xf32>
    %247 = tpu.matmul %239, %3, %cst_71 {dimension_numbers = #tpu.dot_dimension_numbers<[1], [0], [0], [1], [0, 0, 1, 1], [], []>} : vector<2x128xf32>, vector<128x256xf32>, vector<2x256xf32> -> vector<2x256xf32>
    %248 = vector.extract_strided_slice %246 {offsets = [0, 0], sizes = [2, 128], strides = [1, 1]} : vector<2x384xf32> to vector<2x128xf32>
    %249 = vector.extract_strided_slice %247 {offsets = [0, 0], sizes = [2, 128], strides = [1, 1]} : vector<2x256xf32> to vector<2x128xf32>
    %250 = arith.addf %248, %249 : vector<2x128xf32>
    %251 = arith.negf %250 : vector<2x128xf32>
    %252 = math.exp %251 : vector<2x128xf32>
    %cst_72 = arith.constant 1.000000e+00 : f32
    %253 = vector.broadcast %cst_72 : f32 to vector<2x128xf32>
    %254 = arith.addf %253, %252 : vector<2x128xf32>
    %255 = arith.divf %253, %254 : vector<2x128xf32>
    %256 = vector.extract_strided_slice %246 {offsets = [0, 128], sizes = [2, 128], strides = [1, 1]} : vector<2x384xf32> to vector<2x128xf32>
    %257 = vector.extract_strided_slice %247 {offsets = [0, 128], sizes = [2, 128], strides = [1, 1]} : vector<2x256xf32> to vector<2x128xf32>
    %258 = arith.addf %256, %257 : vector<2x128xf32>
    %259 = arith.negf %258 : vector<2x128xf32>
    %260 = math.exp %259 : vector<2x128xf32>
    %cst_73 = arith.constant 1.000000e+00 : f32
    %261 = vector.broadcast %cst_73 : f32 to vector<2x128xf32>
    %262 = arith.addf %261, %260 : vector<2x128xf32>
    %263 = arith.divf %261, %262 : vector<2x128xf32>
    %264 = vector.extract_strided_slice %246 {offsets = [0, 256], sizes = [2, 128], strides = [1, 1]} : vector<2x384xf32> to vector<2x128xf32>
    %265 = arith.mulf %255, %239 : vector<2x128xf32>
    %cst_74 = arith.constant dense<0.000000e+00> : vector<2x128xf32>
    %266 = tpu.matmul %265, %4, %cst_74 {dimension_numbers = #tpu.dot_dimension_numbers<[1], [0], [0], [1], [0, 0, 1, 1], [], []>} : vector<2x128xf32>, vector<128x128xf32>, vector<2x128xf32> -> vector<2x128xf32>
    %267 = arith.addf %264, %266 : vector<2x128xf32>
    %268 = math.tanh %267 : vector<2x128xf32>
    %269 = arith.mulf %263, %239 : vector<2x128xf32>
    %cst_75 = arith.constant 1.000000e+00 : f32
    %270 = vector.broadcast %cst_75 : f32 to vector<2x128xf32>
    %271 = arith.subf %270, %263 : vector<2x128xf32>
    %272 = arith.mulf %271, %268 : vector<2x128xf32>
    %273 = arith.addf %269, %272 : vector<2x128xf32>
    %274 = arith.index_cast %c7_i32 : i32 to index
    %c0_76 = arith.constant 0 : index
    %c0_77 = arith.constant 0 : index
    %275 = vector.load %arg5[%274, %c0_76, %c0_77] : memref<8x2x128xf32, #tpu.memory_space<vmem>>, vector<1x2x128xf32>
    %276 = vector.shape_cast %275 : vector<1x2x128xf32> to vector<2x128xf32>
    %277 = vector.shape_cast %273 : vector<2x128xf32> to vector<1x2x128xf32>
    tpu.vector_store %arg5[%274, %c0_76, %c0_77], %277 {strides = array<i32>} : memref<8x2x128xf32, #tpu.memory_space<vmem>>, vector<1x2x128xf32>,
    %c8_i32 = arith.constant 8 : i32
    %c0_78 = arith.constant 0 : index
    %c0_79 = arith.constant 0 : index
    %278 = vector.load %arg7[%c0_78, %c0_79] : memref<2x128xf32, #tpu.memory_space<vmem>>, vector<2x128xf32>
    tpu.vector_store %arg7[%c0_78, %c0_79], %273 {strides = array<i32>} : memref<2x128xf32, #tpu.memory_space<vmem>>, vector<2x128xf32>,
    %c0_80 = arith.constant 0 : index
    %c0_81 = arith.constant 0 : index
    %279 = vector.load %arg6[%c0_80, %c0_81] : memref<2x128xf32, #tpu.memory_space<vmem>>, vector<2x128xf32>
    tpu.vector_store %arg6[%c0_80, %c0_81], %273 {strides = array<i32>} : memref<2x128xf32, #tpu.memory_space<vmem>>, vector<2x128xf32>,
    return
  }
  func.func @transform_0(%arg0: i32, %arg1: i32) -> (i32, i32, i32) {
    %c0_i32 = arith.constant 0 : i32
    %c0_i32_0 = arith.constant 0 : i32
    return %arg1, %arg0, %c0_i32 : i32, i32, i32
  }
  func.func @transform_1(%arg0: i32, %arg1: i32) -> (i32, i32) {
    %c0_i32 = arith.constant 0 : i32
    %c0_i32_0 = arith.constant 0 : i32
    %c0_i32_1 = arith.constant 0 : i32
    return %c0_i32, %c0_i32_0 : i32, i32
  }
  func.func @transform_2(%arg0: i32, %arg1: i32) -> (i32, i32) {
    %c0_i32 = arith.constant 0 : i32
    %c0_i32_0 = arith.constant 0 : i32
    %c0_i32_1 = arith.constant 0 : i32
    return %c0_i32, %c0_i32_0 : i32, i32
  }
  func.func @transform_3(%arg0: i32, %arg1: i32) -> (i32, i32, i32) {
    %c0_i32 = arith.constant 0 : i32
    %c0_i32_0 = arith.constant 0 : i32
    return %arg1, %arg0, %c0_i32 : i32, i32, i32
  }
  func.func @transform_4(%arg0: i32, %arg1: i32) -> (i32, i32) {
    %c0_i32 = arith.constant 0 : i32
    %c0_i32_0 = arith.constant 0 : i32
    return %arg0, %c0_i32 : i32, i32
  }
}

</mosaic_0001>

<bundles_post_ra>
// kernel: _lambda_.4
= control target key start
LH: loop header
LB: loop body
LE: loop exit
PB: predicated region body
PF: predicated region fallthrough
CT: control target
= control target key end

     0   :  { %8 = vsyncpa [#allocation3], 0  ;;  %s273_s0 = inlined_call_operand.vmem [shape: f32[16,4], index: 0, kind: input, shape index: {}]   ;;  %s274_s1 = inlined_call_operand.hbm [shape: f32[4,384], index: 1, kind: input, shape index: {}]   ;;  %s275_s2 = inlined_call_operand.hbm [shape: f32[1,384], index: 2, kind: input, shape index: {}]   ;;  %s276_s3 = inlined_call_operand.vmem [shape: f32[16,384], index: 3, kind: output, shape index: {}]  }
   0x1   :  { %s17_s14 = sshll.u32 %s274_s1, 4  ;;  %s18_s14 = int_to_ptr.hbm [resolvable:$true] %s17_s14 }
   0x2   :  { %9 = vsyncpa [#allocation5], 0  ;;  %s221_s15 = smov [#allocation2]   ;;  %s28_s19 = sshll.u32 %s275_s2, 4  ;;  %s29_s19 = int_to_ptr.hbm [resolvable:$true] %s28_s19 }
   0x3   :  { %s19_s16 = sshll.u32 %s221_s15, 4  ;;  %s222_s20 = smov [#allocation4]   ;;  %s20_s16 = int_to_ptr.vmem [resolvable:$true] %s19_s16 }
   0x4   :  { %22 = dma.hbm_to_vmem [thread:$0]  %s18_s14, 192, %s20_s16, [#allocation3]  }
   0x5   :  { %s30_s21 = sshll.u32 %s222_s20, 4  ;;  %s31_s21 = int_to_ptr.vmem [resolvable:$true] %s30_s21 }
   0x6   :  { %33 = dma.hbm_to_vmem [thread:$0]  %s29_s19, 48, %s31_s21, [#allocation5]  }
   0x7   :  { %217 = dma.done.wait [#allocation3], 192  }
   0x8   :  { %218 = vsyncadd [#allocation3], 4294967104 }
   0x9   :  { %219 = dma.done.wait [#allocation5], 48  }
   0xa   :  { %220 = vsyncadd [#allocation5], 4294967248  ;;  %v45_v0 = vld [vmem:[#allocation2 + $0x8] sm:$0xf]  ;;  %v44_v1 = vld [vmem:[#allocation2] sm:$0xff]  ;;  %vm69_vm0 = vcmask 1043456  }
   0xb   :  { %58 = vst [vmem:[#allocation1 + $0x10] ss:$2 sm:$0xff] %v45_v0  ;;  %v42_v2 = vld [vmem:[%s273_s0] sm:$0xff]  ;;  %vm62_vm1 = vcmask 31744   ;;  %v43_v4 = vld [vmem:[%s273_s0 + $0x8] sm:$0xff] }
   0xc   :  { %56 = vst [vmem:[#allocation1] ss:$2 sm:$0xff] %v44_v1  ;;  %v46_v7 = vld [vmem:[#allocation4] sm:$0x7] }
   0xd   :  { %v49_v8 = vperm.slane %v46_v7, 1  ;;  %v48_v9 = vperm.slane %v46_v7, 0  ;;  %v50_v12 = vperm.slane %v46_v7, 2 }
  0x12   :  { %v61_v3 = vld.sshfl [vmem:[#allocation1 + $0x10] sm:$0xff pattern:$0x75316420] }
  0x13   :  { %163 = vmatpush.msk.msra.mxu2 %vm69_vm0, %v61_v3  ;;  %v60_v5 = vld.sshfl [vmem:[#allocation1 + $0x8] sm:$0xff pattern:$0x75316420]  ;;  %v59_v6 = vld.sshfl [vmem:[#allocation1] sm:$0xff pattern:$0x75316420] }
  0x14   :  { %164 = vmatmul.msk.f32.vlgmr.msra.gmra.mxu2 %vm62_vm1, %v42_v2  ;;  %160 = vmatpush.msk.msra.mxu1 %vm69_vm0, %v60_v5 }
  0x15   :  { %161 = vmatmul.msk.f32.vlgmr.msra.gmra.mxu1 %vm62_vm1, %v42_v2  ;;  %166 = vmatpush.msk.msra.mxu3 %vm69_vm0, %v59_v6 }
  0x16   :  { %159 = vmatmul.msk.f32.vlgmr.msra.gmra.mxu3 %vm62_vm1, %v43_v4  ;;  %157 = vmatpush.msk.msra.mxu0 %vm69_vm0, %v59_v6 }
  0x17   :  { %158 = vmatmul.msk.f32.vlgmr.msra.gmra.mxu0 %vm62_vm1, %v42_v2 }
  0x1c   :  { %165 = vmatmul.msk.f32.gmra.mxu2 %vm62_vm1, %v43_v4 }
  0x1d   :  { %162 = vmatmul.msk.f32.gmra.mxu1 %vm62_vm1, %v43_v4 }
  0x92   :  { %v116_v10 = vpop.f32.mrf.mxu1 }
  0x93   :  { %v117_v11 = vadd.f32 %v116_v10, %v49_v8 }
  0x94   :  { %v93_v13 = vpop.f32.mrf.mxu0 }
  0x95   :  { %146 = vst [vmem:[%s276_s3 + $0x8] sm:$0xff] %v117_v11  ;;  %v94_v14 = vadd.f32 %v93_v13, %v48_v9 }
  0x97   :  { %v139_v15 = vpop.f32.mrf.mxu2  ;;  %145 = vst [vmem:[%s276_s3] sm:$0xff] %v94_v14 }
  0x98   :  { %v140_v16 = vadd.f32 %v139_v15, %v50_v12 }
  0x99   :  { %v96_v17 = vpop.f32.mrf.mxu3 }
  0x9a   :  { %147 = vst [vmem:[%s276_s3 + $0x10] sm:$0xff] %v140_v16  ;;  %v97_v18 = vadd.f32 %v96_v17, %v48_v9  ;;  %v119_v19 = vpop.f32.mrf.mxu1 }
  0x9b   :  { %v120_v20 = vadd.f32 %v119_v19, %v49_v8 }
  0x9c   :  { %148 = vst [vmem:[%s276_s3 + $0x18] sm:$0xff] %v97_v18 }
  0x9d   :  { %149 = vst [vmem:[%s276_s3 + $0x20] sm:$0xff] %v120_v20 }
  0x9f   :  { %v142_v21 = vpop.f32.mrf.mxu2 }
  0xa0   :  { %v143_v22 = vadd.f32 %v142_v21, %v50_v12 }
  0xa2   :  { %150 = vst [vmem:[%s276_s3 + $0x28] sm:$0xff] %v143_v22 }
  0xa3   :  { %155 = vsyncpa [#allocation3], 1 }
  0xa4   :  { %156 = vsyncpa [#allocation5], 1 }

// kernel: _lambda_.6
= control target key start
LH: loop header
LB: loop body
LE: loop exit
PB: predicated region body
PF: predicated region fallthrough
CT: control target
= control target key end

     0   :  { %s358_s1 = inlined_call_operand.vmem [shape: f32[128,384], index: 1, kind: input, shape index: {}]   ;;  %s359_s0 = inlined_call_operand.vmem [shape: f32[16,128], index: 0, kind: input, shape index: {}]   ;;  %s360_s2 = inlined_call_operand.vmem [shape: f32[1,384], index: 2, kind: input, shape index: {}]   ;;  %s361_s3 = inlined_call_operand.vmem [shape: f32[16,384], index: 3, kind: output, shape index: {}]  }
   0x1   :  { %v63_v0 = vld [vmem:[%s358_s1 + $0x178] sm:$0xff]  ;;  %v60_v1 = vld [vmem:[%s358_s1 + $0x160] sm:$0xff]  ;;  %v62_v2 = vld [vmem:[%s358_s1 + $0x170] sm:$0xff] }
   0x2   :  { %118 = vmatpush.msra.mxu2 %v63_v0  ;;  %v61_v3 = vld [vmem:[%s358_s1 + $0x168] sm:$0xff]  ;;  %95 = vmatpush.msra.mxu1 %v62_v2  ;;  %v59_v5 = vld [vmem:[%s358_s1 + $0x158] sm:$0xff]  ;;  %v58_v6 = vld [vmem:[%s358_s1 + $0x150] sm:$0xff] }
   0x3   :  { %v57_v4 = vld [vmem:[%s358_s1 + $0x148] sm:$0xff]  ;;  %151 = vmatpush.msra.mxu3 %v61_v3  ;;  %v56_v7 = vld [vmem:[%s358_s1 + $0x140] sm:$0xff]  ;;  %v55_v8 = vld [vmem:[%s358_s1 + $0x138] sm:$0xff]  ;;  %72 = vmatpush.msra.mxu0 %v61_v3 }
   0x4   :  { %119 = vmatpush.msra.mxu2 %v60_v1  ;;  %v54_v9 = vld [vmem:[%s358_s1 + $0x130] sm:$0xff]  ;;  %96 = vmatpush.msra.mxu1 %v59_v5  ;;  %v53_v10 = vld [vmem:[%s358_s1 + $0x128] sm:$0xff]  ;;  %v52_v11 = vld [vmem:[%s358_s1 + $0x120] sm:$0xff] }
   0x5   :  { %152 = vmatpush.msra.mxu3 %v58_v6  ;;  %73 = vmatpush.msra.mxu0 %v58_v6  ;;  %v51_v12 = vld [vmem:[%s358_s1 + $0x118] sm:$0xff]  ;;  %v50_v13 = vld [vmem:[%s358_s1 + $0x110] sm:$0xff]  ;;  %v49_v14 = vld [vmem:[%s358_s1 + $0x108] sm:$0xff] }
   0x6   :  { %120 = vmatpush.msra.mxu2 %v57_v4  ;;  %97 = vmatpush.msra.mxu1 %v56_v7  ;;  %v48_v15 = vld [vmem:[%s358_s1 + $0x100] sm:$0xff]  ;;  %v47_v16 = vld [vmem:[%s358_s1 + $0xf8] sm:$0xff]  ;;  %v46_v17 = vld [vmem:[%s358_s1 + $0xf0] sm:$0xff] }
   0x7   :  { %153 = vmatpush.msra.mxu3 %v55_v8  ;;  %74 = vmatpush.msra.mxu0 %v55_v8  ;;  %v45_v18 = vld [vmem:[%s358_s1 + $0xe8] sm:$0xff]  ;;  %v44_v19 = vld [vmem:[%s358_s1 + $0xe0] sm:$0xff]  ;;  %v43_v20 = vld [vmem:[%s358_s1 + $0xd8] sm:$0xff] }
   0x8   :  { %121 = vmatpush.msra.mxu2 %v54_v9  ;;  %98 = vmatpush.msra.mxu1 %v53_v10  ;;  %v42_v21 = vld [vmem:[%s358_s1 + $0xd0] sm:$0xff]  ;;  %v41_v22 = vld [vmem:[%s358_s1 + $0xc8] sm:$0xff]  ;;  %v40_v23 = vld [vmem:[%s358_s1 + $0xc0] sm:$0xff] }
   0x9   :  { %154 = vmatpush.msra.mxu3 %v52_v11  ;;  %75 = vmatpush.msra.mxu0 %v52_v11  ;;  %v39_v24 = vld [vmem:[%s358_s1 + $0xb8] sm:$0xff]  ;;  %v38_v25 = vld [vmem:[%s358_s1 + $0xb0] sm:$0xff]  ;;  %v37_v26 = vld [vmem:[%s358_s1 + $0xa8] sm:$0xff] }
   0xa   :  { %122 = vmatpush.msra.mxu2 %v51_v12  ;;  %99 = vmatpush.msra.mxu1 %v50_v13  ;;  %v36_v27 = vld [vmem:[%s358_s1 + $0xa0] sm:$0xff]  ;;  %v35_v28 = vld [vmem:[%s358_s1 + $0x98] sm:$0xff]  ;;  %v34_v29 = vld [vmem:[%s358_s1 + $0x90] sm:$0xff] }
   0xb   :  { %155 = vmatpush.msra.mxu3 %v49_v14  ;;  %76 = vmatpush.msra.mxu0 %v49_v14  ;;  %v33_v30 = vld [vmem:[%s358_s1 + $0x88] sm:$0xff]  ;;  %v32_v31 = vld [vmem:[%s358_s1 + $0x80] sm:$0xff]  ;;  %v31_v32 = vld [vmem:[%s358_s1 + $0x78] sm:$0xff] }
   0xc   :  { %123 = vmatpush.msra.mxu2 %v48_v15  ;;  %100 = vmatpush.msra.mxu1 %v47_v16  ;;  %v30_v33 = vld [vmem:[%s358_s1 + $0x70] sm:$0xff]  ;;  %v29_v34 = vld [vmem:[%s358_s1 + $0x68] sm:$0xff]  ;;  %v28_v35 = vld [vmem:[%s358_s1 + $0x60] sm:$0xff] }
   0xd   :  { %156 = vmatpush.msra.mxu3 %v46_v17  ;;  %77 = vmatpush.msra.mxu0 %v46_v17  ;;  %v27_v36 = vld [vmem:[%s358_s1 + $0x58] sm:$0xff]  ;;  %v26_v37 = vld [vmem:[%s358_s1 + $0x50] sm:$0xff]  ;;  %v25_v38 = vld [vmem:[%s358_s1 + $0x48] sm:$0xff] }
   0xe   :  { %124 = vmatpush.msra.mxu2 %v45_v18  ;;  %101 = vmatpush.msra.mxu1 %v44_v19  ;;  %v24_v39 = vld [vmem:[%s358_s1 + $0x40] sm:$0xff]  ;;  %v23_v40 = vld [vmem:[%s358_s1 + $0x38] sm:$0xff]  ;;  %v22_v41 = vld [vmem:[%s358_s1 + $0x30] sm:$0xff] }
   0xf   :  { %157 = vmatpush.msra.mxu3 %v43_v20  ;;  %78 = vmatpush.msra.mxu0 %v43_v20  ;;  %v21_v42 = vld [vmem:[%s358_s1 + $0x28] sm:$0xff]  ;;  %v20_v43 = vld [vmem:[%s358_s1 + $0x20] sm:$0xff]  ;;  %v19_v44 = vld [vmem:[%s358_s1 + $0x18] sm:$0xff] }
  0x10   :  { %125 = vmatpush.msra.mxu2 %v42_v21  ;;  %102 = vmatpush.msra.mxu1 %v41_v22  ;;  %v18_v45 = vld [vmem:[%s358_s1 + $0x10] sm:$0xff]  ;;  %v14_v46 = vld [vmem:[%s359_s0] sm:$0xff]  ;;  %v17_v47 = vld [vmem:[%s358_s1 + $0x8] sm:$0xff] }
  0x11   :  { %158 = vmatpush.msra.mxu3 %v40_v23  ;;  %79 = vmatpush.msra.mxu0 %v40_v23  ;;  %v16_v48 = vld [vmem:[%s358_s1] sm:$0xff]  ;;  %v15_v49 = vld [vmem:[%s359_s0 + $0x8] sm:$0xff] }
  0x12   :  { %126 = vmatpush.msra.mxu2 %v39_v24  ;;  %103 = vmatpush.msra.mxu1 %v38_v25  ;;  %v64_v50 = vld [vmem:[%s360_s2] sm:$0x7] }
  0x13   :  { %159 = vmatpush.msra.mxu3 %v37_v26  ;;  %80 = vmatpush.msra.mxu0 %v37_v26  ;;  %v67_v51 = vperm.slane %v64_v50, 1  ;;  %v66_v52 = vperm.slane %v64_v50, 0  ;;  %v68_v55 = vperm.slane %v64_v50, 2 }
  0x14   :  { %127 = vmatpush.msra.mxu2 %v36_v27  ;;  %104 = vmatpush.msra.mxu1 %v35_v28 }
  0x15   :  { %160 = vmatpush.msra.mxu3 %v34_v29  ;;  %81 = vmatpush.msra.mxu0 %v34_v29 }
  0x16   :  { %128 = vmatpush.msra.mxu2 %v33_v30  ;;  %105 = vmatpush.msra.mxu1 %v32_v31 }
  0x17   :  { %161 = vmatpush.msra.mxu3 %v31_v32  ;;  %82 = vmatpush.msra.mxu0 %v31_v32 }
  0x18   :  { %129 = vmatpush.msra.mxu2 %v30_v33  ;;  %106 = vmatpush.msra.mxu1 %v29_v34 }
  0x19   :  { %162 = vmatpush.msra.mxu3 %v28_v35  ;;  %83 = vmatpush.msra.mxu0 %v28_v35 }
  0x1a   :  { %130 = vmatpush.msra.mxu2 %v27_v36  ;;  %107 = vmatpush.msra.mxu1 %v26_v37 }
  0x1b   :  { %163 = vmatpush.msra.mxu3 %v25_v38  ;;  %84 = vmatpush.msra.mxu0 %v25_v38 }
  0x1c   :  { %131 = vmatpush.msra.mxu2 %v24_v39  ;;  %108 = vmatpush.msra.mxu1 %v23_v40 }
  0x1d   :  { %164 = vmatpush.msra.mxu3 %v22_v41  ;;  %85 = vmatpush.msra.mxu0 %v22_v41 }
  0x1e   :  { %132 = vmatpush.msra.mxu2 %v21_v42  ;;  %109 = vmatpush.msra.mxu1 %v20_v43 }
  0x1f   :  { %165 = vmatpush.msra.mxu3 %v19_v44  ;;  %86 = vmatpush.msra.mxu0 %v19_v44 }
  0x20   :  { %133 = vmatpush.msra.mxu2 %v18_v45  ;;  %110 = vmatpush.msra.mxu1 %v17_v47 }
  0x21   :  { %134 = vmatmul.f32.vlgmr.msra.gmra.mxu2 %v14_v46  ;;  %111 = vmatmul.f32.vlgmr.msra.gmra.mxu1 %v14_v46 }
  0x22   :  { %166 = vmatpush.msra.mxu3 %v16_v48  ;;  %87 = vmatpush.msra.mxu0 %v16_v48 }
  0x23   :  { %91 = vmatmul.f32.vlgmr.msra.gmra.mxu3 %v15_v49  ;;  %88 = vmatmul.f32.vlgmr.msra.gmra.mxu0 %v14_v46 }
  0x29   :  { %137 = vmatmul.f32.gmra.mxu2 %v15_v49  ;;  %114 = vmatmul.f32.gmra.mxu1 %v15_v49 }
  0x9e   :  { %v112_v53 = vpop.f32.mrf.mxu1 }
  0x9f   :  { %v113_v54 = vadd.f32 %v112_v53, %v67_v51 }
  0xa0   :  { %v89_v56 = vpop.f32.mrf.mxu0 }
  0xa1   :  { %142 = vst [vmem:[%s361_s3 + $0x8] sm:$0xff] %v113_v54  ;;  %v90_v57 = vadd.f32 %v89_v56, %v66_v52 }
  0xa3   :  { %141 = vst [vmem:[%s361_s3] sm:$0xff] %v90_v57 }
  0xa4   :  { %v135_v58 = vpop.f32.mrf.mxu2 }
  0xa5   :  { %v136_v59 = vadd.f32 %v135_v58, %v68_v55 }
  0xa6   :  { %v92_v60 = vpop.f32.mrf.mxu3  ;;  %v115_v62 = vpop.f32.mrf.mxu1 }
  0xa7   :  { %143 = vst [vmem:[%s361_s3 + $0x10] sm:$0xff] %v136_v59  ;;  %v93_v61 = vadd.f32 %v92_v60, %v66_v52  ;;  %v116_v63 = vadd.f32 %v115_v62, %v67_v51 }
  0xa9   :  { %144 = vst [vmem:[%s361_s3 + $0x18] sm:$0xff] %v93_v61 }
  0xaa   :  { %145 = vst [vmem:[%s361_s3 + $0x20] sm:$0xff] %v116_v63 }
  0xac   :  { %v138_v0 = vpop.f32.mrf.mxu2 }
  0xad   :  { %v139_v1 = vadd.f32 %v138_v0, %v68_v55 }
  0xaf   :  { %146 = vst [vmem:[%s361_s3 + $0x28] sm:$0xff] %v139_v1 }

// kernel: _lambda_.5
= control target key start
LH: loop header
LB: loop body
LE: loop exit
PB: predicated region body
PF: predicated region fallthrough
CT: control target
= control target key end

     0   :  { %10 = vsyncpa [#allocation4], 0  ;;  %s1864_s0 = inlined_call_operand.vmem [shape: f32[8,2,384], index: 0, kind: input, shape index: {}]   ;;  %s1865_s1 = inlined_call_operand.hbm [shape: f32[128,256], index: 1, kind: input, shape index: {}]   ;;  %s1866_s2 = inlined_call_operand.hbm [shape: f32[128,128], index: 2, kind: input, shape index: {}]   ;;  %s1867_s3 = inlined_call_operand.vmem [shape: f32[8,2,128], index: 3, kind: output, shape index: {0}]   ;;  %s1868_s4 = inlined_call_operand.vmem [shape: f32[2,128], index: 4, kind: output, shape index: {1}]  }
   0x1   :  { %s18_s17 = sshll.u32 %s1865_s1, 4  ;;  %s19_s17 = int_to_ptr.hbm [resolvable:$true] %s18_s17 }
   0x2   :  { %11 = vsyncpa [#allocation6], 0  ;;  %s1257_s18 = smov [#allocation3]   ;;  %s31_s22 = sshll.u32 %s1866_s2, 4  ;;  %s32_s22 = int_to_ptr.hbm [resolvable:$true] %s31_s22 }
   0x3   :  { %s20_s19 = sshll.u32 %s1257_s18, 4  ;;  %s1258_s23 = smov 256   ;;  %s21_s19 = int_to_ptr.vmem [resolvable:$true] %s20_s19 }
   0x4   :  { %s1259_s24 = smov 16   ;;  %s1260_s25 = smov [#allocation5]  }
   0x5   :  { %26 = dma.hbm_to_vmem [thread:$0]  %s19_s17, 4096, %s21_s19, [#allocation4], %s1258_s23, %s1258_s23, %s1259_s24  }
   0x6   :  { %s33_s26 = sshll.u32 %s1260_s25, 4  ;;  %s1261_s27 = smov 128   ;;  %s34_s26 = int_to_ptr.vmem [resolvable:$true] %s33_s26 }
   0x7   :  { %s1262_s28 = smov 8  }
   0x8   :  { %39 = dma.hbm_to_vmem [thread:$0]  %s32_s22, 2048, %s34_s26, [#allocation6], %s1261_s27, %s1261_s27, %s1262_s28  }
   0x9   :  { %1253 = dma.done.wait [#allocation4], 4096  }
   0xa   :  { %1254 = vsyncadd [#allocation4], 4294963200 }
   0xb   :  { %1255 = dma.done.wait [#allocation6], 2048  }
   0xc   :  { %1256 = vsyncadd [#allocation6], 4294965248  ;;  %v1263_v0 = vmov 0.0   ;;  %v1295_v1 = vld [vmem:[#allocation3 + $0xf0] sm:$0xff]  ;;  %v1297_v2 = vld [vmem:[#allocation3 + $0xe0] sm:$0xff] }
   0xd   :  { %52 = vst [vmem:[#allocation2] sm:$0x3] %v1263_v0  ;;  %103 = vmatpush.msra.mxu0 %v1295_v1  ;;  %218 = vmatpush.msra.mxu3 %v1295_v1  ;;  %v1301_v3 = vld [vmem:[#allocation3 + $0xd0] sm:$0xff]  ;;  %v1305_v4 = vld [vmem:[#allocation3 + $0xc0] sm:$0xff]  ;;  %v1308_v5 = vld [vmem:[#allocation3 + $0xf8] sm:$0xff] }
   0xe   :  { %v1311_v6 = vld [vmem:[#allocation3 + $0xb0] sm:$0xff]  ;;  %123 = vmatpush.msra.mxu1 %v1308_v5  ;;  %v1314_v7 = vld [vmem:[#allocation3 + $0xe8] sm:$0xff]  ;;  %v1317_v8 = vld [vmem:[#allocation3 + $0xd8] sm:$0xff] }
   0xf   :  { %104 = vmatpush.msra.mxu0 %v1297_v2  ;;  %219 = vmatpush.msra.mxu3 %v1297_v2  ;;  %v1320_v9 = vld [vmem:[#allocation3 + $0xa0] sm:$0xff]  ;;  %v1324_v10 = vld [vmem:[#allocation3 + $0xc8] sm:$0xff]  ;;  %v1327_v11 = vld [vmem:[#allocation3 + $0x90] sm:$0xff] }
  0x10   :  { %124 = vmatpush.msra.mxu1 %v1314_v7  ;;  %v1331_v12 = vld [vmem:[#allocation3 + $0xb8] sm:$0xff]  ;;  %v1334_v13 = vld [vmem:[#allocation3 + $0x80] sm:$0xff]  ;;  %v1338_v14 = vld [vmem:[#allocation3 + $0xa8] sm:$0xff] }
  0x11   :  { %105 = vmatpush.msra.mxu0 %v1301_v3  ;;  %220 = vmatpush.msra.mxu3 %v1301_v3  ;;  %v1341_v15 = vld [vmem:[#allocation3 + $0x70] sm:$0xff]  ;;  %v1345_v16 = vld [vmem:[#allocation3 + $0x98] sm:$0xff]  ;;  %v1348_v17 = vld [vmem:[#allocation3 + $0x60] sm:$0xff] }
  0x12   :  { %125 = vmatpush.msra.mxu1 %v1317_v8  ;;  %v1352_v18 = vld [vmem:[#allocation3 + $0x88] sm:$0xff]  ;;  %v1355_v19 = vld [vmem:[#allocation3 + $0x50] sm:$0xff]  ;;  %v1359_v20 = vld [vmem:[#allocation3 + $0x78] sm:$0xff] }
  0x13   :  { %106 = vmatpush.msra.mxu0 %v1305_v4  ;;  %221 = vmatpush.msra.mxu3 %v1305_v4  ;;  %v1362_v21 = vld [vmem:[#allocation3 + $0x40] sm:$0xff]  ;;  %v1366_v22 = vld [vmem:[#allocation3 + $0x68] sm:$0xff]  ;;  %v1369_v23 = vld [vmem:[#allocation3 + $0x30] sm:$0xff] }
  0x14   :  { %126 = vmatpush.msra.mxu1 %v1324_v10  ;;  %v1373_v24 = vld [vmem:[#allocation3 + $0x58] sm:$0xff]  ;;  %v1376_v25 = vld [vmem:[#allocation3 + $0x20] sm:$0xff]  ;;  %v1380_v26 = vld [vmem:[#allocation3 + $0x48] sm:$0xff] }
  0x15   :  { %107 = vmatpush.msra.mxu0 %v1311_v6  ;;  %222 = vmatpush.msra.mxu3 %v1311_v6  ;;  %v1383_v27 = vld [vmem:[#allocation3 + $0x10] sm:$0xff]  ;;  %v1387_v28 = vld [vmem:[#allocation3 + $0x38] sm:$0xff]  ;;  %v1390_v29 = vld [vmem:[#allocation3] sm:$0xff] }
  0x16   :  { %127 = vmatpush.msra.mxu1 %v1331_v12  ;;  %v1394_v30 = vld [vmem:[#allocation2] sm:$0x3]  ;;  %v1396_v31 = vld [vmem:[#allocation3 + $0x28] sm:$0xff]  ;;  %v1444_v35 = vld [vmem:[#allocation5 + $0x70] sm:$0xff] }
  0x17   :  { %108 = vmatpush.msra.mxu0 %v1320_v9  ;;  %223 = vmatpush.msra.mxu3 %v1320_v9  ;;  %1875 = vst [vmem:[#allocation9_spill] sm:$0xff] %v1396_v31  ;;  %v1432_v32 = vld [vmem:[#allocation3 + $0x18] sm:$0xff]  ;;  %v1436_v33 = vld [vmem:[#allocation3 + $0x8] sm:$0xff]  ;;  %v1455_v37 = vld [vmem:[#allocation5 + $0x60] sm:$0xff] }
  0x18   :  { %128 = vmatpush.msra.mxu1 %v1338_v14  ;;  %1876 = vst [vmem:[#allocation10_spill] sm:$0xff] %v1432_v32  ;;  %v1438_v34 = vld [vmem:[#allocation5 + $0x78] sm:$0xff]  ;;  %v1449_v36 = vld [vmem:[#allocation5 + $0x68] sm:$0xff]  ;;  %v1465_v39 = vld [vmem:[#allocation5 + $0x50] sm:$0xff] }
  0x19   :  { %109 = vmatpush.msra.mxu0 %v1327_v11  ;;  %224 = vmatpush.msra.mxu3 %v1327_v11  ;;  %1877 = vst [vmem:[#allocation11_spill] sm:$0xff] %v1436_v33  ;;  %v1460_v38 = vld [vmem:[#allocation5 + $0x58] sm:$0xff]  ;;  %v1470_v40 = vld [vmem:[#allocation5 + $0x48] sm:$0xff]  ;;  %v1474_v41 = vld [vmem:[#allocation5 + $0x40] sm:$0xff] }
  0x1a   :  { %129 = vmatpush.msra.mxu1 %v1345_v16  ;;  %187 = vmatpush.msra.mxu2 %v1438_v34  ;;  %v1477_v42 = vld [vmem:[#allocation5 + $0x38] sm:$0xff]  ;;  %v1482_v43 = vld [vmem:[#allocation5 + $0x30] sm:$0xff]  ;;  %v1487_v44 = vld [vmem:[#allocation5 + $0x28] sm:$0xff] }
  0x1b   :  { %110 = vmatpush.msra.mxu0 %v1334_v13  ;;  %225 = vmatpush.msra.mxu3 %v1334_v13  ;;  %v1492_v45 = vld [vmem:[#allocation5 + $0x20] sm:$0xff]  ;;  %v1497_v46 = vld [vmem:[#allocation5 + $0x18] sm:$0xff]  ;;  %v1502_v47 = vld [vmem:[#allocation5 + $0x10] sm:$0xff] }
  0x1c   :  { %130 = vmatpush.msra.mxu1 %v1352_v18  ;;  %188 = vmatpush.msra.mxu2 %v1444_v35  ;;  %v1507_v48 = vld [vmem:[#allocation5 + $0x8] sm:$0xff]  ;;  %v1512_v49 = vld [vmem:[#allocation5] sm:$0xff] }
  0x1d   :  { %111 = vmatpush.msra.mxu0 %v1341_v15  ;;  %226 = vmatpush.msra.mxu3 %v1341_v15  ;;  %v1518_v50 = vld [vmem:[%s1864_s0] sm:$0x3f] }
  0x1e   :  { %131 = vmatpush.msra.mxu1 %v1359_v20  ;;  %189 = vmatpush.msra.mxu2 %v1449_v36 }
  0x1f   :  { %112 = vmatpush.msra.mxu0 %v1348_v17  ;;  %227 = vmatpush.msra.mxu3 %v1348_v17 }
  0x20   :  { %132 = vmatpush.msra.mxu1 %v1366_v22  ;;  %190 = vmatpush.msra.mxu2 %v1455_v37 }
  0x21   :  { %113 = vmatpush.msra.mxu0 %v1355_v19  ;;  %228 = vmatpush.msra.mxu3 %v1355_v19 }
  0x22   :  { %133 = vmatpush.msra.mxu1 %v1373_v24  ;;  %191 = vmatpush.msra.mxu2 %v1460_v38 }
  0x23   :  { %114 = vmatpush.msra.mxu0 %v1362_v21  ;;  %229 = vmatpush.msra.mxu3 %v1362_v21 }
  0x24   :  { %134 = vmatpush.msra.mxu1 %v1380_v26  ;;  %192 = vmatpush.msra.mxu2 %v1465_v39 }
  0x25   :  { %115 = vmatpush.msra.mxu0 %v1369_v23  ;;  %230 = vmatpush.msra.mxu3 %v1369_v23 }
  0x26   :  { %135 = vmatpush.msra.mxu1 %v1387_v28  ;;  %193 = vmatpush.msra.mxu2 %v1470_v40 }
  0x27   :  { %116 = vmatpush.msra.mxu0 %v1376_v25  ;;  %231 = vmatpush.msra.mxu3 %v1376_v25 }
  0x28   :  { %136 = vmatpush.msra.mxu1 %v1396_v31  ;;  %194 = vmatpush.msra.mxu2 %v1474_v41 }
  0x29   :  { %117 = vmatpush.msra.mxu0 %v1383_v27  ;;  %232 = vmatpush.msra.mxu3 %v1383_v27 }
  0x2a   :  { %137 = vmatpush.msra.mxu1 %v1432_v32  ;;  %195 = vmatpush.msra.mxu2 %v1477_v42 }
  0x2b   :  { %118 = vmatpush.msra.mxu0 %v1390_v29  ;;  %233 = vmatpush.msra.mxu3 %v1390_v29 }
  0x2c   :  { %119 = vmatmul.f32.vlgmr.msra.gmra.mxu0 %v1394_v30  ;;  %138 = vmatpush.msra.mxu1 %v1436_v33 }
  0x2d   :  { %238 = vmatpush.msrb.mxu0 %v1308_v5  ;;  %354 = vmatpush.msrb.mxu3 %v1308_v5 }
  0x2e   :  { %139 = vmatmul.f32.vlgmr.msra.gmra.mxu1 %v1394_v30  ;;  %196 = vmatpush.msra.mxu2 %v1482_v43 }
  0x2f   :  { %239 = vmatpush.msrb.mxu0 %v1314_v7  ;;  %355 = vmatpush.msrb.mxu3 %v1314_v7 }
  0x30   :  { %302 = vmatpush.msrb.mxu1 %v1438_v34  ;;  %197 = vmatpush.msra.mxu2 %v1487_v44 }
  0x31   :  { %240 = vmatpush.msrb.mxu0 %v1317_v8  ;;  %356 = vmatpush.msrb.mxu3 %v1317_v8 }
  0x32   :  { %303 = vmatpush.msrb.mxu1 %v1444_v35  ;;  %198 = vmatpush.msra.mxu2 %v1492_v45 }
  0x33   :  { %241 = vmatpush.msrb.mxu0 %v1324_v10  ;;  %357 = vmatpush.msrb.mxu3 %v1324_v10 }
  0x34   :  { %304 = vmatpush.msrb.mxu1 %v1449_v36  ;;  %199 = vmatpush.msra.mxu2 %v1497_v46 }
  0x35   :  { %242 = vmatpush.msrb.mxu0 %v1331_v12  ;;  %358 = vmatpush.msrb.mxu3 %v1331_v12 }
  0x36   :  { %305 = vmatpush.msrb.mxu1 %v1455_v37  ;;  %200 = vmatpush.msra.mxu2 %v1502_v47 }
  0x37   :  { %243 = vmatpush.msrb.mxu0 %v1338_v14  ;;  %359 = vmatpush.msrb.mxu3 %v1338_v14 }
  0x38   :  { %306 = vmatpush.msrb.mxu1 %v1460_v38  ;;  %201 = vmatpush.msra.mxu2 %v1507_v48 }
  0x39   :  { %244 = vmatpush.msrb.mxu0 %v1345_v16  ;;  %360 = vmatpush.msrb.mxu3 %v1345_v16 }
  0x3a   :  { %307 = vmatpush.msrb.mxu1 %v1465_v39  ;;  %202 = vmatpush.msra.mxu2 %v1512_v49 }
  0x3b   :  { %245 = vmatpush.msrb.mxu0 %v1352_v18  ;;  %361 = vmatpush.msrb.mxu3 %v1352_v18 }
  0x3c   :  { %308 = vmatpush.msrb.mxu1 %v1470_v40  ;;  %334 = vmatpush.msrb.mxu2 %v1295_v1 }
  0x3d   :  { %246 = vmatpush.msrb.mxu0 %v1359_v20  ;;  %362 = vmatpush.msrb.mxu3 %v1359_v20 }
  0x3e   :  { %309 = vmatpush.msrb.mxu1 %v1474_v41  ;;  %335 = vmatpush.msrb.mxu2 %v1297_v2 }
  0x3f   :  { %247 = vmatpush.msrb.mxu0 %v1366_v22  ;;  %363 = vmatpush.msrb.mxu3 %v1366_v22 }
  0x40   :  { %310 = vmatpush.msrb.mxu1 %v1477_v42  ;;  %336 = vmatpush.msrb.mxu2 %v1301_v3 }
  0x41   :  { %248 = vmatpush.msrb.mxu0 %v1373_v24  ;;  %364 = vmatpush.msrb.mxu3 %v1373_v24 }
  0x42   :  { %311 = vmatpush.msrb.mxu1 %v1482_v43  ;;  %337 = vmatpush.msrb.mxu2 %v1305_v4 }
  0x43   :  { %249 = vmatpush.msrb.mxu0 %v1380_v26  ;;  %365 = vmatpush.msrb.mxu3 %v1380_v26 }
  0x44   :  { %312 = vmatpush.msrb.mxu1 %v1487_v44  ;;  %338 = vmatpush.msrb.mxu2 %v1311_v6 }
  0x45   :  { %250 = vmatpush.msrb.mxu0 %v1387_v28  ;;  %366 = vmatpush.msrb.mxu3 %v1387_v28 }
  0x46   :  { %313 = vmatpush.msrb.mxu1 %v1492_v45  ;;  %339 = vmatpush.msrb.mxu2 %v1320_v9 }
  0x47   :  { %251 = vmatpush.msrb.mxu0 %v1396_v31  ;;  %367 = vmatpush.msrb.mxu3 %v1396_v31 }
  0x48   :  { %314 = vmatpush.msrb.mxu1 %v1497_v46  ;;  %340 = vmatpush.msrb.mxu2 %v1327_v11 }
  0x49   :  { %252 = vmatpush.msrb.mxu0 %v1432_v32  ;;  %368 = vmatpush.msrb.mxu3 %v1432_v32 }
  0x4a   :  { %315 = vmatpush.msrb.mxu1 %v1502_v47  ;;  %341 = vmatpush.msrb.mxu2 %v1334_v13 }
  0x4b   :  { %253 = vmatpush.msrb.mxu0 %v1436_v33  ;;  %369 = vmatpush.msrb.mxu3 %v1436_v33 }
  0x4c   :  { %316 = vmatpush.msrb.mxu1 %v1507_v48  ;;  %342 = vmatpush.msrb.mxu2 %v1341_v15 }
  0x4d   :  { %418 = vmatpush.msra.mxu0 %v1438_v34 }
  0x4e   :  { %317 = vmatpush.msrb.mxu1 %v1512_v49  ;;  %343 = vmatpush.msrb.mxu2 %v1348_v17 }
  0x4f   :  { %419 = vmatpush.msra.mxu0 %v1444_v35 }
  0x50   :  { %450 = vmatpush.msra.mxu1 %v1295_v1  ;;  %344 = vmatpush.msrb.mxu2 %v1355_v19 }
  0x51   :  { %420 = vmatpush.msra.mxu0 %v1449_v36 }
  0x52   :  { %451 = vmatpush.msra.mxu1 %v1297_v2  ;;  %345 = vmatpush.msrb.mxu2 %v1362_v21 }
  0x53   :  { %421 = vmatpush.msra.mxu0 %v1455_v37 }
  0x54   :  { %452 = vmatpush.msra.mxu1 %v1301_v3  ;;  %346 = vmatpush.msrb.mxu2 %v1369_v23 }
  0x55   :  { %422 = vmatpush.msra.mxu0 %v1460_v38 }
  0x56   :  { %453 = vmatpush.msra.mxu1 %v1305_v4  ;;  %347 = vmatpush.msrb.mxu2 %v1376_v25 }
  0x57   :  { %423 = vmatpush.msra.mxu0 %v1465_v39 }
  0x58   :  { %454 = vmatpush.msra.mxu1 %v1311_v6  ;;  %348 = vmatpush.msrb.mxu2 %v1383_v27 }
  0x59   :  { %424 = vmatpush.msra.mxu0 %v1470_v40 }
  0x5a   :  { %455 = vmatpush.msra.mxu1 %v1320_v9  ;;  %349 = vmatpush.msrb.mxu2 %v1390_v29 }
  0x5b   :  { %425 = vmatpush.msra.mxu0 %v1474_v41 }
  0x5c   :  { %456 = vmatpush.msra.mxu1 %v1327_v11 }
  0x5d   :  { %426 = vmatpush.msra.mxu0 %v1477_v42 }
  0x5e   :  { %457 = vmatpush.msra.mxu1 %v1334_v13 }
  0x5f   :  { %427 = vmatpush.msra.mxu0 %v1482_v43 }
  0x60   :  { %458 = vmatpush.msra.mxu1 %v1341_v15 }
  0x61   :  { %428 = vmatpush.msra.mxu0 %v1487_v44 }
  0x62   :  { %459 = vmatpush.msra.mxu1 %v1348_v17 }
  0x63   :  { %429 = vmatpush.msra.mxu0 %v1492_v45 }
  0x64   :  { %460 = vmatpush.msra.mxu1 %v1355_v19 }
  0x65   :  { %430 = vmatpush.msra.mxu0 %v1497_v46 }
  0x66   :  { %461 = vmatpush.msra.mxu1 %v1362_v21 }
  0x67   :  { %431 = vmatpush.msra.mxu0 %v1502_v47 }
  0x68   :  { %462 = vmatpush.msra.mxu1 %v1369_v23 }
  0x69   :  { %432 = vmatpush.msra.mxu0 %v1507_v48 }
  0x6a   :  { %463 = vmatpush.msra.mxu1 %v1376_v25 }
  0x6b   :  { %433 = vmatpush.msra.mxu0 %v1512_v49 }
  0x6c   :  { %464 = vmatpush.msra.mxu1 %v1383_v27 }
  0x6e   :  { %465 = vmatpush.msra.mxu1 %v1390_v29 }
  0xa9   :  { %v120_v51 = vpop.f32.mrf.mxu0 }
  0xaa   :  { %v143_v52 = vadd.f32 %v120_v51, %v1518_v50 }
  0xac   :  { %v1040_v53 = vmul.f32 -1.442695, %v143_v52 }
  0xae   :  { %1077 = vpow2.f32 %v1040_v53  ;;  %v164_v53 = vrot.slane %v1518_v50, 2 }
  0xb4   :  { %v1078_v54 = vpop.eup %1077 }
  0xb5   :  { %v147_v55 = vadd.f32 1.0, %v1078_v54  ;;  %v140_v54 = vpop.f32.mrf.mxu1 }
  0xb7   :  { %1079 = vrcp.f32 %v147_v55  ;;  %v159_v59 = vand.u32 2147483648, %v147_v55  ;;  %v157_v61 = vand.u32 2147483647, %v147_v55  ;;  %vm153_vm1 = vweird.f32 %v147_v55 }
  0xb9   :  { %v160_v63 = vor.u32 1.1754944e-38, %v159_v59  ;;  %vm158_vm3 = vcmp.eq.f32.partialorder %v157_v61, 8.507059e+37 }
  0xbd   :  { %v1080_v56 = vpop.eup %1079 }
  0xbe   :  { %v149_v57 = vmul.f32 %v1080_v56, %v147_v55  ;;  %vm154_vm0 = vweird.f32 %v1080_v56  ;;  %v166_v55 = vadd.f32 %v164_v53, %v140_v54 }
  0xbf   :  { %vm155_vm2 = vmor %vm153_vm1, %vm154_vm0 }
  0xc0   :  { %v150_v58 = vsub.f32 1.0, %v149_v57 }
  0xc2   :  { %v151_v60 = vmul.f32 %v1080_v56, %v150_v58 }
  0xc4   :  { %v152_v62 = vadd.f32 %v1080_v56, %v151_v60 }
  0xc6   :  { %v156_v0 = vsel %vm155_vm2, %v1080_v56, %v152_v62  ;;  %v1041_v56 = vmul.f32 -1.442695, %v166_v55 }
  0xc7   :  { %v161_v51 = vsel %vm158_vm3, %v160_v63, %v156_v0  ;;  %v207_v0 = vrot.slane %v1518_v50, 4 }
  0xc8   :  { %v186_v52 = vmul.f32 %v161_v51, %v1394_v30  ;;  %1081 = vpow2.f32 %v1041_v56 }
  0xca   :  { %203 = vmatmul.f32.vlgmr.msra.gmra.mxu2 %v186_v52 }
  0xcb   :  { %470 = vmatpush.msra.mxu2 %v1308_v5 }
  0xcd   :  { %471 = vmatpush.msra.mxu2 %v1314_v7 }
  0xce   :  { %v1082_v57 = vpop.eup %1081 }
  0xcf   :  { %472 = vmatpush.msra.mxu2 %v1317_v8  ;;  %v170_v58 = vadd.f32 1.0, %v1082_v57 }
  0xd1   :  { %473 = vmatpush.msra.mxu2 %v1324_v10  ;;  %1083 = vrcp.f32 %v170_v58  ;;  %vm176_vm4 = vweird.f32 %v170_v58  ;;  %v182_v63 = vand.u32 2147483648, %v170_v58  ;;  %v180_v52 = vand.u32 2147483647, %v170_v58 }
  0xd3   :  { %474 = vmatpush.msra.mxu2 %v1331_v12  ;;  %vm181_vm7 = vcmp.eq.f32.partialorder %v180_v52, 8.507059e+37 }
  0xd5   :  { %475 = vmatpush.msra.mxu2 %v1338_v14 }
  0xd7   :  { %476 = vmatpush.msra.mxu2 %v1345_v16  ;;  %v1084_v59 = vpop.eup %1083 }
  0xd8   :  { %v172_v60 = vmul.f32 %v1084_v59, %v170_v58  ;;  %vm177_vm5 = vweird.f32 %v1084_v59 }
  0xd9   :  { %477 = vmatpush.msra.mxu2 %v1352_v18  ;;  %vm178_vm6 = vmor %vm176_vm4, %vm177_vm5 }
  0xda   :  { %v173_v61 = vsub.f32 1.0, %v172_v60 }
  0xdb   :  { %478 = vmatpush.msra.mxu2 %v1359_v20 }
  0xdc   :  { %v174_v62 = vmul.f32 %v1084_v59, %v173_v61 }
  0xdd   :  { %479 = vmatpush.msra.mxu2 %v1366_v22 }
  0xde   :  { %v175_v51 = vadd.f32 %v1084_v59, %v174_v62 }
  0xdf   :  { %480 = vmatpush.msra.mxu2 %v1373_v24 }
  0xe0   :  { %v179_v54 = vsel %vm178_vm6, %v1084_v59, %v175_v51 }
  0xe1   :  { %481 = vmatpush.msra.mxu2 %v1380_v26 }
  0xe3   :  { %482 = vmatpush.msra.mxu2 %v1387_v28 }
  0xe5   :  { %483 = vmatpush.msra.mxu2 %v1396_v31 }
  0xe7   :  { %484 = vmatpush.msra.mxu2 %v1432_v32  ;;  %v183_v32 = vor.u32 1.1754944e-38, %v182_v63 }
  0xe9   :  { %485 = vmatpush.msra.mxu2 %v1436_v33  ;;  %v184_v55 = vsel %vm181_vm7, %v183_v32, %v179_v54 }
  0xea   :  { %v212_v56 = vsub.f32 1.0, %v184_v55  ;;  %v211_v60 = vmul.f32 %v184_v55, %v1394_v30  ;;  %v1042_v30 = vld [vmem:[%s1864_s0 + $0x6] sm:$0x3f] }
 0x14d   :  { %v204_v33 = vpop.f32.mrf.mxu2 }
 0x14e   :  { %v209_v53 = vadd.f32 %v207_v0, %v204_v33 }
 0x150   :  { %1085 = vtanh.f32 %v209_v53 }
 0x156   :  { %v1086_v57 = vpop.eup %1085 }
 0x157   :  { %v213_v61 = vmul.f32 %v1086_v57, %v212_v56 }
 0x159   :  { %v1581_v31 = vadd.f32 %v213_v61, %v211_v60  ;;  %v1878_v61 = vld [vmem:[#allocation9_spill] sm:$0xff] }
 0x15b   :  { %215 = vst [vmem:[%s1867_s3] sm:$0x3] %v1581_v31  ;;  %234 = vmatmul.f32.vlgmr.msra.gmra.mxu3 %v1581_v31  ;;  %254 = vmatmul.f32.vlgmr.msrb.gmra.mxu0 %v1581_v31 }
 0x15c   :  { %534 = vmatpush.msra.mxu3 %v1438_v34  ;;  %566 = vmatpush.msrb.mxu0 %v1295_v1 }
 0x15e   :  { %535 = vmatpush.msra.mxu3 %v1444_v35  ;;  %567 = vmatpush.msrb.mxu0 %v1297_v2 }
 0x160   :  { %536 = vmatpush.msra.mxu3 %v1449_v36  ;;  %568 = vmatpush.msrb.mxu0 %v1301_v3 }
 0x162   :  { %537 = vmatpush.msra.mxu3 %v1455_v37  ;;  %569 = vmatpush.msrb.mxu0 %v1305_v4 }
 0x164   :  { %538 = vmatpush.msra.mxu3 %v1460_v38  ;;  %570 = vmatpush.msrb.mxu0 %v1311_v6 }
 0x166   :  { %539 = vmatpush.msra.mxu3 %v1465_v39  ;;  %571 = vmatpush.msrb.mxu0 %v1320_v9 }
 0x168   :  { %540 = vmatpush.msra.mxu3 %v1470_v40  ;;  %572 = vmatpush.msrb.mxu0 %v1327_v11 }
 0x16a   :  { %541 = vmatpush.msra.mxu3 %v1474_v41  ;;  %573 = vmatpush.msrb.mxu0 %v1334_v13 }
 0x16c   :  { %542 = vmatpush.msra.mxu3 %v1477_v42  ;;  %574 = vmatpush.msrb.mxu0 %v1341_v15 }
 0x16e   :  { %543 = vmatpush.msra.mxu3 %v1482_v43  ;;  %575 = vmatpush.msrb.mxu0 %v1348_v17 }
 0x170   :  { %544 = vmatpush.msra.mxu3 %v1487_v44  ;;  %576 = vmatpush.msrb.mxu0 %v1355_v19 }
 0x172   :  { %545 = vmatpush.msra.mxu3 %v1492_v45  ;;  %577 = vmatpush.msrb.mxu0 %v1362_v21 }
 0x174   :  { %546 = vmatpush.msra.mxu3 %v1497_v46  ;;  %578 = vmatpush.msrb.mxu0 %v1369_v23 }
 0x176   :  { %547 = vmatpush.msra.mxu3 %v1502_v47  ;;  %579 = vmatpush.msrb.mxu0 %v1376_v25 }
 0x178   :  { %548 = vmatpush.msra.mxu3 %v1507_v48  ;;  %580 = vmatpush.msrb.mxu0 %v1383_v27 }
 0x17a   :  { %549 = vmatpush.msra.mxu3 %v1512_v49  ;;  %581 = vmatpush.msrb.mxu0 %v1390_v29 }
 0x1de   :  { %v235_v32 = vpop.f32.mrf.mxu3 }
 0x1df   :  { %v258_v33 = vadd.f32 %v1042_v30, %v235_v32  ;;  %v1879_v32 = vld [vmem:[#allocation10_spill] sm:$0xff] }
 0x1e1   :  { %v1043_v50 = vmul.f32 -1.442695, %v258_v33  ;;  %v1880_v33 = vld [vmem:[#allocation11_spill] sm:$0xff] }
 0x1e3   :  { %1087 = vpow2.f32 %v1043_v50  ;;  %v279_v50 = vrot.slane %v1042_v30, 2 }
 0x1e9   :  { %v1088_v58 = vpop.eup %1087 }
 0x1ea   :  { %v262_v59 = vadd.f32 1.0, %v1088_v58  ;;  %v255_v58 = vpop.f32.mrf.mxu0 }
 0x1ec   :  { %1089 = vrcp.f32 %v262_v59  ;;  %v274_v51 = vand.u32 2147483648, %v262_v59  ;;  %v272_v53 = vand.u32 2147483647, %v262_v59  ;;  %vm268_vm9 = vweird.f32 %v262_v59 }
 0x1ee   :  { %v275_v55 = vor.u32 1.1754944e-38, %v274_v51  ;;  %vm273_vm11 = vcmp.eq.f32.partialorder %v272_v53, 8.507059e+37 }
 0x1f2   :  { %v1090_v62 = vpop.eup %1089 }
 0x1f3   :  { %v264_v63 = vmul.f32 %v1090_v62, %v262_v59  ;;  %vm269_vm8 = vweird.f32 %v1090_v62  ;;  %v281_v59 = vadd.f32 %v279_v50, %v255_v58 }
 0x1f4   :  { %vm270_vm10 = vmor %vm268_vm9, %vm269_vm8 }
 0x1f5   :  { %v265_v0 = vsub.f32 1.0, %v264_v63 }
 0x1f7   :  { %v266_v52 = vmul.f32 %v1090_v62, %v265_v0 }
 0x1f9   :  { %v267_v54 = vadd.f32 %v1090_v62, %v266_v52 }
 0x1fb   :  { %v271_v56 = vsel %vm270_vm10, %v1090_v62, %v267_v54  ;;  %v1044_v62 = vmul.f32 -1.442695, %v281_v59 }
 0x1fc   :  { %v276_v57 = vsel %vm273_vm11, %v275_v55, %v271_v56  ;;  %v322_v55 = vrot.slane %v1042_v30, 4 }
 0x1fd   :  { %v301_v60 = vmul.f32 %v276_v57, %v1581_v31  ;;  %1091 = vpow2.f32 %v1044_v62 }
 0x1ff   :  { %318 = vmatmul.f32.vlgmr.msrb.gmra.mxu1 %v301_v60 }
 0x200   :  { %586 = vmatpush.msrb.mxu1 %v1308_v5 }
 0x202   :  { %587 = vmatpush.msrb.mxu1 %v1314_v7 }
 0x203   :  { %v1092_v63 = vpop.eup %1091 }
 0x204   :  { %588 = vmatpush.msrb.mxu1 %v1317_v8  ;;  %v285_v0 = vadd.f32 1.0, %v1092_v63 }
 0x206   :  { %589 = vmatpush.msrb.mxu1 %v1324_v10  ;;  %1093 = vrcp.f32 %v285_v0  ;;  %v297_v57 = vand.u32 2147483648, %v285_v0  ;;  %vm291_vm13 = vweird.f32 %v285_v0  ;;  %v295_v60 = vand.u32 2147483647, %v285_v0 }
 0x208   :  { %590 = vmatpush.msrb.mxu1 %v1331_v12  ;;  %v298_v50 = vor.u32 1.1754944e-38, %v297_v57  ;;  %vm296_vm15 = vcmp.eq.f32.partialorder %v295_v60, 8.507059e+37 }
 0x20a   :  { %591 = vmatpush.msrb.mxu1 %v1338_v14 }
 0x20c   :  { %592 = vmatpush.msrb.mxu1 %v1345_v16  ;;  %v1094_v51 = vpop.eup %1093 }
 0x20d   :  { %v287_v52 = vmul.f32 %v1094_v51, %v285_v0  ;;  %vm292_vm12 = vweird.f32 %v1094_v51 }
 0x20e   :  { %593 = vmatpush.msrb.mxu1 %v1352_v18  ;;  %vm293_vm14 = vmor %vm291_vm13, %vm292_vm12 }
 0x20f   :  { %v288_v53 = vsub.f32 1.0, %v287_v52 }
 0x210   :  { %594 = vmatpush.msrb.mxu1 %v1359_v20 }
 0x211   :  { %v289_v54 = vmul.f32 %v1094_v51, %v288_v53 }
 0x212   :  { %595 = vmatpush.msrb.mxu1 %v1366_v22 }
 0x213   :  { %v290_v56 = vadd.f32 %v1094_v51, %v289_v54 }
 0x214   :  { %596 = vmatpush.msrb.mxu1 %v1373_v24 }
 0x216   :  { %597 = vmatpush.msrb.mxu1 %v1380_v26 }
 0x218   :  { %598 = vmatpush.msrb.mxu1 %v1387_v28 }
 0x21a   :  { %599 = vmatpush.msrb.mxu1 %v1878_v61  ;;  %v294_v61 = vsel %vm293_vm14, %v1094_v51, %v290_v56 }
 0x21b   :  { %v299_v58 = vsel %vm296_vm15, %v298_v50, %v294_v61 }
 0x21c   :  { %600 = vmatpush.msrb.mxu1 %v1879_v32  ;;  %v327_v59 = vsub.f32 1.0, %v299_v58  ;;  %v326_v63 = vmul.f32 %v299_v58, %v1581_v31  ;;  %v1046_v31 = vld [vmem:[%s1864_s0 + $0xc] sm:$0x3f] }
 0x21e   :  { %601 = vmatpush.msrb.mxu1 %v1880_v33 }
 0x27c   :  { %v319_v32 = vpop.f32.mrf.mxu1 }
 0x27d   :  { %v324_v33 = vadd.f32 %v322_v55, %v319_v32 }
 0x27f   :  { %1095 = vtanh.f32 %v324_v33 }
 0x285   :  { %v1096_v62 = vpop.eup %1095 }
 0x286   :  { %v328_v52 = vmul.f32 %v1096_v62, %v327_v59 }
 0x288   :  { %v1642_v53 = vadd.f32 %v328_v52, %v326_v63 }
 0x28a   :  { %1045 = vst [vmem:[%s1867_s3 + $0x2] sm:$0x3] %v1642_v53  ;;  %350 = vmatmul.f32.vlgmr.msrb.gmra.mxu2 %v1642_v53  ;;  %370 = vmatmul.f32.vlgmr.msrb.gmra.mxu3 %v1642_v53 }
 0x28b   :  { %650 = vmatpush.msrb.mxu2 %v1438_v34  ;;  %682 = vmatpush.msrb.mxu3 %v1295_v1 }
 0x28d   :  { %651 = vmatpush.msrb.mxu2 %v1444_v35  ;;  %683 = vmatpush.msrb.mxu3 %v1297_v2 }
 0x28f   :  { %652 = vmatpush.msrb.mxu2 %v1449_v36  ;;  %684 = vmatpush.msrb.mxu3 %v1301_v3 }
 0x291   :  { %653 = vmatpush.msrb.mxu2 %v1455_v37  ;;  %685 = vmatpush.msrb.mxu3 %v1305_v4 }
 0x293   :  { %654 = vmatpush.msrb.mxu2 %v1460_v38  ;;  %686 = vmatpush.msrb.mxu3 %v1311_v6 }
 0x295   :  { %655 = vmatpush.msrb.mxu2 %v1465_v39  ;;  %687 = vmatpush.msrb.mxu3 %v1320_v9 }
 0x297   :  { %656 = vmatpush.msrb.mxu2 %v1470_v40  ;;  %688 = vmatpush.msrb.mxu3 %v1327_v11 }
 0x299   :  { %657 = vmatpush.msrb.mxu2 %v1474_v41  ;;  %689 = vmatpush.msrb.mxu3 %v1334_v13 }
 0x29b   :  { %658 = vmatpush.msrb.mxu2 %v1477_v42  ;;  %690 = vmatpush.msrb.mxu3 %v1341_v15 }
 0x29d   :  { %659 = vmatpush.msrb.mxu2 %v1482_v43  ;;  %691 = vmatpush.msrb.mxu3 %v1348_v17 }
 0x29f   :  { %660 = vmatpush.msrb.mxu2 %v1487_v44  ;;  %692 = vmatpush.msrb.mxu3 %v1355_v19 }
 0x2a1   :  { %661 = vmatpush.msrb.mxu2 %v1492_v45  ;;  %693 = vmatpush.msrb.mxu3 %v1362_v21 }
 0x2a3   :  { %662 = vmatpush.msrb.mxu2 %v1497_v46  ;;  %694 = vmatpush.msrb.mxu3 %v1369_v23 }
 0x2a5   :  { %663 = vmatpush.msrb.mxu2 %v1502_v47  ;;  %695 = vmatpush.msrb.mxu3 %v1376_v25 }
 0x2a7   :  { %664 = vmatpush.msrb.mxu2 %v1507_v48  ;;  %696 = vmatpush.msrb.mxu3 %v1383_v27 }
 0x2a9   :  { %665 = vmatpush.msrb.mxu2 %v1512_v49  ;;  %697 = vmatpush.msrb.mxu3 %v1390_v29 }
 0x30d   :  { %v351_v30 = vpop.f32.mrf.mxu2 }
 0x30e   :  { %v374_v61 = vadd.f32 %v1046_v31, %v351_v30 }
 0x310   :  { %v1047_v32 = vmul.f32 -1.442695, %v374_v61 }
 0x312   :  { %1097 = vpow2.f32 %v1047_v32  ;;  %v438_v32 = vrot.slane %v1046_v31, 4 }
 0x318   :  { %v1098_v33 = vpop.eup %1097 }
 0x319   :  { %v378_v0 = vadd.f32 1.0, %v1098_v33 }
 0x31b   :  { %1099 = vrcp.f32 %v378_v0  ;;  %v390_v56 = vand.u32 2147483648, %v378_v0  ;;  %v388_v60 = vand.u32 2147483647, %v378_v0  ;;  %vm384_vm1 = vweird.f32 %v378_v0 }
 0x31d   :  { %v391_v58 = vor.u32 1.1754944e-38, %v390_v56  ;;  %vm389_vm3 = vcmp.eq.f32.partialorder %v388_v60, 8.507059e+37 }
 0x321   :  { %v1100_v51 = vpop.eup %1099 }
 0x322   :  { %v380_v54 = vmul.f32 %v1100_v51, %v378_v0  ;;  %vm385_vm0 = vweird.f32 %v1100_v51 }
 0x323   :  { %vm386_vm2 = vmor %vm384_vm1, %vm385_vm0 }
 0x324   :  { %v381_v55 = vsub.f32 1.0, %v380_v54 }
 0x326   :  { %v382_v57 = vmul.f32 %v1100_v51, %v381_v55 }
 0x328   :  { %v383_v50 = vadd.f32 %v1100_v51, %v382_v57 }
 0x32a   :  { %v387_v59 = vsel %vm386_vm2, %v1100_v51, %v383_v50 }
 0x32b   :  { %v392_v62 = vsel %vm389_vm3, %v391_v58, %v387_v59 }
 0x32c   :  { %v417_v63 = vmul.f32 %v392_v62, %v1642_v53 }
 0x32e   :  { %434 = vmatmul.f32.vlgmr.msra.gmra.mxu0 %v417_v63 }
 0x32f   :  { %702 = vmatpush.msra.mxu0 %v1308_v5  ;;  %v1881_v5 = vld [vmem:[#allocation9_spill] sm:$0xff] }
 0x331   :  { %703 = vmatpush.msra.mxu0 %v1314_v7  ;;  %v1882_v7 = vld [vmem:[#allocation10_spill] sm:$0xff] }
 0x333   :  { %704 = vmatpush.msra.mxu0 %v1317_v8  ;;  %v1883_v8 = vld [vmem:[#allocation11_spill] sm:$0xff] }
 0x335   :  { %705 = vmatpush.msra.mxu0 %v1324_v10  ;;  %v395_v10 = vrot.slane %v1046_v31, 2  ;;  %v1750_v31 = vld [vmem:[#allocation3 + $0xf8] sm:$0xff] }
 0x337   :  { %706 = vmatpush.msra.mxu0 %v1331_v12  ;;  %v371_v12 = vpop.f32.mrf.mxu3 }
 0x339   :  { %707 = vmatpush.msra.mxu0 %v1338_v14  ;;  %v397_v14 = vadd.f32 %v395_v10, %v371_v12  ;;  %v1753_v10 = vld [vmem:[#allocation3 + $0xe8] sm:$0xff]  ;;  %v1756_v12 = vld [vmem:[#allocation3 + $0xd8] sm:$0xff] }
 0x33b   :  { %708 = vmatpush.msra.mxu0 %v1345_v16  ;;  %v1048_v16 = vmul.f32 -1.442695, %v397_v14  ;;  %v1759_v14 = vld [vmem:[#allocation3 + $0xc8] sm:$0xff] }
 0x33d   :  { %709 = vmatpush.msra.mxu0 %v1352_v18  ;;  %1101 = vpow2.f32 %v1048_v16  ;;  %v1762_v16 = vld [vmem:[#allocation3 + $0xb8] sm:$0xff] }
 0x33f   :  { %710 = vmatpush.msra.mxu0 %v1359_v20 }
 0x341   :  { %711 = vmatpush.msra.mxu0 %v1366_v22 }
 0x343   :  { %712 = vmatpush.msra.mxu0 %v1373_v24  ;;  %v1102_v18 = vpop.eup %1101 }
 0x344   :  { %v401_v20 = vadd.f32 1.0, %v1102_v18  ;;  %v1765_v18 = vld [vmem:[#allocation3 + $0xa8] sm:$0xff] }
 0x345   :  { %713 = vmatpush.msra.mxu0 %v1380_v26 }
 0x346   :  { %1103 = vrcp.f32 %v401_v20  ;;  %v413_v0 = vand.u32 2147483648, %v401_v20  ;;  %vm407_vm5 = vweird.f32 %v401_v20  ;;  %v411_v51 = vand.u32 2147483647, %v401_v20 }
 0x347   :  { %714 = vmatpush.msra.mxu0 %v1387_v28 }
 0x348   :  { %v414_v57 = vor.u32 1.1754944e-38, %v413_v0  ;;  %vm412_vm7 = vcmp.eq.f32.partialorder %v411_v51, 8.507059e+37 }
 0x349   :  { %715 = vmatpush.msra.mxu0 %v1881_v5 }
 0x34b   :  { %716 = vmatpush.msra.mxu0 %v1882_v7 }
 0x34c   :  { %v1104_v22 = vpop.eup %1103 }
 0x34d   :  { %717 = vmatpush.msra.mxu0 %v1883_v8  ;;  %v403_v52 = vmul.f32 %v1104_v22, %v401_v20  ;;  %vm408_vm4 = vweird.f32 %v1104_v22  ;;  %v1768_v20 = vld [vmem:[#allocation3 + $0x98] sm:$0xff] }
 0x34e   :  { %vm409_vm6 = vmor %vm407_vm5, %vm408_vm4 }
 0x34f   :  { %v404_v30 = vsub.f32 1.0, %v403_v52  ;;  %v1774_v52 = vld [vmem:[#allocation3 + $0x78] sm:$0xff] }
 0x351   :  { %v405_v61 = vmul.f32 %v1104_v22, %v404_v30  ;;  %v1777_v30 = vld [vmem:[#allocation3 + $0x68] sm:$0xff] }
 0x353   :  { %v406_v33 = vadd.f32 %v1104_v22, %v405_v61 }
 0x355   :  { %v410_v56 = vsel %vm409_vm6, %v1104_v22, %v406_v33  ;;  %v1771_v22 = vld [vmem:[#allocation3 + $0x88] sm:$0xff] }
 0x356   :  { %v415_v60 = vsel %vm412_vm7, %v414_v57, %v410_v56 }
 0x357   :  { %v443_v50 = vsub.f32 1.0, %v415_v60  ;;  %v442_v59 = vmul.f32 %v415_v60, %v1642_v53 }
 0x3ab   :  { %v435_v54 = vpop.f32.mrf.mxu0 }
 0x3ac   :  { %v440_v55 = vadd.f32 %v438_v32, %v435_v54 }
 0x3ae   :  { %1105 = vtanh.f32 %v440_v55 }
 0x3b4   :  { %v1106_v58 = vpop.eup %1105 }
 0x3b5   :  { %v444_v62 = vmul.f32 %v1106_v58, %v443_v50 }
 0x3b7   :  { %v1703_v63 = vadd.f32 %v444_v62, %v442_v59 }
 0x3b9   :  { %1049 = vst [vmem:[%s1867_s3 + $0x4] sm:$0x3] %v1703_v63  ;;  %466 = vmatmul.f32.vlgmr.msra.gmra.mxu1 %v1703_v63  ;;  %486 = vmatmul.f32.vlgmr.msra.gmra.mxu2 %v1703_v63 }
 0x3ba   :  { %766 = vmatpush.msra.mxu1 %v1438_v34  ;;  %798 = vmatpush.msra.mxu2 %v1295_v1  ;;  %v1746_v1 = vld [vmem:[%s1864_s0 + $0x12] sm:$0x3f] }
 0x3bb   :  { %v511_v61 = vrot.slane %v1746_v1, 2 }
 0x3bc   :  { %767 = vmatpush.msra.mxu1 %v1444_v35  ;;  %799 = vmatpush.msra.mxu2 %v1297_v2 }
 0x3be   :  { %768 = vmatpush.msra.mxu1 %v1449_v36  ;;  %800 = vmatpush.msra.mxu2 %v1301_v3 }
 0x3c0   :  { %769 = vmatpush.msra.mxu1 %v1455_v37  ;;  %801 = vmatpush.msra.mxu2 %v1305_v4 }
 0x3c2   :  { %770 = vmatpush.msra.mxu1 %v1460_v38  ;;  %802 = vmatpush.msra.mxu2 %v1311_v6 }
 0x3c4   :  { %771 = vmatpush.msra.mxu1 %v1465_v39  ;;  %803 = vmatpush.msra.mxu2 %v1320_v9 }
 0x3c6   :  { %772 = vmatpush.msra.mxu1 %v1470_v40  ;;  %804 = vmatpush.msra.mxu2 %v1327_v11 }
 0x3c8   :  { %773 = vmatpush.msra.mxu1 %v1474_v41  ;;  %805 = vmatpush.msra.mxu2 %v1334_v13 }
 0x3ca   :  { %774 = vmatpush.msra.mxu1 %v1477_v42  ;;  %806 = vmatpush.msra.mxu2 %v1341_v15 }
 0x3cc   :  { %775 = vmatpush.msra.mxu1 %v1482_v43  ;;  %807 = vmatpush.msra.mxu2 %v1348_v17 }
 0x3ce   :  { %776 = vmatpush.msra.mxu1 %v1487_v44  ;;  %808 = vmatpush.msra.mxu2 %v1355_v19 }
 0x3d0   :  { %777 = vmatpush.msra.mxu1 %v1492_v45  ;;  %809 = vmatpush.msra.mxu2 %v1362_v21 }
 0x3d2   :  { %778 = vmatpush.msra.mxu1 %v1497_v46  ;;  %810 = vmatpush.msra.mxu2 %v1369_v23 }
 0x3d4   :  { %779 = vmatpush.msra.mxu1 %v1502_v47  ;;  %811 = vmatpush.msra.mxu2 %v1376_v25 }
 0x3d6   :  { %780 = vmatpush.msra.mxu1 %v1507_v48  ;;  %812 = vmatpush.msra.mxu2 %v1383_v27 }
 0x3d8   :  { %781 = vmatpush.msra.mxu1 %v1512_v49  ;;  %813 = vmatpush.msra.mxu2 %v1390_v29 }
 0x436   :  { %v467_v2 = vpop.f32.mrf.mxu1 }
 0x437   :  { %v490_v3 = vadd.f32 %v1746_v1, %v467_v2 }
 0x439   :  { %v1051_v4 = vmul.f32 -1.442695, %v490_v3 }
 0x43b   :  { %1107 = vpow2.f32 %v1051_v4 }
 0x43c   :  { %v487_v32 = vpop.f32.mrf.mxu2 }
 0x43d   :  { %v513_v33 = vadd.f32 %v511_v61, %v487_v32 }
 0x43f   :  { %v1052_v0 = vmul.f32 -1.442695, %v513_v33 }
 0x441   :  { %v1108_v6 = vpop.eup %1107 }
 0x442   :  { %v494_v9 = vadd.f32 1.0, %v1108_v6 }
 0x444   :  { %1109 = vrcp.f32 %v494_v9  ;;  %v506_v17 = vand.u32 2147483648, %v494_v9  ;;  %v504_v21 = vand.u32 2147483647, %v494_v9  ;;  %vm500_vm9 = vweird.f32 %v494_v9 }
 0x445   :  { %1111 = vpow2.f32 %v1052_v0  ;;  %v1183_v0 = vld [vmem:[#allocation3 + $0x58] sm:$0xff] }
 0x446   :  { %v507_v25 = vor.u32 1.1754944e-38, %v506_v17  ;;  %vm505_vm11 = vcmp.eq.f32.partialorder %v504_v21, 8.507059e+37 }
 0x44a   :  { %v1110_v11 = vpop.eup %1109 }
 0x44b   :  { %v496_v13 = vmul.f32 %v1110_v11, %v494_v9  ;;  %vm501_vm8 = vweird.f32 %v1110_v11  ;;  %v1112_v51 = vpop.eup %1111  ;;  %v1168_v9 = vld [vmem:[#allocation3 + $0xe0] sm:$0xff] }
 0x44c   :  { %vm502_vm10 = vmor %vm500_vm9, %vm501_vm8  ;;  %v517_v54 = vadd.f32 1.0, %v1112_v51 }
 0x44d   :  { %v497_v15 = vsub.f32 1.0, %v496_v13  ;;  %v1171_v13 = vld [vmem:[#allocation3 + $0xb0] sm:$0xff] }
 0x44e   :  { %1113 = vrcp.f32 %v517_v54  ;;  %vm523_vm13 = vweird.f32 %v517_v54 }
 0x44f   :  { %v498_v19 = vmul.f32 %v1110_v11, %v497_v15 }
 0x451   :  { %v499_v23 = vadd.f32 %v1110_v11, %v498_v19 }
 0x453   :  { %v503_v27 = vsel %vm502_vm10, %v1110_v11, %v499_v23  ;;  %v1170_v11 = vld [vmem:[#allocation3 + $0xc0] sm:$0xff] }
 0x454   :  { %v508_v29 = vsel %vm505_vm11, %v507_v25, %v503_v27 }
 0x455   :  { %v533_v53 = vmul.f32 %v508_v29, %v1703_v63 }
 0x457   :  { %550 = vmatmul.f32.vlgmr.msra.gmra.mxu3 %v533_v53 }
 0x458   :  { %818 = vmatpush.msra.mxu3 %v1750_v31 }
 0x45a   :  { %819 = vmatpush.msra.mxu3 %v1753_v10 }
 0x45c   :  { %820 = vmatpush.msra.mxu3 %v1756_v12 }
 0x45e   :  { %821 = vmatpush.msra.mxu3 %v1759_v14 }
 0x460   :  { %822 = vmatpush.msra.mxu3 %v1762_v16 }
 0x462   :  { %823 = vmatpush.msra.mxu3 %v1765_v18 }
 0x464   :  { %824 = vmatpush.msra.mxu3 %v1768_v20 }
 0x466   :  { %825 = vmatpush.msra.mxu3 %v1771_v22 }
 0x468   :  { %826 = vmatpush.msra.mxu3 %v1774_v52 }
 0x46a   :  { %827 = vmatpush.msra.mxu3 %v1777_v30 }
 0x46c   :  { %828 = vmatpush.msra.mxu3 %v1373_v24  ;;  %v1114_v24 = vpop.eup %1113 }
 0x46d   :  { %v519_v55 = vmul.f32 %v1114_v24, %v517_v54  ;;  %vm524_vm12 = vweird.f32 %v1114_v24 }
 0x46e   :  { %829 = vmatpush.msra.mxu3 %v1380_v26  ;;  %vm525_vm14 = vmor %vm523_vm13, %vm524_vm12 }
 0x46f   :  { %v520_v26 = vsub.f32 1.0, %v519_v55 }
 0x470   :  { %830 = vmatpush.msra.mxu3 %v1387_v28  ;;  %v554_v28 = vrot.slane %v1746_v1, 4  ;;  %v1167_v1 = vld [vmem:[#allocation3 + $0xf0] sm:$0xff] }
 0x471   :  { %v521_v56 = vmul.f32 %v1114_v24, %v520_v26 }
 0x472   :  { %831 = vmatpush.msra.mxu3 %v1881_v5 }
 0x473   :  { %v522_v5 = vadd.f32 %v1114_v24, %v521_v56 }
 0x474   :  { %832 = vmatpush.msra.mxu3 %v1882_v7  ;;  %v529_v7 = vand.u32 2147483648, %v517_v54 }
 0x475   :  { %v526_v50 = vsel %vm525_vm14, %v1114_v24, %v522_v5 }
 0x476   :  { %833 = vmatpush.msra.mxu3 %v1883_v8  ;;  %v527_v8 = vand.u32 2147483647, %v517_v54  ;;  %v530_v58 = vor.u32 1.1754944e-38, %v529_v7 }
 0x478   :  { %vm528_vm15 = vcmp.eq.f32.partialorder %v527_v8, 8.507059e+37 }
 0x479   :  { %v531_v59 = vsel %vm528_vm15, %v530_v58, %v526_v50 }
 0x47a   :  { %v559_v62 = vsub.f32 1.0, %v531_v59  ;;  %v558_v3 = vmul.f32 %v531_v59, %v1703_v63  ;;  %v1169_v63 = vld [vmem:[#allocation3 + $0xd0] sm:$0xff] }
 0x4da   :  { %v551_v57 = vpop.f32.mrf.mxu3 }
 0x4db   :  { %v556_v60 = vadd.f32 %v554_v28, %v551_v57 }
 0x4dd   :  { %1115 = vtanh.f32 %v556_v60 }
 0x4e3   :  { %v1116_v2 = vpop.eup %1115 }
 0x4e4   :  { %v560_v4 = vmul.f32 %v1116_v2, %v559_v62 }
 0x4e6   :  { %v1789_v6 = vadd.f32 %v560_v4, %v558_v3 }
 0x4e8   :  { %1053 = vst [vmem:[%s1867_s3 + $0x6] sm:$0x3] %v1789_v6  ;;  %582 = vmatmul.f32.vlgmr.msrb.gmra.mxu0 %v1789_v6  ;;  %602 = vmatmul.f32.vlgmr.msrb.gmra.mxu1 %v1789_v6 }
 0x4e9   :  { %882 = vmatpush.msrb.mxu0 %v1438_v34  ;;  %914 = vmatpush.msrb.mxu1 %v1167_v1  ;;  %v1172_v34 = vld [vmem:[#allocation3 + $0xa0] sm:$0xff]  ;;  %v1189_v1 = vld [vmem:[#allocation5 + $0x78] sm:$0xff] }
 0x4eb   :  { %883 = vmatpush.msrb.mxu0 %v1444_v35  ;;  %915 = vmatpush.msrb.mxu1 %v1168_v9  ;;  %v1173_v35 = vld [vmem:[#allocation3 + $0x90] sm:$0xff] }
 0x4ec   :  { %v1190_v9 = vld [vmem:[#allocation5 + $0x70] sm:$0xff] }
 0x4ed   :  { %884 = vmatpush.msrb.mxu0 %v1449_v36  ;;  %916 = vmatpush.msrb.mxu1 %v1169_v63  ;;  %v1174_v36 = vld [vmem:[#allocation3 + $0x80] sm:$0xff]  ;;  %v1191_v63 = vld [vmem:[#allocation5 + $0x68] sm:$0xff] }
 0x4ef   :  { %885 = vmatpush.msrb.mxu0 %v1455_v37  ;;  %917 = vmatpush.msrb.mxu1 %v1170_v11  ;;  %v1175_v37 = vld [vmem:[#allocation3 + $0x70] sm:$0xff]  ;;  %v1192_v11 = vld [vmem:[#allocation5 + $0x60] sm:$0xff] }
 0x4f1   :  { %886 = vmatpush.msrb.mxu0 %v1460_v38  ;;  %918 = vmatpush.msrb.mxu1 %v1171_v13  ;;  %v1176_v38 = vld [vmem:[#allocation3 + $0x60] sm:$0xff]  ;;  %v1194_v13 = vld [vmem:[#allocation5 + $0x50] sm:$0xff] }
 0x4f3   :  { %887 = vmatpush.msrb.mxu0 %v1465_v39  ;;  %919 = vmatpush.msrb.mxu1 %v1172_v34  ;;  %v1177_v39 = vld [vmem:[#allocation3 + $0x50] sm:$0xff]  ;;  %v1195_v34 = vld [vmem:[#allocation5 + $0x48] sm:$0xff] }
 0x4f5   :  { %888 = vmatpush.msrb.mxu0 %v1470_v40  ;;  %920 = vmatpush.msrb.mxu1 %v1173_v35  ;;  %v1178_v40 = vld [vmem:[#allocation3 + $0x40] sm:$0xff] }
 0x4f6   :  { %v1196_v35 = vld [vmem:[#allocation5 + $0x40] sm:$0xff] }
 0x4f7   :  { %889 = vmatpush.msrb.mxu0 %v1474_v41  ;;  %921 = vmatpush.msrb.mxu1 %v1174_v36  ;;  %v1179_v41 = vld [vmem:[#allocation3 + $0x30] sm:$0xff]  ;;  %v1197_v36 = vld [vmem:[#allocation5 + $0x38] sm:$0xff] }
 0x4f9   :  { %890 = vmatpush.msrb.mxu0 %v1477_v42  ;;  %922 = vmatpush.msrb.mxu1 %v1175_v37  ;;  %v1180_v42 = vld [vmem:[#allocation3 + $0x20] sm:$0xff]  ;;  %v1198_v37 = vld [vmem:[#allocation5 + $0x30] sm:$0xff] }
 0x4fb   :  { %891 = vmatpush.msrb.mxu0 %v1482_v43  ;;  %923 = vmatpush.msrb.mxu1 %v1176_v38  ;;  %v1181_v43 = vld [vmem:[#allocation3 + $0x10] sm:$0xff]  ;;  %v1199_v38 = vld [vmem:[#allocation5 + $0x28] sm:$0xff] }
 0x4fd   :  { %892 = vmatpush.msrb.mxu0 %v1487_v44  ;;  %924 = vmatpush.msrb.mxu1 %v1177_v39  ;;  %v1182_v44 = vld [vmem:[#allocation3] sm:$0xff] }
 0x4fe   :  { %v1200_v39 = vld [vmem:[#allocation5 + $0x20] sm:$0xff] }
 0x4ff   :  { %893 = vmatpush.msrb.mxu0 %v1492_v45  ;;  %925 = vmatpush.msrb.mxu1 %v1178_v40  ;;  %v1816_v45 = vld [vmem:[%s1864_s0 + $0x18] sm:$0x3f] }
 0x500   :  { %v670_v56 = vrot.slane %v1816_v45, 4  ;;  %v1201_v40 = vld [vmem:[#allocation5 + $0x18] sm:$0xff] }
 0x501   :  { %894 = vmatpush.msrb.mxu0 %v1497_v46  ;;  %926 = vmatpush.msrb.mxu1 %v1179_v41  ;;  %v1202_v41 = vld [vmem:[#allocation5 + $0x10] sm:$0xff] }
 0x503   :  { %895 = vmatpush.msrb.mxu0 %v1502_v47  ;;  %927 = vmatpush.msrb.mxu1 %v1180_v42  ;;  %v1203_v42 = vld [vmem:[#allocation5 + $0x8] sm:$0xff] }
 0x505   :  { %896 = vmatpush.msrb.mxu0 %v1507_v48  ;;  %928 = vmatpush.msrb.mxu1 %v1181_v43  ;;  %v1204_v43 = vld [vmem:[#allocation5] sm:$0xff] }
 0x507   :  { %897 = vmatpush.msrb.mxu0 %v1512_v49  ;;  %929 = vmatpush.msrb.mxu1 %v1182_v44  ;;  %v1058_v44 = vld [vmem:[%s1864_s0 + $0x1e] sm:$0x3f] }
 0x565   :  { %v583_v46 = vpop.f32.mrf.mxu0 }
 0x566   :  { %v606_v15 = vadd.f32 %v1816_v45, %v583_v46 }
 0x568   :  { %v1055_v17 = vmul.f32 -1.442695, %v606_v15 }
 0x56a   :  { %1117 = vpow2.f32 %v1055_v17 }
 0x570   :  { %v1118_v47 = vpop.eup %1117 }
 0x571   :  { %v610_v19 = vadd.f32 1.0, %v1118_v47 }
 0x573   :  { %1119 = vrcp.f32 %v610_v19  ;;  %v622_v25 = vand.u32 2147483648, %v610_v19  ;;  %v620_v27 = vand.u32 2147483647, %v610_v19  ;;  %vm616_vm1 = vweird.f32 %v610_v19 }
 0x575   :  { %v623_v53 = vor.u32 1.1754944e-38, %v622_v25  ;;  %vm621_vm3 = vcmp.eq.f32.partialorder %v620_v27, 8.507059e+37 }
 0x579   :  { %v1120_v48 = vpop.eup %1119 }
 0x57a   :  { %v612_v21 = vmul.f32 %v1120_v48, %v610_v19  ;;  %vm617_vm0 = vweird.f32 %v1120_v48 }
 0x57b   :  { %vm618_vm2 = vmor %vm616_vm1, %vm617_vm0 }
 0x57c   :  { %v613_v23 = vsub.f32 1.0, %v612_v21 }
 0x57e   :  { %v614_v49 = vmul.f32 %v1120_v48, %v613_v23 }
 0x580   :  { %v615_v29 = vadd.f32 %v1120_v48, %v614_v49 }
 0x582   :  { %v619_v61 = vsel %vm618_vm2, %v1120_v48, %v615_v29 }
 0x583   :  { %v624_v32 = vsel %vm621_vm3, %v623_v53, %v619_v61 }
 0x584   :  { %v649_v33 = vmul.f32 %v624_v32, %v1789_v6 }
 0x586   :  { %666 = vmatmul.f32.vlgmr.msrb.gmra.mxu2 %v649_v33  ;;  %v743_v33 = vrot.slane %v1058_v44, 2 }
 0x587   :  { %934 = vmatpush.msrb.mxu2 %v1750_v31  ;;  %v1184_v31 = vld [vmem:[#allocation3 + $0x48] sm:$0xff] }
 0x589   :  { %935 = vmatpush.msrb.mxu2 %v1753_v10  ;;  %v1185_v10 = vld [vmem:[#allocation3 + $0x38] sm:$0xff] }
 0x58b   :  { %936 = vmatpush.msrb.mxu2 %v1756_v12  ;;  %v1186_v12 = vld [vmem:[#allocation3 + $0x28] sm:$0xff] }
 0x58d   :  { %937 = vmatpush.msrb.mxu2 %v1759_v14  ;;  %v1187_v14 = vld [vmem:[#allocation3 + $0x18] sm:$0xff] }
 0x58f   :  { %938 = vmatpush.msrb.mxu2 %v1762_v16  ;;  %v1188_v16 = vld [vmem:[#allocation3 + $0x8] sm:$0xff] }
 0x591   :  { %939 = vmatpush.msrb.mxu2 %v1765_v18  ;;  %v627_v18 = vrot.slane %v1816_v45, 2 }
 0x593   :  { %940 = vmatpush.msrb.mxu2 %v1768_v20  ;;  %v603_v20 = vpop.f32.mrf.mxu1 }
 0x595   :  { %941 = vmatpush.msrb.mxu2 %v1771_v22  ;;  %v629_v22 = vadd.f32 %v627_v18, %v603_v20 }
 0x597   :  { %942 = vmatpush.msrb.mxu2 %v1774_v52  ;;  %v1056_v51 = vmul.f32 -1.442695, %v629_v22 }
 0x599   :  { %943 = vmatpush.msrb.mxu2 %v1777_v30  ;;  %1121 = vpow2.f32 %v1056_v51  ;;  %v786_v51 = vrot.slane %v1058_v44, 4 }
 0x59b   :  { %944 = vmatpush.msrb.mxu2 %v1183_v0 }
 0x59d   :  { %945 = vmatpush.msrb.mxu2 %v1184_v31 }
 0x59f   :  { %946 = vmatpush.msrb.mxu2 %v1185_v10  ;;  %v1122_v52 = vpop.eup %1121 }
 0x5a0   :  { %v633_v30 = vadd.f32 1.0, %v1122_v52 }
 0x5a1   :  { %947 = vmatpush.msrb.mxu2 %v1186_v12 }
 0x5a2   :  { %1123 = vrcp.f32 %v633_v30  ;;  %v645_v5 = vand.u32 2147483648, %v633_v30  ;;  %vm639_vm5 = vweird.f32 %v633_v30  ;;  %v643_v7 = vand.u32 2147483647, %v633_v30 }
 0x5a3   :  { %948 = vmatpush.msrb.mxu2 %v1187_v14 }
 0x5a4   :  { %v646_v50 = vor.u32 1.1754944e-38, %v645_v5  ;;  %vm644_vm7 = vcmp.eq.f32.partialorder %v643_v7, 8.507059e+37 }
 0x5a5   :  { %949 = vmatpush.msrb.mxu2 %v1188_v16 }
 0x5a8   :  { %v1124_v54 = vpop.eup %1123 }
 0x5a9   :  { %v635_v24 = vmul.f32 %v1124_v54, %v633_v30  ;;  %vm640_vm4 = vweird.f32 %v1124_v54 }
 0x5aa   :  { %vm641_vm6 = vmor %vm639_vm5, %vm640_vm4 }
 0x5ab   :  { %v636_v55 = vsub.f32 1.0, %v635_v24 }
 0x5ad   :  { %v637_v26 = vmul.f32 %v1124_v54, %v636_v55 }
 0x5af   :  { %v638_v28 = vadd.f32 %v1124_v54, %v637_v26 }
 0x5b1   :  { %v642_v60 = vsel %vm641_vm6, %v1124_v54, %v638_v28 }
 0x5b2   :  { %v647_v58 = vsel %vm644_vm7, %v646_v50, %v642_v60  ;;  %v1062_v50 = vld [vmem:[%s1864_s0 + $0x24] sm:$0x3f] }
 0x5b3   :  { %v675_v59 = vsub.f32 1.0, %v647_v58  ;;  %v674_v2 = vmul.f32 %v647_v58, %v1789_v6  ;;  %v1193_v6 = vld [vmem:[#allocation5 + $0x58] sm:$0xff] }
 0x609   :  { %v667_v8 = vpop.f32.mrf.mxu2 }
 0x60a   :  { %v672_v57 = vadd.f32 %v670_v56, %v667_v8 }
 0x60c   :  { %1125 = vtanh.f32 %v672_v57 }
 0x612   :  { %v1126_v62 = vpop.eup %1125 }
 0x613   :  { %v676_v3 = vmul.f32 %v1126_v62, %v675_v59 }
 0x615   :  { %v1833_v4 = vadd.f32 %v676_v3, %v674_v2 }
 0x617   :  { %1057 = vst [vmem:[%s1867_s3 + $0x8] sm:$0x3] %v1833_v4  ;;  %698 = vmatmul.f32.vlgmr.msrb.gmra.mxu3 %v1833_v4  ;;  %718 = vmatmul.f32.vlgmr.msra.gmra.mxu0 %v1833_v4 }
 0x618   :  { %998 = vmatpush.msrb.mxu3 %v1189_v1 }
 0x61a   :  { %999 = vmatpush.msrb.mxu3 %v1190_v9 }
 0x61c   :  { %1000 = vmatpush.msrb.mxu3 %v1191_v63 }
 0x61e   :  { %1001 = vmatpush.msrb.mxu3 %v1192_v11 }
 0x620   :  { %1002 = vmatpush.msrb.mxu3 %v1193_v6 }
 0x622   :  { %1003 = vmatpush.msrb.mxu3 %v1194_v13 }
 0x624   :  { %1004 = vmatpush.msrb.mxu3 %v1195_v34 }
 0x626   :  { %1005 = vmatpush.msrb.mxu3 %v1196_v35 }
 0x628   :  { %1006 = vmatpush.msrb.mxu3 %v1197_v36 }
 0x62a   :  { %1007 = vmatpush.msrb.mxu3 %v1198_v37 }
 0x62c   :  { %1008 = vmatpush.msrb.mxu3 %v1199_v38  ;;  %v859_v38 = vrot.slane %v1062_v50, 2 }
 0x62e   :  { %1009 = vmatpush.msrb.mxu3 %v1200_v39 }
 0x630   :  { %1010 = vmatpush.msrb.mxu3 %v1201_v40 }
 0x632   :  { %1011 = vmatpush.msrb.mxu3 %v1202_v41 }
 0x634   :  { %1012 = vmatpush.msrb.mxu3 %v1203_v42 }
 0x636   :  { %1013 = vmatpush.msrb.mxu3 %v1204_v43 }
 0x694   :  { %v719_v0 = vpop.f32.mrf.mxu0 }
 0x695   :  { %v745_v31 = vadd.f32 %v743_v33, %v719_v0  ;;  %v1066_v0 = vld [vmem:[%s1864_s0 + $0x2a] sm:$0x3f] }
 0x697   :  { %v1060_v10 = vmul.f32 -1.442695, %v745_v31 }
 0x69a   :  { %v699_v45 = vpop.f32.mrf.mxu3 }
 0x69b   :  { %v722_v46 = vadd.f32 %v1058_v44, %v699_v45 }
 0x69d   :  { %v1059_v15 = vmul.f32 -1.442695, %v722_v46 }
 0x69f   :  { %1127 = vpow2.f32 %v1059_v15 }
 0x6a5   :  { %v1128_v17 = vpop.eup %1127 }
 0x6a6   :  { %v726_v47 = vadd.f32 1.0, %v1128_v17  ;;  %v902_v17 = vrot.slane %v1062_v50, 4 }
 0x6a8   :  { %1129 = vrcp.f32 %v726_v47  ;;  %v738_v23 = vand.u32 2147483648, %v726_v47  ;;  %v736_v49 = vand.u32 2147483647, %v726_v47  ;;  %vm732_vm9 = vweird.f32 %v726_v47 }
 0x6a9   :  { %1131 = vpow2.f32 %v1060_v10 }
 0x6aa   :  { %v739_v29 = vor.u32 1.1754944e-38, %v738_v23  ;;  %vm737_vm11 = vcmp.eq.f32.partialorder %v736_v49, 8.507059e+37 }
 0x6ae   :  { %v1130_v19 = vpop.eup %1129 }
 0x6af   :  { %v728_v48 = vmul.f32 %v1130_v19, %v726_v47  ;;  %vm733_vm8 = vweird.f32 %v1130_v19  ;;  %v1132_v12 = vpop.eup %1131 }
 0x6b0   :  { %vm734_vm10 = vmor %vm732_vm9, %vm733_vm8  ;;  %v749_v14 = vadd.f32 1.0, %v1132_v12 }
 0x6b1   :  { %v729_v21 = vsub.f32 1.0, %v728_v48 }
 0x6b2   :  { %1133 = vrcp.f32 %v749_v14  ;;  %v761_v30 = vand.u32 2147483648, %v749_v14  ;;  %vm755_vm13 = vweird.f32 %v749_v14  ;;  %v759_v54 = vand.u32 2147483647, %v749_v14 }
 0x6b3   :  { %v730_v25 = vmul.f32 %v1130_v19, %v729_v21 }
 0x6b4   :  { %v762_v56 = vor.u32 1.1754944e-38, %v761_v30  ;;  %vm760_vm15 = vcmp.eq.f32.partialorder %v759_v54, 8.507059e+37 }
 0x6b5   :  { %v731_v27 = vadd.f32 %v1130_v19, %v730_v25 }
 0x6b7   :  { %v735_v53 = vsel %vm734_vm10, %v1130_v19, %v731_v27 }
 0x6b8   :  { %v740_v61 = vsel %vm737_vm11, %v739_v29, %v735_v53  ;;  %v1134_v16 = vpop.eup %1133 }
 0x6b9   :  { %v765_v32 = vmul.f32 %v740_v61, %v1833_v4  ;;  %v751_v18 = vmul.f32 %v1134_v16, %v749_v14  ;;  %vm756_vm12 = vweird.f32 %v1134_v16 }
 0x6ba   :  { %vm757_vm14 = vmor %vm755_vm13, %vm756_vm12 }
 0x6bb   :  { %782 = vmatmul.f32.vlgmr.msra.gmra.mxu1 %v765_v32  ;;  %v752_v20 = vsub.f32 1.0, %v751_v18 }
 0x6bd   :  { %v753_v22 = vmul.f32 %v1134_v16, %v752_v20 }
 0x6bf   :  { %v754_v52 = vadd.f32 %v1134_v16, %v753_v22 }
 0x6c1   :  { %v758_v26 = vsel %vm757_vm14, %v1134_v16, %v754_v52 }
 0x6c2   :  { %v763_v28 = vsel %vm760_vm15, %v762_v56, %v758_v26 }
 0x6c3   :  { %v791_v5 = vsub.f32 1.0, %v763_v28  ;;  %v790_v8 = vmul.f32 %v763_v28, %v1833_v4  ;;  %v975_v28 = vrot.slane %v1066_v0, 2 }
 0x738   :  { %v783_v24 = vpop.f32.mrf.mxu1 }
 0x739   :  { %v788_v55 = vadd.f32 %v786_v51, %v783_v24 }
 0x73b   :  { %1135 = vtanh.f32 %v788_v55 }
 0x741   :  { %v1136_v7 = vpop.eup %1135 }
 0x742   :  { %v792_v57 = vmul.f32 %v1136_v7, %v791_v5 }
 0x744   :  { %v793_v60 = vadd.f32 %v792_v57, %v790_v8 }
 0x746   :  { %1061 = vst [vmem:[%s1867_s3 + $0xa] sm:$0x3] %v793_v60  ;;  %814 = vmatmul.f32.vlgmr.msra.gmra.mxu2 %v793_v60  ;;  %834 = vmatmul.f32.vlgmr.msra.gmra.mxu3 %v793_v60 }
 0x7c9   :  { %v815_v58 = vpop.f32.mrf.mxu2  ;;  %v835_v39 = vpop.f32.mrf.mxu3 }
 0x7ca   :  { %v838_v59 = vadd.f32 %v1062_v50, %v815_v58  ;;  %v861_v40 = vadd.f32 %v859_v38, %v835_v39 }
 0x7cc   :  { %v1063_v62 = vmul.f32 -1.442695, %v838_v59  ;;  %v1064_v41 = vmul.f32 -1.442695, %v861_v40 }
 0x7ce   :  { %1137 = vpow2.f32 %v1063_v62 }
 0x7d4   :  { %v1138_v2 = vpop.eup %1137 }
 0x7d5   :  { %v842_v3 = vadd.f32 1.0, %v1138_v2  ;;  %v1018_v2 = vrot.slane %v1066_v0, 4 }
 0x7d7   :  { %1139 = vrcp.f32 %v842_v3  ;;  %v854_v63 = vand.u32 2147483648, %v842_v3  ;;  %v852_v6 = vand.u32 2147483647, %v842_v3  ;;  %vm848_vm1 = vweird.f32 %v842_v3 }
 0x7d8   :  { %1141 = vpow2.f32 %v1064_v41 }
 0x7d9   :  { %v855_v34 = vor.u32 1.1754944e-38, %v854_v63  ;;  %vm853_vm3 = vcmp.eq.f32.partialorder %v852_v6, 8.507059e+37 }
 0x7dd   :  { %v1140_v4 = vpop.eup %1139 }
 0x7de   :  { %v844_v1 = vmul.f32 %v1140_v4, %v842_v3  ;;  %vm849_vm0 = vweird.f32 %v1140_v4  ;;  %v1142_v42 = vpop.eup %1141 }
 0x7df   :  { %vm850_vm2 = vmor %vm848_vm1, %vm849_vm0  ;;  %v865_v43 = vadd.f32 1.0, %v1142_v42 }
 0x7e0   :  { %v845_v9 = vsub.f32 1.0, %v844_v1 }
 0x7e1   :  { %1143 = vrcp.f32 %v865_v43  ;;  %v877_v19 = vand.u32 2147483648, %v865_v43  ;;  %vm871_vm5 = vweird.f32 %v865_v43  ;;  %v875_v48 = vand.u32 2147483647, %v865_v43 }
 0x7e2   :  { %v846_v11 = vmul.f32 %v1140_v4, %v845_v9 }
 0x7e3   :  { %v878_v49 = vor.u32 1.1754944e-38, %v877_v19  ;;  %vm876_vm7 = vcmp.eq.f32.partialorder %v875_v48, 8.507059e+37 }
 0x7e4   :  { %v847_v13 = vadd.f32 %v1140_v4, %v846_v11 }
 0x7e6   :  { %v851_v35 = vsel %vm850_vm2, %v1140_v4, %v847_v13 }
 0x7e7   :  { %v856_v36 = vsel %vm853_vm3, %v855_v34, %v851_v35  ;;  %v1144_v44 = vpop.eup %1143 }
 0x7e8   :  { %v881_v37 = vmul.f32 %v856_v36, %v793_v60  ;;  %v867_v45 = vmul.f32 %v1144_v44, %v865_v43  ;;  %vm872_vm4 = vweird.f32 %v1144_v44 }
 0x7e9   :  { %vm873_vm6 = vmor %vm871_vm5, %vm872_vm4 }
 0x7ea   :  { %898 = vmatmul.f32.vlgmr.msrb.gmra.mxu0 %v881_v37  ;;  %v868_v46 = vsub.f32 1.0, %v867_v45 }
 0x7ec   :  { %v869_v15 = vmul.f32 %v1144_v44, %v868_v46 }
 0x7ee   :  { %v870_v47 = vadd.f32 %v1144_v44, %v869_v15 }
 0x7f0   :  { %v874_v25 = vsel %vm873_vm6, %v1144_v44, %v870_v47 }
 0x7f1   :  { %v879_v27 = vsel %vm876_vm7, %v878_v49, %v874_v25 }
 0x7f2   :  { %v907_v29 = vsub.f32 1.0, %v879_v27  ;;  %v906_v61 = vmul.f32 %v879_v27, %v793_v60 }
 0x867   :  { %v899_v21 = vpop.f32.mrf.mxu0 }
 0x868   :  { %v904_v23 = vadd.f32 %v902_v17, %v899_v21 }
 0x86a   :  { %1145 = vtanh.f32 %v904_v23 }
 0x870   :  { %v1146_v53 = vpop.eup %1145 }
 0x871   :  { %v908_v32 = vmul.f32 %v1146_v53, %v907_v29 }
 0x873   :  { %v909_v33 = vadd.f32 %v908_v32, %v906_v61 }
 0x875   :  { %1065 = vst [vmem:[%s1867_s3 + $0xc] sm:$0x3] %v909_v33  ;;  %930 = vmatmul.f32.vlgmr.msrb.gmra.mxu1 %v909_v33  ;;  %950 = vmatmul.f32.vlgmr.msrb.gmra.mxu2 %v909_v33 }
 0x8f2   :  { %v931_v31 = vpop.f32.mrf.mxu1 }
 0x8f3   :  { %v954_v10 = vadd.f32 %v1066_v0, %v931_v31 }
 0x8f5   :  { %v1067_v12 = vmul.f32 -1.442695, %v954_v10 }
 0x8f7   :  { %1147 = vpow2.f32 %v1067_v12 }
 0x8f8   :  { %v951_v5 = vpop.f32.mrf.mxu2 }
 0x8f9   :  { %v977_v7 = vadd.f32 %v975_v28, %v951_v5 }
 0x8fb   :  { %v1068_v8 = vmul.f32 -1.442695, %v977_v7 }
 0x8fd   :  { %v1148_v14 = vpop.eup %1147 }
 0x8fe   :  { %v958_v16 = vadd.f32 1.0, %v1148_v14 }
 0x900   :  { %1149 = vrcp.f32 %v958_v16  ;;  %v970_v51 = vand.u32 2147483648, %v958_v16  ;;  %v968_v30 = vand.u32 2147483647, %v958_v16  ;;  %vm964_vm9 = vweird.f32 %v958_v16 }
 0x901   :  { %1151 = vpow2.f32 %v1068_v8 }
 0x902   :  { %v971_v24 = vor.u32 1.1754944e-38, %v970_v51  ;;  %vm969_vm11 = vcmp.eq.f32.partialorder %v968_v30, 8.507059e+37 }
 0x906   :  { %v1150_v18 = vpop.eup %1149 }
 0x907   :  { %v960_v20 = vmul.f32 %v1150_v18, %v958_v16  ;;  %vm965_vm8 = vweird.f32 %v1150_v18  ;;  %v1152_v57 = vpop.eup %1151 }
 0x908   :  { %vm966_vm10 = vmor %vm964_vm9, %vm965_vm8  ;;  %v981_v60 = vadd.f32 1.0, %v1152_v57 }
 0x909   :  { %v961_v22 = vsub.f32 1.0, %v960_v20 }
 0x90a   :  { %1153 = vrcp.f32 %v981_v60  ;;  %v993_v4 = vand.u32 2147483648, %v981_v60  ;;  %vm987_vm13 = vweird.f32 %v981_v60  ;;  %v991_v1 = vand.u32 2147483647, %v981_v60 }
 0x90b   :  { %v962_v52 = vmul.f32 %v1150_v18, %v961_v22 }
 0x90c   :  { %v994_v6 = vor.u32 1.1754944e-38, %v993_v4  ;;  %vm992_vm15 = vcmp.eq.f32.partialorder %v991_v1, 8.507059e+37 }
 0x90d   :  { %v963_v54 = vadd.f32 %v1150_v18, %v962_v52 }
 0x90f   :  { %v967_v55 = vsel %vm966_vm10, %v1150_v18, %v963_v54 }
 0x910   :  { %v972_v26 = vsel %vm969_vm11, %v971_v24, %v967_v55  ;;  %v1154_v50 = vpop.eup %1153 }
 0x911   :  { %v997_v56 = vmul.f32 %v972_v26, %v909_v33  ;;  %v983_v58 = vmul.f32 %v1154_v50, %v981_v60  ;;  %vm988_vm12 = vweird.f32 %v1154_v50 }
 0x912   :  { %vm989_vm14 = vmor %vm987_vm13, %vm988_vm12 }
 0x913   :  { %1014 = vmatmul.f32.vlgmr.msrb.gmra.mxu3 %v997_v56  ;;  %v984_v59 = vsub.f32 1.0, %v983_v58 }
 0x915   :  { %v985_v62 = vmul.f32 %v1154_v50, %v984_v59 }
 0x917   :  { %v986_v3 = vadd.f32 %v1154_v50, %v985_v62 }
 0x919   :  { %v990_v11 = vsel %vm989_vm14, %v1154_v50, %v986_v3 }
 0x91a   :  { %v995_v13 = vsel %vm992_vm15, %v994_v6, %v990_v11 }
 0x91b   :  { %v1023_v34 = vsub.f32 1.0, %v995_v13  ;;  %v1022_v36 = vmul.f32 %v995_v13, %v909_v33 }
 0x996   :  { %v1015_v9 = vpop.f32.mrf.mxu3 }
 0x997   :  { %v1020_v63 = vadd.f32 %v1018_v2, %v1015_v9 }
 0x999   :  { %1155 = vtanh.f32 %v1020_v63 }
 0x99f   :  { %v1156_v35 = vpop.eup %1155 }
 0x9a0   :  { %v1024_v37 = vmul.f32 %v1156_v35, %v1023_v34 }
 0x9a2   :  { %v1025_v38 = vadd.f32 %v1024_v37, %v1022_v36 }
 0x9a4   :  { %1069 = vst [vmem:[%s1867_s3 + $0xe] sm:$0x3] %v1025_v38 }
 0x9a5   :  { %1028 = vst [vmem:[#allocation2] sm:$0x3] %v1025_v38 }
 0x9a6   :  { %1029 = vst [vmem:[%s1868_s4] sm:$0x3] %v1025_v38 }
 0x9a7   :  { %1038 = vsyncpa [#allocation4], 1 }
 0x9a8   :  { %1039 = vsyncpa [#allocation6], 1 }

// kernel: _lambda_.7
= control target key start
LH: loop header
LB: loop body
LE: loop exit
PB: predicated region body
PF: predicated region fallthrough
CT: control target
= control target key end

     0   :  { %v1202_v2 = vmov 0.0   ;;  %s2067_s0 = inlined_call_operand.vmem [shape: f32[8,2,384], index: 0, kind: input, shape index: {}]   ;;  %s2068_s1 = inlined_call_operand.vmem [shape: f32[128,256], index: 1, kind: input, shape index: {}]   ;;  %s2069_s2 = inlined_call_operand.vmem [shape: f32[128,128], index: 2, kind: input, shape index: {}]   ;;  %s2070_s3 = inlined_call_operand.hbm [shape: f32[8,2,128], index: 3, kind: output, shape index: {0}]   ;;  %s2071_s4 = inlined_call_operand.vmem [shape: f32[2,128], index: 4, kind: output, shape index: {1}]  }
   0x1   :  { %v1234_v0 = vld [vmem:[%s2068_s1 + $0xf0] sm:$0xff]  ;;  %v1239_v1 = vld [vmem:[%s2068_s1 + $0xe0] sm:$0xff]  ;;  %21 = vst [vmem:[#allocation2] sm:$0x3] %v1202_v2  ;;  %v1259_v5 = vld [vmem:[%s2068_s1 + $0xf8] sm:$0xff] }
   0x2   :  { %72 = vmatpush.msra.mxu0 %v1234_v0  ;;  %187 = vmatpush.msra.mxu3 %v1234_v0  ;;  %v1246_v3 = vld [vmem:[%s2068_s1 + $0xd0] sm:$0xff]  ;;  %v1253_v4 = vld [vmem:[%s2068_s1 + $0xc0] sm:$0xff]  ;;  %v1264_v6 = vld [vmem:[%s2068_s1 + $0xe8] sm:$0xff] }
   0x3   :  { %v1270_v7 = vld [vmem:[%s2068_s1 + $0xb0] sm:$0xff]  ;;  %92 = vmatpush.msra.mxu1 %v1259_v5  ;;  %v1277_v8 = vld [vmem:[%s2068_s1 + $0xd8] sm:$0xff]  ;;  %v1283_v9 = vld [vmem:[%s2068_s1 + $0xa0] sm:$0xff] }
   0x4   :  { %73 = vmatpush.msra.mxu0 %v1239_v1  ;;  %188 = vmatpush.msra.mxu3 %v1239_v1  ;;  %v1290_v10 = vld [vmem:[%s2068_s1 + $0xc8] sm:$0xff]  ;;  %v1296_v11 = vld [vmem:[%s2068_s1 + $0x90] sm:$0xff] }
   0x5   :  { %93 = vmatpush.msra.mxu1 %v1264_v6 }
   0x6   :  { %74 = vmatpush.msra.mxu0 %v1246_v3  ;;  %189 = vmatpush.msra.mxu3 %v1246_v3 }
   0x7   :  { %94 = vmatpush.msra.mxu1 %v1277_v8 }
   0x8   :  { %75 = vmatpush.msra.mxu0 %v1253_v4  ;;  %190 = vmatpush.msra.mxu3 %v1253_v4 }
   0xa   :  { %76 = vmatpush.msra.mxu0 %v1270_v7  ;;  %191 = vmatpush.msra.mxu3 %v1270_v7 }
   0xb   :  { %10 = vsyncpa [#allocation4], 0  ;;  %v1303_v12 = vld [vmem:[%s2068_s1 + $0xb8] sm:$0xff]  ;;  %v1309_v13 = vld [vmem:[%s2068_s1 + $0x80] sm:$0xff]  ;;  %95 = vmatpush.msra.mxu1 %v1290_v10  ;;  %s1005_s15 = sshll.u32 %s2070_s3, 4  ;;  %s1204_s16 = smov 32   ;;  %s1006_s15 = int_to_ptr.hbm [resolvable:$true] %s1005_s15 }
   0xc   :  { %77 = vmatpush.msra.mxu0 %v1283_v9  ;;  %192 = vmatpush.msra.mxu3 %v1283_v9  ;;  %v1316_v14 = vld [vmem:[%s2068_s1 + $0xa8] sm:$0xff]  ;;  %v1322_v15 = vld [vmem:[%s2068_s1 + $0x70] sm:$0xff]  ;;  %v1329_v16 = vld [vmem:[%s2068_s1 + $0x98] sm:$0xff]  ;;  %s1205_s17 = smov 2  }
   0xd   :  { %96 = vmatpush.msra.mxu1 %v1303_v12  ;;  %v1335_v17 = vld [vmem:[%s2068_s1 + $0x60] sm:$0xff]  ;;  %v1342_v18 = vld [vmem:[%s2068_s1 + $0x88] sm:$0xff]  ;;  %v1348_v19 = vld [vmem:[%s2068_s1 + $0x50] sm:$0xff] }
   0xe   :  { %78 = vmatpush.msra.mxu0 %v1296_v11  ;;  %193 = vmatpush.msra.mxu3 %v1296_v11  ;;  %v1355_v20 = vld [vmem:[%s2068_s1 + $0x78] sm:$0xff]  ;;  %v1361_v21 = vld [vmem:[%s2068_s1 + $0x40] sm:$0xff]  ;;  %v1368_v22 = vld [vmem:[%s2068_s1 + $0x68] sm:$0xff] }
   0xf   :  { %97 = vmatpush.msra.mxu1 %v1316_v14  ;;  %v1374_v23 = vld [vmem:[%s2068_s1 + $0x30] sm:$0xff]  ;;  %v1381_v24 = vld [vmem:[%s2068_s1 + $0x58] sm:$0xff]  ;;  %v1387_v25 = vld [vmem:[%s2068_s1 + $0x20] sm:$0xff] }
  0x10   :  { %79 = vmatpush.msra.mxu0 %v1309_v13  ;;  %194 = vmatpush.msra.mxu3 %v1309_v13  ;;  %v1394_v26 = vld [vmem:[%s2068_s1 + $0x48] sm:$0xff]  ;;  %v1400_v27 = vld [vmem:[%s2068_s1 + $0x10] sm:$0xff]  ;;  %v1407_v28 = vld [vmem:[%s2068_s1 + $0x38] sm:$0xff] }
  0x11   :  { %98 = vmatpush.msra.mxu1 %v1329_v16  ;;  %v1413_v29 = vld [vmem:[%s2068_s1] sm:$0xff]  ;;  %v1422_v31 = vld [vmem:[%s2068_s1 + $0x28] sm:$0xff]  ;;  %v1461_v32 = vld [vmem:[%s2068_s1 + $0x18] sm:$0xff] }
  0x12   :  { %80 = vmatpush.msra.mxu0 %v1322_v15  ;;  %195 = vmatpush.msra.mxu3 %v1322_v15  ;;  %v1417_v30 = vld [vmem:[#allocation2] sm:$0x3]  ;;  %2078 = vst [vmem:[#allocation6_spill] sm:$0xff] %v1422_v31  ;;  %v1468_v33 = vld [vmem:[%s2068_s1 + $0x8] sm:$0xff]  ;;  %v1473_v34 = vld [vmem:[%s2069_s2 + $0x78] sm:$0xff] }
  0x13   :  { %99 = vmatpush.msra.mxu1 %v1342_v18  ;;  %2079 = vst [vmem:[#allocation7_spill] sm:$0xff] %v1461_v32  ;;  %156 = vmatpush.msra.mxu2 %v1473_v34  ;;  %v1482_v35 = vld [vmem:[%s2069_s2 + $0x70] sm:$0xff]  ;;  %v1490_v36 = vld [vmem:[%s2069_s2 + $0x68] sm:$0xff]  ;;  %v1499_v37 = vld [vmem:[%s2069_s2 + $0x60] sm:$0xff] }
  0x14   :  { %81 = vmatpush.msra.mxu0 %v1335_v17  ;;  %196 = vmatpush.msra.mxu3 %v1335_v17  ;;  %2080 = vst [vmem:[#allocation8_spill] sm:$0xff] %v1468_v33  ;;  %v1507_v38 = vld [vmem:[%s2069_s2 + $0x58] sm:$0xff]  ;;  %v1515_v39 = vld [vmem:[%s2069_s2 + $0x50] sm:$0xff]  ;;  %v1523_v40 = vld [vmem:[%s2069_s2 + $0x48] sm:$0xff] }
  0x15   :  { %100 = vmatpush.msra.mxu1 %v1355_v20  ;;  %157 = vmatpush.msra.mxu2 %v1482_v35  ;;  %v1530_v41 = vld [vmem:[%s2069_s2 + $0x40] sm:$0xff]  ;;  %v1536_v42 = vld [vmem:[%s2069_s2 + $0x38] sm:$0xff]  ;;  %v1544_v43 = vld [vmem:[%s2069_s2 + $0x30] sm:$0xff] }
  0x16   :  { %82 = vmatpush.msra.mxu0 %v1348_v19  ;;  %197 = vmatpush.msra.mxu3 %v1348_v19  ;;  %v1552_v44 = vld [vmem:[%s2069_s2 + $0x28] sm:$0xff]  ;;  %v1560_v45 = vld [vmem:[%s2069_s2 + $0x20] sm:$0xff]  ;;  %v1568_v46 = vld [vmem:[%s2069_s2 + $0x18] sm:$0xff] }
  0x17   :  { %101 = vmatpush.msra.mxu1 %v1368_v22  ;;  %158 = vmatpush.msra.mxu2 %v1490_v36  ;;  %v1576_v47 = vld [vmem:[%s2069_s2 + $0x10] sm:$0xff]  ;;  %v1584_v48 = vld [vmem:[%s2069_s2 + $0x8] sm:$0xff]  ;;  %v1592_v49 = vld [vmem:[%s2069_s2] sm:$0xff] }
  0x18   :  { %83 = vmatpush.msra.mxu0 %v1361_v21  ;;  %198 = vmatpush.msra.mxu3 %v1361_v21  ;;  %v1598_v50 = vld [vmem:[%s2067_s0] sm:$0x3f] }
  0x19   :  { %102 = vmatpush.msra.mxu1 %v1381_v24  ;;  %159 = vmatpush.msra.mxu2 %v1499_v37 }
  0x1a   :  { %84 = vmatpush.msra.mxu0 %v1374_v23  ;;  %199 = vmatpush.msra.mxu3 %v1374_v23 }
  0x1b   :  { %103 = vmatpush.msra.mxu1 %v1394_v26  ;;  %160 = vmatpush.msra.mxu2 %v1507_v38 }
  0x1c   :  { %85 = vmatpush.msra.mxu0 %v1387_v25  ;;  %200 = vmatpush.msra.mxu3 %v1387_v25 }
  0x1d   :  { %104 = vmatpush.msra.mxu1 %v1407_v28  ;;  %161 = vmatpush.msra.mxu2 %v1515_v39 }
  0x1e   :  { %86 = vmatpush.msra.mxu0 %v1400_v27  ;;  %201 = vmatpush.msra.mxu3 %v1400_v27 }
  0x1f   :  { %105 = vmatpush.msra.mxu1 %v1422_v31  ;;  %162 = vmatpush.msra.mxu2 %v1523_v40 }
  0x20   :  { %87 = vmatpush.msra.mxu0 %v1413_v29  ;;  %202 = vmatpush.msra.mxu3 %v1413_v29 }
  0x21   :  { %88 = vmatmul.f32.vlgmr.msra.gmra.mxu0 %v1417_v30  ;;  %106 = vmatpush.msra.mxu1 %v1461_v32 }
  0x22   :  { %207 = vmatpush.msrb.mxu0 %v1259_v5  ;;  %323 = vmatpush.msrb.mxu3 %v1259_v5 }
  0x23   :  { %107 = vmatpush.msra.mxu1 %v1468_v33  ;;  %163 = vmatpush.msra.mxu2 %v1530_v41 }
  0x24   :  { %208 = vmatpush.msrb.mxu0 %v1264_v6  ;;  %324 = vmatpush.msrb.mxu3 %v1264_v6 }
  0x25   :  { %108 = vmatmul.f32.vlgmr.msra.gmra.mxu1 %v1417_v30  ;;  %164 = vmatpush.msra.mxu2 %v1536_v42 }
  0x26   :  { %209 = vmatpush.msrb.mxu0 %v1277_v8  ;;  %325 = vmatpush.msrb.mxu3 %v1277_v8 }
  0x27   :  { %271 = vmatpush.msrb.mxu1 %v1473_v34  ;;  %165 = vmatpush.msra.mxu2 %v1544_v43 }
  0x28   :  { %210 = vmatpush.msrb.mxu0 %v1290_v10  ;;  %326 = vmatpush.msrb.mxu3 %v1290_v10 }
  0x29   :  { %272 = vmatpush.msrb.mxu1 %v1482_v35  ;;  %166 = vmatpush.msra.mxu2 %v1552_v44 }
  0x2a   :  { %211 = vmatpush.msrb.mxu0 %v1303_v12  ;;  %327 = vmatpush.msrb.mxu3 %v1303_v12 }
  0x2b   :  { %273 = vmatpush.msrb.mxu1 %v1490_v36  ;;  %167 = vmatpush.msra.mxu2 %v1560_v45 }
  0x2c   :  { %212 = vmatpush.msrb.mxu0 %v1316_v14  ;;  %328 = vmatpush.msrb.mxu3 %v1316_v14 }
  0x2d   :  { %274 = vmatpush.msrb.mxu1 %v1499_v37  ;;  %168 = vmatpush.msra.mxu2 %v1568_v46 }
  0x2e   :  { %213 = vmatpush.msrb.mxu0 %v1329_v16  ;;  %329 = vmatpush.msrb.mxu3 %v1329_v16 }
  0x2f   :  { %275 = vmatpush.msrb.mxu1 %v1507_v38  ;;  %169 = vmatpush.msra.mxu2 %v1576_v47 }
  0x30   :  { %214 = vmatpush.msrb.mxu0 %v1342_v18  ;;  %330 = vmatpush.msrb.mxu3 %v1342_v18 }
  0x31   :  { %276 = vmatpush.msrb.mxu1 %v1515_v39  ;;  %170 = vmatpush.msra.mxu2 %v1584_v48 }
  0x32   :  { %215 = vmatpush.msrb.mxu0 %v1355_v20  ;;  %331 = vmatpush.msrb.mxu3 %v1355_v20 }
  0x33   :  { %277 = vmatpush.msrb.mxu1 %v1523_v40  ;;  %171 = vmatpush.msra.mxu2 %v1592_v49 }
  0x34   :  { %216 = vmatpush.msrb.mxu0 %v1368_v22  ;;  %332 = vmatpush.msrb.mxu3 %v1368_v22 }
  0x35   :  { %278 = vmatpush.msrb.mxu1 %v1530_v41  ;;  %303 = vmatpush.msrb.mxu2 %v1234_v0 }
  0x36   :  { %217 = vmatpush.msrb.mxu0 %v1381_v24  ;;  %333 = vmatpush.msrb.mxu3 %v1381_v24 }
  0x37   :  { %279 = vmatpush.msrb.mxu1 %v1536_v42  ;;  %304 = vmatpush.msrb.mxu2 %v1239_v1 }
  0x38   :  { %218 = vmatpush.msrb.mxu0 %v1394_v26  ;;  %334 = vmatpush.msrb.mxu3 %v1394_v26 }
  0x39   :  { %280 = vmatpush.msrb.mxu1 %v1544_v43  ;;  %305 = vmatpush.msrb.mxu2 %v1246_v3 }
  0x3a   :  { %219 = vmatpush.msrb.mxu0 %v1407_v28  ;;  %335 = vmatpush.msrb.mxu3 %v1407_v28 }
  0x3b   :  { %281 = vmatpush.msrb.mxu1 %v1552_v44  ;;  %306 = vmatpush.msrb.mxu2 %v1253_v4 }
  0x3c   :  { %220 = vmatpush.msrb.mxu0 %v1422_v31  ;;  %336 = vmatpush.msrb.mxu3 %v1422_v31 }
  0x3d   :  { %282 = vmatpush.msrb.mxu1 %v1560_v45  ;;  %307 = vmatpush.msrb.mxu2 %v1270_v7 }
  0x3e   :  { %221 = vmatpush.msrb.mxu0 %v1461_v32  ;;  %337 = vmatpush.msrb.mxu3 %v1461_v32 }
  0x3f   :  { %283 = vmatpush.msrb.mxu1 %v1568_v46  ;;  %308 = vmatpush.msrb.mxu2 %v1283_v9 }
  0x40   :  { %222 = vmatpush.msrb.mxu0 %v1468_v33  ;;  %338 = vmatpush.msrb.mxu3 %v1468_v33 }
  0x41   :  { %284 = vmatpush.msrb.mxu1 %v1576_v47  ;;  %309 = vmatpush.msrb.mxu2 %v1296_v11 }
  0x42   :  { %387 = vmatpush.msra.mxu0 %v1473_v34 }
  0x43   :  { %285 = vmatpush.msrb.mxu1 %v1584_v48  ;;  %310 = vmatpush.msrb.mxu2 %v1309_v13 }
  0x44   :  { %388 = vmatpush.msra.mxu0 %v1482_v35 }
  0x45   :  { %286 = vmatpush.msrb.mxu1 %v1592_v49  ;;  %311 = vmatpush.msrb.mxu2 %v1322_v15 }
  0x46   :  { %389 = vmatpush.msra.mxu0 %v1490_v36 }
  0x47   :  { %419 = vmatpush.msra.mxu1 %v1234_v0  ;;  %312 = vmatpush.msrb.mxu2 %v1335_v17 }
  0x48   :  { %390 = vmatpush.msra.mxu0 %v1499_v37 }
  0x49   :  { %420 = vmatpush.msra.mxu1 %v1239_v1  ;;  %313 = vmatpush.msrb.mxu2 %v1348_v19 }
  0x4a   :  { %391 = vmatpush.msra.mxu0 %v1507_v38 }
  0x4b   :  { %421 = vmatpush.msra.mxu1 %v1246_v3  ;;  %314 = vmatpush.msrb.mxu2 %v1361_v21 }
  0x4c   :  { %392 = vmatpush.msra.mxu0 %v1515_v39 }
  0x4d   :  { %422 = vmatpush.msra.mxu1 %v1253_v4  ;;  %315 = vmatpush.msrb.mxu2 %v1374_v23 }
  0x4e   :  { %393 = vmatpush.msra.mxu0 %v1523_v40 }
  0x4f   :  { %423 = vmatpush.msra.mxu1 %v1270_v7  ;;  %316 = vmatpush.msrb.mxu2 %v1387_v25 }
  0x50   :  { %394 = vmatpush.msra.mxu0 %v1530_v41 }
  0x51   :  { %424 = vmatpush.msra.mxu1 %v1283_v9  ;;  %317 = vmatpush.msrb.mxu2 %v1400_v27 }
  0x52   :  { %395 = vmatpush.msra.mxu0 %v1536_v42 }
  0x53   :  { %425 = vmatpush.msra.mxu1 %v1296_v11  ;;  %318 = vmatpush.msrb.mxu2 %v1413_v29 }
  0x54   :  { %396 = vmatpush.msra.mxu0 %v1544_v43 }
  0x55   :  { %426 = vmatpush.msra.mxu1 %v1309_v13 }
  0x56   :  { %397 = vmatpush.msra.mxu0 %v1552_v44 }
  0x57   :  { %427 = vmatpush.msra.mxu1 %v1322_v15 }
  0x58   :  { %398 = vmatpush.msra.mxu0 %v1560_v45 }
  0x59   :  { %428 = vmatpush.msra.mxu1 %v1335_v17 }
  0x5a   :  { %399 = vmatpush.msra.mxu0 %v1568_v46 }
  0x5b   :  { %429 = vmatpush.msra.mxu1 %v1348_v19 }
  0x5c   :  { %400 = vmatpush.msra.mxu0 %v1576_v47 }
  0x5d   :  { %430 = vmatpush.msra.mxu1 %v1361_v21 }
  0x5e   :  { %401 = vmatpush.msra.mxu0 %v1584_v48 }
  0x5f   :  { %431 = vmatpush.msra.mxu1 %v1374_v23 }
  0x60   :  { %402 = vmatpush.msra.mxu0 %v1592_v49 }
  0x61   :  { %432 = vmatpush.msra.mxu1 %v1387_v25 }
  0x63   :  { %433 = vmatpush.msra.mxu1 %v1400_v27 }
  0x65   :  { %434 = vmatpush.msra.mxu1 %v1413_v29 }
  0x9e   :  { %v89_v51 = vpop.f32.mrf.mxu0 }
  0x9f   :  { %v112_v52 = vadd.f32 %v89_v51, %v1598_v50 }
  0xa1   :  { %v1021_v53 = vmul.f32 -1.442695, %v112_v52 }
  0xa3   :  { %1048 = vpow2.f32 %v1021_v53  ;;  %v133_v53 = vrot.slane %v1598_v50, 2 }
  0xa9   :  { %v1049_v54 = vpop.eup %1048 }
  0xaa   :  { %v116_v55 = vadd.f32 1.0, %v1049_v54  ;;  %v109_v54 = vpop.f32.mrf.mxu1 }
  0xac   :  { %1050 = vrcp.f32 %v116_v55  ;;  %v128_v59 = vand.u32 2147483648, %v116_v55  ;;  %v126_v61 = vand.u32 2147483647, %v116_v55  ;;  %vm122_vm1 = vweird.f32 %v116_v55 }
  0xae   :  { %v129_v63 = vor.u32 1.1754944e-38, %v128_v59  ;;  %vm127_vm3 = vcmp.eq.f32.partialorder %v126_v61, 8.507059e+37 }
  0xb2   :  { %v1051_v56 = vpop.eup %1050 }
  0xb3   :  { %v118_v57 = vmul.f32 %v1051_v56, %v116_v55  ;;  %vm123_vm0 = vweird.f32 %v1051_v56  ;;  %v135_v55 = vadd.f32 %v133_v53, %v109_v54 }
  0xb4   :  { %vm124_vm2 = vmor %vm122_vm1, %vm123_vm0 }
  0xb5   :  { %v119_v58 = vsub.f32 1.0, %v118_v57 }
  0xb7   :  { %v120_v60 = vmul.f32 %v1051_v56, %v119_v58 }
  0xb9   :  { %v121_v62 = vadd.f32 %v1051_v56, %v120_v60 }
  0xbb   :  { %v125_v2 = vsel %vm124_vm2, %v1051_v56, %v121_v62  ;;  %v1022_v56 = vmul.f32 -1.442695, %v135_v55 }
  0xbc   :  { %v130_v51 = vsel %vm127_vm3, %v129_v63, %v125_v2  ;;  %v176_v2 = vrot.slane %v1598_v50, 4 }
  0xbd   :  { %v155_v52 = vmul.f32 %v130_v51, %v1417_v30  ;;  %1052 = vpow2.f32 %v1022_v56 }
  0xbf   :  { %172 = vmatmul.f32.vlgmr.msra.gmra.mxu2 %v155_v52 }
  0xc0   :  { %439 = vmatpush.msra.mxu2 %v1259_v5 }
  0xc2   :  { %440 = vmatpush.msra.mxu2 %v1264_v6 }
  0xc3   :  { %v1053_v57 = vpop.eup %1052 }
  0xc4   :  { %441 = vmatpush.msra.mxu2 %v1277_v8  ;;  %v139_v58 = vadd.f32 1.0, %v1053_v57 }
  0xc6   :  { %442 = vmatpush.msra.mxu2 %v1290_v10  ;;  %1054 = vrcp.f32 %v139_v58  ;;  %vm145_vm4 = vweird.f32 %v139_v58  ;;  %v151_v63 = vand.u32 2147483648, %v139_v58  ;;  %v149_v52 = vand.u32 2147483647, %v139_v58 }
  0xc8   :  { %443 = vmatpush.msra.mxu2 %v1303_v12  ;;  %vm150_vm7 = vcmp.eq.f32.partialorder %v149_v52, 8.507059e+37 }
  0xca   :  { %444 = vmatpush.msra.mxu2 %v1316_v14 }
  0xcc   :  { %445 = vmatpush.msra.mxu2 %v1329_v16  ;;  %v1055_v59 = vpop.eup %1054 }
  0xcd   :  { %v141_v60 = vmul.f32 %v1055_v59, %v139_v58  ;;  %vm146_vm5 = vweird.f32 %v1055_v59 }
  0xce   :  { %446 = vmatpush.msra.mxu2 %v1342_v18  ;;  %vm147_vm6 = vmor %vm145_vm4, %vm146_vm5 }
  0xcf   :  { %v142_v61 = vsub.f32 1.0, %v141_v60 }
  0xd0   :  { %447 = vmatpush.msra.mxu2 %v1355_v20 }
  0xd1   :  { %v143_v62 = vmul.f32 %v1055_v59, %v142_v61 }
  0xd2   :  { %448 = vmatpush.msra.mxu2 %v1368_v22 }
  0xd3   :  { %v144_v51 = vadd.f32 %v1055_v59, %v143_v62 }
  0xd4   :  { %449 = vmatpush.msra.mxu2 %v1381_v24 }
  0xd5   :  { %v148_v54 = vsel %vm147_vm6, %v1055_v59, %v144_v51 }
  0xd6   :  { %450 = vmatpush.msra.mxu2 %v1394_v26 }
  0xd8   :  { %451 = vmatpush.msra.mxu2 %v1407_v28 }
  0xda   :  { %452 = vmatpush.msra.mxu2 %v1422_v31 }
  0xdc   :  { %453 = vmatpush.msra.mxu2 %v1461_v32  ;;  %v152_v32 = vor.u32 1.1754944e-38, %v151_v63 }
  0xde   :  { %454 = vmatpush.msra.mxu2 %v1468_v33  ;;  %v153_v55 = vsel %vm150_vm7, %v152_v32, %v148_v54 }
  0xdf   :  { %v181_v56 = vsub.f32 1.0, %v153_v55  ;;  %v180_v60 = vmul.f32 %v153_v55, %v1417_v30  ;;  %v1023_v30 = vld [vmem:[%s2067_s0 + $0x6] sm:$0x3f] }
 0x142   :  { %v173_v33 = vpop.f32.mrf.mxu2 }
 0x143   :  { %v178_v53 = vadd.f32 %v176_v2, %v173_v33 }
 0x145   :  { %1056 = vtanh.f32 %v178_v53 }
 0x14b   :  { %v1057_v57 = vpop.eup %1056 }
 0x14c   :  { %v182_v61 = vmul.f32 %v1057_v57, %v181_v56 }
 0x14e   :  { %v1661_v31 = vadd.f32 %v182_v61, %v180_v60  ;;  %v2081_v61 = vld [vmem:[#allocation6_spill] sm:$0xff] }
 0x150   :  { %184 = vst [vmem:[#allocation3] sm:$0x3] %v1661_v31  ;;  %203 = vmatmul.f32.vlgmr.msra.gmra.mxu3 %v1661_v31  ;;  %223 = vmatmul.f32.vlgmr.msrb.gmra.mxu0 %v1661_v31 }
 0x151   :  { %503 = vmatpush.msra.mxu3 %v1473_v34  ;;  %535 = vmatpush.msrb.mxu0 %v1234_v0 }
 0x153   :  { %504 = vmatpush.msra.mxu3 %v1482_v35  ;;  %536 = vmatpush.msrb.mxu0 %v1239_v1 }
 0x155   :  { %505 = vmatpush.msra.mxu3 %v1490_v36  ;;  %537 = vmatpush.msrb.mxu0 %v1246_v3 }
 0x157   :  { %506 = vmatpush.msra.mxu3 %v1499_v37  ;;  %538 = vmatpush.msrb.mxu0 %v1253_v4 }
 0x159   :  { %507 = vmatpush.msra.mxu3 %v1507_v38  ;;  %539 = vmatpush.msrb.mxu0 %v1270_v7 }
 0x15b   :  { %508 = vmatpush.msra.mxu3 %v1515_v39  ;;  %540 = vmatpush.msrb.mxu0 %v1283_v9 }
 0x15d   :  { %509 = vmatpush.msra.mxu3 %v1523_v40  ;;  %541 = vmatpush.msrb.mxu0 %v1296_v11 }
 0x15f   :  { %510 = vmatpush.msra.mxu3 %v1530_v41  ;;  %542 = vmatpush.msrb.mxu0 %v1309_v13 }
 0x161   :  { %511 = vmatpush.msra.mxu3 %v1536_v42  ;;  %543 = vmatpush.msrb.mxu0 %v1322_v15 }
 0x163   :  { %512 = vmatpush.msra.mxu3 %v1544_v43  ;;  %544 = vmatpush.msrb.mxu0 %v1335_v17 }
 0x165   :  { %513 = vmatpush.msra.mxu3 %v1552_v44  ;;  %545 = vmatpush.msrb.mxu0 %v1348_v19 }
 0x167   :  { %514 = vmatpush.msra.mxu3 %v1560_v45  ;;  %546 = vmatpush.msrb.mxu0 %v1361_v21 }
 0x169   :  { %515 = vmatpush.msra.mxu3 %v1568_v46  ;;  %547 = vmatpush.msrb.mxu0 %v1374_v23 }
 0x16b   :  { %516 = vmatpush.msra.mxu3 %v1576_v47  ;;  %548 = vmatpush.msrb.mxu0 %v1387_v25 }
 0x16d   :  { %517 = vmatpush.msra.mxu3 %v1584_v48  ;;  %549 = vmatpush.msrb.mxu0 %v1400_v27 }
 0x16f   :  { %518 = vmatpush.msra.mxu3 %v1592_v49  ;;  %550 = vmatpush.msrb.mxu0 %v1413_v29 }
 0x1d3   :  { %v204_v32 = vpop.f32.mrf.mxu3 }
 0x1d4   :  { %v227_v33 = vadd.f32 %v1023_v30, %v204_v32  ;;  %v2082_v32 = vld [vmem:[#allocation7_spill] sm:$0xff] }
 0x1d6   :  { %v1024_v50 = vmul.f32 -1.442695, %v227_v33  ;;  %v2083_v33 = vld [vmem:[#allocation8_spill] sm:$0xff] }
 0x1d8   :  { %1058 = vpow2.f32 %v1024_v50  ;;  %v248_v50 = vrot.slane %v1023_v30, 2 }
 0x1de   :  { %v1059_v58 = vpop.eup %1058 }
 0x1df   :  { %v231_v59 = vadd.f32 1.0, %v1059_v58  ;;  %v224_v58 = vpop.f32.mrf.mxu0 }
 0x1e1   :  { %1060 = vrcp.f32 %v231_v59  ;;  %v243_v51 = vand.u32 2147483648, %v231_v59  ;;  %v241_v53 = vand.u32 2147483647, %v231_v59  ;;  %vm237_vm9 = vweird.f32 %v231_v59 }
 0x1e3   :  { %v244_v55 = vor.u32 1.1754944e-38, %v243_v51  ;;  %vm242_vm11 = vcmp.eq.f32.partialorder %v241_v53, 8.507059e+37 }
 0x1e7   :  { %v1061_v62 = vpop.eup %1060 }
 0x1e8   :  { %v233_v63 = vmul.f32 %v1061_v62, %v231_v59  ;;  %vm238_vm8 = vweird.f32 %v1061_v62  ;;  %v250_v59 = vadd.f32 %v248_v50, %v224_v58 }
 0x1e9   :  { %vm239_vm10 = vmor %vm237_vm9, %vm238_vm8 }
 0x1ea   :  { %v234_v2 = vsub.f32 1.0, %v233_v63 }
 0x1ec   :  { %v235_v52 = vmul.f32 %v1061_v62, %v234_v2 }
 0x1ee   :  { %v236_v54 = vadd.f32 %v1061_v62, %v235_v52 }
 0x1f0   :  { %v240_v56 = vsel %vm239_vm10, %v1061_v62, %v236_v54  ;;  %v1025_v62 = vmul.f32 -1.442695, %v250_v59 }
 0x1f1   :  { %v245_v57 = vsel %vm242_vm11, %v244_v55, %v240_v56  ;;  %v291_v55 = vrot.slane %v1023_v30, 4 }
 0x1f2   :  { %v270_v60 = vmul.f32 %v245_v57, %v1661_v31  ;;  %1062 = vpow2.f32 %v1025_v62 }
 0x1f4   :  { %287 = vmatmul.f32.vlgmr.msrb.gmra.mxu1 %v270_v60 }
 0x1f5   :  { %555 = vmatpush.msrb.mxu1 %v1259_v5 }
 0x1f7   :  { %556 = vmatpush.msrb.mxu1 %v1264_v6 }
 0x1f8   :  { %v1063_v63 = vpop.eup %1062 }
 0x1f9   :  { %557 = vmatpush.msrb.mxu1 %v1277_v8  ;;  %v254_v2 = vadd.f32 1.0, %v1063_v63 }
 0x1fb   :  { %558 = vmatpush.msrb.mxu1 %v1290_v10  ;;  %1064 = vrcp.f32 %v254_v2  ;;  %v266_v57 = vand.u32 2147483648, %v254_v2  ;;  %vm260_vm13 = vweird.f32 %v254_v2  ;;  %v264_v60 = vand.u32 2147483647, %v254_v2 }
 0x1fd   :  { %559 = vmatpush.msrb.mxu1 %v1303_v12  ;;  %v267_v50 = vor.u32 1.1754944e-38, %v266_v57  ;;  %vm265_vm15 = vcmp.eq.f32.partialorder %v264_v60, 8.507059e+37 }
 0x1ff   :  { %560 = vmatpush.msrb.mxu1 %v1316_v14 }
 0x201   :  { %561 = vmatpush.msrb.mxu1 %v1329_v16  ;;  %v1065_v51 = vpop.eup %1064 }
 0x202   :  { %v256_v52 = vmul.f32 %v1065_v51, %v254_v2  ;;  %vm261_vm12 = vweird.f32 %v1065_v51 }
 0x203   :  { %562 = vmatpush.msrb.mxu1 %v1342_v18  ;;  %vm262_vm14 = vmor %vm260_vm13, %vm261_vm12 }
 0x204   :  { %v257_v53 = vsub.f32 1.0, %v256_v52 }
 0x205   :  { %563 = vmatpush.msrb.mxu1 %v1355_v20 }
 0x206   :  { %v258_v54 = vmul.f32 %v1065_v51, %v257_v53 }
 0x207   :  { %564 = vmatpush.msrb.mxu1 %v1368_v22 }
 0x208   :  { %v259_v56 = vadd.f32 %v1065_v51, %v258_v54 }
 0x209   :  { %565 = vmatpush.msrb.mxu1 %v1381_v24 }
 0x20b   :  { %566 = vmatpush.msrb.mxu1 %v1394_v26 }
 0x20d   :  { %567 = vmatpush.msrb.mxu1 %v1407_v28 }
 0x20f   :  { %568 = vmatpush.msrb.mxu1 %v2081_v61  ;;  %v263_v61 = vsel %vm262_vm14, %v1065_v51, %v259_v56 }
 0x210   :  { %v268_v58 = vsel %vm265_vm15, %v267_v50, %v263_v61 }
 0x211   :  { %569 = vmatpush.msrb.mxu1 %v2082_v32  ;;  %v296_v59 = vsub.f32 1.0, %v268_v58  ;;  %v295_v63 = vmul.f32 %v268_v58, %v1661_v31  ;;  %v1026_v31 = vld [vmem:[%s2067_s0 + $0xc] sm:$0x3f] }
 0x213   :  { %570 = vmatpush.msrb.mxu1 %v2083_v33 }
 0x271   :  { %v288_v32 = vpop.f32.mrf.mxu1 }
 0x272   :  { %v293_v33 = vadd.f32 %v291_v55, %v288_v32 }
 0x274   :  { %1066 = vtanh.f32 %v293_v33 }
 0x27a   :  { %v1067_v62 = vpop.eup %1066 }
 0x27b   :  { %v297_v52 = vmul.f32 %v1067_v62, %v296_v59 }
 0x27d   :  { %v1719_v53 = vadd.f32 %v297_v52, %v295_v63 }
 0x27f   :  { %300 = vst [vmem:[#allocation3 + $0x2] sm:$0x3] %v1719_v53  ;;  %319 = vmatmul.f32.vlgmr.msrb.gmra.mxu2 %v1719_v53  ;;  %339 = vmatmul.f32.vlgmr.msrb.gmra.mxu3 %v1719_v53 }
 0x280   :  { %619 = vmatpush.msrb.mxu2 %v1473_v34  ;;  %651 = vmatpush.msrb.mxu3 %v1234_v0 }
 0x282   :  { %620 = vmatpush.msrb.mxu2 %v1482_v35  ;;  %652 = vmatpush.msrb.mxu3 %v1239_v1 }
 0x284   :  { %621 = vmatpush.msrb.mxu2 %v1490_v36  ;;  %653 = vmatpush.msrb.mxu3 %v1246_v3 }
 0x286   :  { %622 = vmatpush.msrb.mxu2 %v1499_v37  ;;  %654 = vmatpush.msrb.mxu3 %v1253_v4 }
 0x288   :  { %623 = vmatpush.msrb.mxu2 %v1507_v38  ;;  %655 = vmatpush.msrb.mxu3 %v1270_v7 }
 0x28a   :  { %624 = vmatpush.msrb.mxu2 %v1515_v39  ;;  %656 = vmatpush.msrb.mxu3 %v1283_v9 }
 0x28c   :  { %625 = vmatpush.msrb.mxu2 %v1523_v40  ;;  %657 = vmatpush.msrb.mxu3 %v1296_v11 }
 0x28e   :  { %626 = vmatpush.msrb.mxu2 %v1530_v41  ;;  %658 = vmatpush.msrb.mxu3 %v1309_v13 }
 0x290   :  { %627 = vmatpush.msrb.mxu2 %v1536_v42  ;;  %659 = vmatpush.msrb.mxu3 %v1322_v15 }
 0x292   :  { %628 = vmatpush.msrb.mxu2 %v1544_v43  ;;  %660 = vmatpush.msrb.mxu3 %v1335_v17 }
 0x294   :  { %629 = vmatpush.msrb.mxu2 %v1552_v44  ;;  %661 = vmatpush.msrb.mxu3 %v1348_v19 }
 0x296   :  { %630 = vmatpush.msrb.mxu2 %v1560_v45  ;;  %662 = vmatpush.msrb.mxu3 %v1361_v21 }
 0x298   :  { %631 = vmatpush.msrb.mxu2 %v1568_v46  ;;  %663 = vmatpush.msrb.mxu3 %v1374_v23 }
 0x29a   :  { %632 = vmatpush.msrb.mxu2 %v1576_v47  ;;  %664 = vmatpush.msrb.mxu3 %v1387_v25 }
 0x29c   :  { %633 = vmatpush.msrb.mxu2 %v1584_v48  ;;  %665 = vmatpush.msrb.mxu3 %v1400_v27 }
 0x29e   :  { %634 = vmatpush.msrb.mxu2 %v1592_v49  ;;  %666 = vmatpush.msrb.mxu3 %v1413_v29 }
 0x302   :  { %v320_v30 = vpop.f32.mrf.mxu2 }
 0x303   :  { %v343_v61 = vadd.f32 %v1026_v31, %v320_v30 }
 0x305   :  { %v1027_v32 = vmul.f32 -1.442695, %v343_v61 }
 0x307   :  { %1068 = vpow2.f32 %v1027_v32  ;;  %v407_v32 = vrot.slane %v1026_v31, 4 }
 0x30d   :  { %v1069_v33 = vpop.eup %1068 }
 0x30e   :  { %v347_v2 = vadd.f32 1.0, %v1069_v33 }
 0x310   :  { %1070 = vrcp.f32 %v347_v2  ;;  %v359_v56 = vand.u32 2147483648, %v347_v2  ;;  %v357_v60 = vand.u32 2147483647, %v347_v2  ;;  %vm353_vm1 = vweird.f32 %v347_v2 }
 0x312   :  { %v360_v58 = vor.u32 1.1754944e-38, %v359_v56  ;;  %vm358_vm3 = vcmp.eq.f32.partialorder %v357_v60, 8.507059e+37 }
 0x316   :  { %v1071_v51 = vpop.eup %1070 }
 0x317   :  { %v349_v54 = vmul.f32 %v1071_v51, %v347_v2  ;;  %vm354_vm0 = vweird.f32 %v1071_v51 }
 0x318   :  { %vm355_vm2 = vmor %vm353_vm1, %vm354_vm0 }
 0x319   :  { %v350_v55 = vsub.f32 1.0, %v349_v54 }
 0x31b   :  { %v351_v57 = vmul.f32 %v1071_v51, %v350_v55 }
 0x31d   :  { %v352_v50 = vadd.f32 %v1071_v51, %v351_v57 }
 0x31f   :  { %v356_v59 = vsel %vm355_vm2, %v1071_v51, %v352_v50 }
 0x320   :  { %v361_v62 = vsel %vm358_vm3, %v360_v58, %v356_v59 }
 0x321   :  { %v386_v63 = vmul.f32 %v361_v62, %v1719_v53 }
 0x323   :  { %403 = vmatmul.f32.vlgmr.msra.gmra.mxu0 %v386_v63 }
 0x324   :  { %671 = vmatpush.msra.mxu0 %v1259_v5  ;;  %v2084_v5 = vld [vmem:[#allocation6_spill] sm:$0xff] }
 0x326   :  { %672 = vmatpush.msra.mxu0 %v1264_v6  ;;  %v2085_v6 = vld [vmem:[#allocation7_spill] sm:$0xff] }
 0x328   :  { %673 = vmatpush.msra.mxu0 %v1277_v8  ;;  %v2086_v8 = vld [vmem:[#allocation8_spill] sm:$0xff] }
 0x32a   :  { %674 = vmatpush.msra.mxu0 %v1290_v10  ;;  %v364_v10 = vrot.slane %v1026_v31, 2  ;;  %v1824_v31 = vld [vmem:[%s2068_s1 + $0xf8] sm:$0xff] }
 0x32c   :  { %675 = vmatpush.msra.mxu0 %v1303_v12  ;;  %v340_v12 = vpop.f32.mrf.mxu3 }
 0x32e   :  { %676 = vmatpush.msra.mxu0 %v1316_v14  ;;  %v366_v14 = vadd.f32 %v364_v10, %v340_v12  ;;  %v1830_v10 = vld [vmem:[%s2068_s1 + $0xe8] sm:$0xff]  ;;  %v1836_v12 = vld [vmem:[%s2068_s1 + $0xd8] sm:$0xff] }
 0x330   :  { %677 = vmatpush.msra.mxu0 %v1329_v16  ;;  %v1028_v16 = vmul.f32 -1.442695, %v366_v14  ;;  %v1842_v14 = vld [vmem:[%s2068_s1 + $0xc8] sm:$0xff] }
 0x332   :  { %678 = vmatpush.msra.mxu0 %v1342_v18  ;;  %1072 = vpow2.f32 %v1028_v16  ;;  %v1848_v16 = vld [vmem:[%s2068_s1 + $0xb8] sm:$0xff] }
 0x334   :  { %679 = vmatpush.msra.mxu0 %v1355_v20 }
 0x336   :  { %680 = vmatpush.msra.mxu0 %v1368_v22 }
 0x338   :  { %681 = vmatpush.msra.mxu0 %v1381_v24  ;;  %v1073_v18 = vpop.eup %1072 }
 0x339   :  { %v370_v20 = vadd.f32 1.0, %v1073_v18  ;;  %v1854_v18 = vld [vmem:[%s2068_s1 + $0xa8] sm:$0xff] }
 0x33a   :  { %682 = vmatpush.msra.mxu0 %v1394_v26 }
 0x33b   :  { %1074 = vrcp.f32 %v370_v20  ;;  %v382_v2 = vand.u32 2147483648, %v370_v20  ;;  %vm376_vm5 = vweird.f32 %v370_v20  ;;  %v380_v51 = vand.u32 2147483647, %v370_v20 }
 0x33c   :  { %683 = vmatpush.msra.mxu0 %v1407_v28 }
 0x33d   :  { %v383_v57 = vor.u32 1.1754944e-38, %v382_v2  ;;  %vm381_vm7 = vcmp.eq.f32.partialorder %v380_v51, 8.507059e+37 }
 0x33e   :  { %684 = vmatpush.msra.mxu0 %v2084_v5 }
 0x340   :  { %685 = vmatpush.msra.mxu0 %v2085_v6 }
 0x341   :  { %v1075_v22 = vpop.eup %1074 }
 0x342   :  { %686 = vmatpush.msra.mxu0 %v2086_v8  ;;  %v372_v52 = vmul.f32 %v1075_v22, %v370_v20  ;;  %vm377_vm4 = vweird.f32 %v1075_v22  ;;  %v1860_v20 = vld [vmem:[%s2068_s1 + $0x98] sm:$0xff] }
 0x343   :  { %vm378_vm6 = vmor %vm376_vm5, %vm377_vm4 }
 0x344   :  { %v373_v30 = vsub.f32 1.0, %v372_v52  ;;  %v1872_v52 = vld [vmem:[%s2068_s1 + $0x78] sm:$0xff] }
 0x346   :  { %v374_v61 = vmul.f32 %v1075_v22, %v373_v30  ;;  %v1878_v30 = vld [vmem:[%s2068_s1 + $0x68] sm:$0xff] }
 0x348   :  { %v375_v33 = vadd.f32 %v1075_v22, %v374_v61 }
 0x34a   :  { %v379_v56 = vsel %vm378_vm6, %v1075_v22, %v375_v33  ;;  %v1866_v22 = vld [vmem:[%s2068_s1 + $0x88] sm:$0xff] }
 0x34b   :  { %v384_v60 = vsel %vm381_vm7, %v383_v57, %v379_v56 }
 0x34c   :  { %v412_v50 = vsub.f32 1.0, %v384_v60  ;;  %v411_v59 = vmul.f32 %v384_v60, %v1719_v53 }
 0x3a0   :  { %v404_v54 = vpop.f32.mrf.mxu0 }
 0x3a1   :  { %v409_v55 = vadd.f32 %v407_v32, %v404_v54 }
 0x3a3   :  { %1076 = vtanh.f32 %v409_v55 }
 0x3a9   :  { %v1077_v58 = vpop.eup %1076 }
 0x3aa   :  { %v413_v62 = vmul.f32 %v1077_v58, %v412_v50 }
 0x3ac   :  { %v1777_v63 = vadd.f32 %v413_v62, %v411_v59 }
 0x3ae   :  { %416 = vst [vmem:[#allocation3 + $0x4] sm:$0x3] %v1777_v63  ;;  %435 = vmatmul.f32.vlgmr.msra.gmra.mxu1 %v1777_v63  ;;  %455 = vmatmul.f32.vlgmr.msra.gmra.mxu2 %v1777_v63 }
 0x3af   :  { %735 = vmatpush.msra.mxu1 %v1473_v34  ;;  %767 = vmatpush.msra.mxu2 %v1234_v0  ;;  %v1817_v0 = vld [vmem:[%s2067_s0 + $0x12] sm:$0x3f] }
 0x3b0   :  { %v480_v61 = vrot.slane %v1817_v0, 2 }
 0x3b1   :  { %736 = vmatpush.msra.mxu1 %v1482_v35  ;;  %768 = vmatpush.msra.mxu2 %v1239_v1 }
 0x3b3   :  { %737 = vmatpush.msra.mxu1 %v1490_v36  ;;  %769 = vmatpush.msra.mxu2 %v1246_v3 }
 0x3b5   :  { %738 = vmatpush.msra.mxu1 %v1499_v37  ;;  %770 = vmatpush.msra.mxu2 %v1253_v4 }
 0x3b7   :  { %739 = vmatpush.msra.mxu1 %v1507_v38  ;;  %771 = vmatpush.msra.mxu2 %v1270_v7 }
 0x3b9   :  { %740 = vmatpush.msra.mxu1 %v1515_v39  ;;  %772 = vmatpush.msra.mxu2 %v1283_v9 }
 0x3bb   :  { %741 = vmatpush.msra.mxu1 %v1523_v40  ;;  %773 = vmatpush.msra.mxu2 %v1296_v11 }
 0x3bd   :  { %742 = vmatpush.msra.mxu1 %v1530_v41  ;;  %774 = vmatpush.msra.mxu2 %v1309_v13 }
 0x3bf   :  { %743 = vmatpush.msra.mxu1 %v1536_v42  ;;  %775 = vmatpush.msra.mxu2 %v1322_v15 }
 0x3c1   :  { %744 = vmatpush.msra.mxu1 %v1544_v43  ;;  %776 = vmatpush.msra.mxu2 %v1335_v17 }
 0x3c3   :  { %745 = vmatpush.msra.mxu1 %v1552_v44  ;;  %777 = vmatpush.msra.mxu2 %v1348_v19 }
 0x3c5   :  { %746 = vmatpush.msra.mxu1 %v1560_v45  ;;  %778 = vmatpush.msra.mxu2 %v1361_v21 }
 0x3c7   :  { %747 = vmatpush.msra.mxu1 %v1568_v46  ;;  %779 = vmatpush.msra.mxu2 %v1374_v23 }
 0x3c9   :  { %748 = vmatpush.msra.mxu1 %v1576_v47  ;;  %780 = vmatpush.msra.mxu2 %v1387_v25 }
 0x3cb   :  { %749 = vmatpush.msra.mxu1 %v1584_v48  ;;  %781 = vmatpush.msra.mxu2 %v1400_v27 }
 0x3cd   :  { %750 = vmatpush.msra.mxu1 %v1592_v49  ;;  %782 = vmatpush.msra.mxu2 %v1413_v29 }
 0x42b   :  { %v436_v1 = vpop.f32.mrf.mxu1 }
 0x42c   :  { %v459_v3 = vadd.f32 %v1817_v0, %v436_v1 }
 0x42e   :  { %v1030_v4 = vmul.f32 -1.442695, %v459_v3 }
 0x430   :  { %1078 = vpow2.f32 %v1030_v4 }
 0x431   :  { %v456_v32 = vpop.f32.mrf.mxu2 }
 0x432   :  { %v482_v33 = vadd.f32 %v480_v61, %v456_v32 }
 0x434   :  { %v1031_v2 = vmul.f32 -1.442695, %v482_v33 }
 0x436   :  { %v1079_v7 = vpop.eup %1078 }
 0x437   :  { %v463_v9 = vadd.f32 1.0, %v1079_v7 }
 0x439   :  { %1080 = vrcp.f32 %v463_v9  ;;  %v475_v17 = vand.u32 2147483648, %v463_v9  ;;  %v473_v21 = vand.u32 2147483647, %v463_v9  ;;  %vm469_vm9 = vweird.f32 %v463_v9 }
 0x43a   :  { %1082 = vpow2.f32 %v1031_v2 }
 0x43b   :  { %v476_v25 = vor.u32 1.1754944e-38, %v475_v17  ;;  %vm474_vm11 = vcmp.eq.f32.partialorder %v473_v21, 8.507059e+37 }
 0x43f   :  { %v1081_v11 = vpop.eup %1080 }
 0x440   :  { %v465_v13 = vmul.f32 %v1081_v11, %v463_v9  ;;  %vm470_vm8 = vweird.f32 %v1081_v11  ;;  %v1083_v51 = vpop.eup %1082  ;;  %v1140_v9 = vld [vmem:[%s2068_s1 + $0xd0] sm:$0xff] }
 0x441   :  { %vm471_vm10 = vmor %vm469_vm9, %vm470_vm8  ;;  %v486_v54 = vadd.f32 1.0, %v1083_v51 }
 0x442   :  { %v466_v15 = vsub.f32 1.0, %v465_v13 }
 0x443   :  { %1084 = vrcp.f32 %v486_v54  ;;  %vm492_vm13 = vweird.f32 %v486_v54 }
 0x444   :  { %v467_v19 = vmul.f32 %v1081_v11, %v466_v15 }
 0x446   :  { %v468_v23 = vadd.f32 %v1081_v11, %v467_v19 }
 0x448   :  { %v472_v27 = vsel %vm471_vm10, %v1081_v11, %v468_v23 }
 0x449   :  { %v477_v29 = vsel %vm474_vm11, %v476_v25, %v472_v27 }
 0x44a   :  { %v502_v53 = vmul.f32 %v477_v29, %v1777_v63 }
 0x44c   :  { %519 = vmatmul.f32.vlgmr.msra.gmra.mxu3 %v502_v53 }
 0x44d   :  { %787 = vmatpush.msra.mxu3 %v1824_v31 }
 0x44f   :  { %788 = vmatpush.msra.mxu3 %v1830_v10 }
 0x451   :  { %789 = vmatpush.msra.mxu3 %v1836_v12 }
 0x453   :  { %790 = vmatpush.msra.mxu3 %v1842_v14 }
 0x455   :  { %791 = vmatpush.msra.mxu3 %v1848_v16 }
 0x457   :  { %792 = vmatpush.msra.mxu3 %v1854_v18 }
 0x459   :  { %793 = vmatpush.msra.mxu3 %v1860_v20 }
 0x45b   :  { %794 = vmatpush.msra.mxu3 %v1866_v22 }
 0x45d   :  { %795 = vmatpush.msra.mxu3 %v1872_v52 }
 0x45f   :  { %796 = vmatpush.msra.mxu3 %v1878_v30 }
 0x461   :  { %797 = vmatpush.msra.mxu3 %v1381_v24  ;;  %v1085_v24 = vpop.eup %1084 }
 0x462   :  { %v488_v55 = vmul.f32 %v1085_v24, %v486_v54  ;;  %vm493_vm12 = vweird.f32 %v1085_v24 }
 0x463   :  { %798 = vmatpush.msra.mxu3 %v1394_v26  ;;  %vm494_vm14 = vmor %vm492_vm13, %vm493_vm12 }
 0x464   :  { %v489_v26 = vsub.f32 1.0, %v488_v55 }
 0x465   :  { %799 = vmatpush.msra.mxu3 %v1407_v28  ;;  %v523_v28 = vrot.slane %v1817_v0, 4  ;;  %v1138_v0 = vld [vmem:[%s2068_s1 + $0xf0] sm:$0xff] }
 0x466   :  { %v490_v56 = vmul.f32 %v1085_v24, %v489_v26 }
 0x467   :  { %800 = vmatpush.msra.mxu3 %v2084_v5 }
 0x468   :  { %v491_v5 = vadd.f32 %v1085_v24, %v490_v56 }
 0x469   :  { %801 = vmatpush.msra.mxu3 %v2085_v6  ;;  %v498_v6 = vand.u32 2147483648, %v486_v54 }
 0x46a   :  { %v495_v50 = vsel %vm494_vm14, %v1085_v24, %v491_v5 }
 0x46b   :  { %802 = vmatpush.msra.mxu3 %v2086_v8  ;;  %v496_v8 = vand.u32 2147483647, %v486_v54  ;;  %v499_v58 = vor.u32 1.1754944e-38, %v498_v6 }
 0x46d   :  { %vm497_vm15 = vcmp.eq.f32.partialorder %v496_v8, 8.507059e+37 }
 0x46e   :  { %v500_v59 = vsel %vm497_vm15, %v499_v58, %v495_v50 }
 0x46f   :  { %v528_v62 = vsub.f32 1.0, %v500_v59  ;;  %v527_v3 = vmul.f32 %v500_v59, %v1777_v63  ;;  %v1139_v63 = vld [vmem:[%s2068_s1 + $0xe0] sm:$0xff] }
 0x4cf   :  { %v520_v57 = vpop.f32.mrf.mxu3 }
 0x4d0   :  { %v525_v60 = vadd.f32 %v523_v28, %v520_v57 }
 0x4d2   :  { %1086 = vtanh.f32 %v525_v60 }
 0x4d8   :  { %v1087_v1 = vpop.eup %1086 }
 0x4d9   :  { %v529_v4 = vmul.f32 %v1087_v1, %v528_v62 }
 0x4db   :  { %v1890_v7 = vadd.f32 %v529_v4, %v527_v3 }
 0x4dd   :  { %532 = vst [vmem:[#allocation3 + $0x6] sm:$0x3] %v1890_v7  ;;  %551 = vmatmul.f32.vlgmr.msrb.gmra.mxu0 %v1890_v7  ;;  %571 = vmatmul.f32.vlgmr.msrb.gmra.mxu1 %v1890_v7 }
 0x4de   :  { %851 = vmatpush.msrb.mxu0 %v1473_v34  ;;  %883 = vmatpush.msrb.mxu1 %v1138_v0  ;;  %v1141_v34 = vld [vmem:[%s2068_s1 + $0xc0] sm:$0xff]  ;;  %v1160_v0 = vld [vmem:[%s2069_s2 + $0x78] sm:$0xff] }
 0x4e0   :  { %852 = vmatpush.msrb.mxu0 %v1482_v35  ;;  %884 = vmatpush.msrb.mxu1 %v1139_v63  ;;  %v1142_v35 = vld [vmem:[%s2068_s1 + $0xb0] sm:$0xff] }
 0x4e1   :  { %v1161_v63 = vld [vmem:[%s2069_s2 + $0x70] sm:$0xff] }
 0x4e2   :  { %853 = vmatpush.msrb.mxu0 %v1490_v36  ;;  %885 = vmatpush.msrb.mxu1 %v1140_v9  ;;  %v1143_v36 = vld [vmem:[%s2068_s1 + $0xa0] sm:$0xff] }
 0x4e3   :  { %v1163_v9 = vld [vmem:[%s2069_s2 + $0x60] sm:$0xff] }
 0x4e4   :  { %854 = vmatpush.msrb.mxu0 %v1499_v37  ;;  %886 = vmatpush.msrb.mxu1 %v1141_v34  ;;  %v1144_v37 = vld [vmem:[%s2068_s1 + $0x90] sm:$0xff]  ;;  %v1164_v34 = vld [vmem:[%s2069_s2 + $0x58] sm:$0xff] }
 0x4e6   :  { %855 = vmatpush.msrb.mxu0 %v1507_v38  ;;  %887 = vmatpush.msrb.mxu1 %v1142_v35  ;;  %v1145_v38 = vld [vmem:[%s2068_s1 + $0x80] sm:$0xff]  ;;  %v1165_v35 = vld [vmem:[%s2069_s2 + $0x50] sm:$0xff] }
 0x4e8   :  { %856 = vmatpush.msrb.mxu0 %v1515_v39  ;;  %888 = vmatpush.msrb.mxu1 %v1143_v36  ;;  %v1146_v39 = vld [vmem:[%s2068_s1 + $0x70] sm:$0xff]  ;;  %v1166_v36 = vld [vmem:[%s2069_s2 + $0x48] sm:$0xff] }
 0x4ea   :  { %857 = vmatpush.msrb.mxu0 %v1523_v40  ;;  %889 = vmatpush.msrb.mxu1 %v1144_v37  ;;  %v1147_v40 = vld [vmem:[%s2068_s1 + $0x60] sm:$0xff] }
 0x4eb   :  { %v1167_v37 = vld [vmem:[%s2069_s2 + $0x40] sm:$0xff] }
 0x4ec   :  { %858 = vmatpush.msrb.mxu0 %v1530_v41  ;;  %890 = vmatpush.msrb.mxu1 %v1145_v38  ;;  %v1148_v41 = vld [vmem:[%s2068_s1 + $0x50] sm:$0xff]  ;;  %v1168_v38 = vld [vmem:[%s2069_s2 + $0x38] sm:$0xff] }
 0x4ee   :  { %859 = vmatpush.msrb.mxu0 %v1536_v42  ;;  %891 = vmatpush.msrb.mxu1 %v1146_v39  ;;  %v1149_v42 = vld [vmem:[%s2068_s1 + $0x40] sm:$0xff]  ;;  %v1169_v39 = vld [vmem:[%s2069_s2 + $0x30] sm:$0xff] }
 0x4f0   :  { %860 = vmatpush.msrb.mxu0 %v1544_v43  ;;  %892 = vmatpush.msrb.mxu1 %v1147_v40  ;;  %v1150_v43 = vld [vmem:[%s2068_s1 + $0x30] sm:$0xff]  ;;  %v1170_v40 = vld [vmem:[%s2069_s2 + $0x28] sm:$0xff] }
 0x4f2   :  { %861 = vmatpush.msrb.mxu0 %v1552_v44  ;;  %893 = vmatpush.msrb.mxu1 %v1148_v41  ;;  %v1151_v44 = vld [vmem:[%s2068_s1 + $0x20] sm:$0xff] }
 0x4f3   :  { %v1171_v41 = vld [vmem:[%s2069_s2 + $0x20] sm:$0xff] }
 0x4f4   :  { %862 = vmatpush.msrb.mxu0 %v1560_v45  ;;  %894 = vmatpush.msrb.mxu1 %v1149_v42  ;;  %v1152_v45 = vld [vmem:[%s2068_s1 + $0x10] sm:$0xff]  ;;  %v1172_v42 = vld [vmem:[%s2069_s2 + $0x18] sm:$0xff] }
 0x4f6   :  { %863 = vmatpush.msrb.mxu0 %v1568_v46  ;;  %895 = vmatpush.msrb.mxu1 %v1150_v43  ;;  %v1153_v46 = vld [vmem:[%s2068_s1] sm:$0xff]  ;;  %v1173_v43 = vld [vmem:[%s2069_s2 + $0x10] sm:$0xff] }
 0x4f8   :  { %864 = vmatpush.msrb.mxu0 %v1576_v47  ;;  %896 = vmatpush.msrb.mxu1 %v1151_v44  ;;  %v1962_v47 = vld [vmem:[%s2067_s0 + $0x18] sm:$0x3f]  ;;  %v1174_v44 = vld [vmem:[%s2069_s2 + $0x8] sm:$0xff] }
 0x4f9   :  { %v639_v56 = vrot.slane %v1962_v47, 4 }
 0x4fa   :  { %865 = vmatpush.msrb.mxu0 %v1584_v48  ;;  %897 = vmatpush.msrb.mxu1 %v1152_v45  ;;  %v1175_v45 = vld [vmem:[%s2069_s2] sm:$0xff] }
 0x4fc   :  { %866 = vmatpush.msrb.mxu0 %v1592_v49  ;;  %898 = vmatpush.msrb.mxu1 %v1153_v46  ;;  %v1035_v46 = vld [vmem:[%s2067_s0 + $0x1e] sm:$0x3f] }
 0x55a   :  { %v552_v11 = vpop.f32.mrf.mxu0 }
 0x55b   :  { %v575_v48 = vadd.f32 %v1962_v47, %v552_v11 }
 0x55d   :  { %v1033_v13 = vmul.f32 -1.442695, %v575_v48 }
 0x55f   :  { %1088 = vpow2.f32 %v1033_v13 }
 0x565   :  { %v1089_v15 = vpop.eup %1088 }
 0x566   :  { %v579_v17 = vadd.f32 1.0, %v1089_v15 }
 0x568   :  { %1090 = vrcp.f32 %v579_v17  ;;  %v591_v23 = vand.u32 2147483648, %v579_v17  ;;  %v589_v27 = vand.u32 2147483647, %v579_v17  ;;  %vm585_vm1 = vweird.f32 %v579_v17 }
 0x56a   :  { %v592_v53 = vor.u32 1.1754944e-38, %v591_v23  ;;  %vm590_vm3 = vcmp.eq.f32.partialorder %v589_v27, 8.507059e+37 }
 0x56e   :  { %v1091_v19 = vpop.eup %1090 }
 0x56f   :  { %v581_v49 = vmul.f32 %v1091_v19, %v579_v17  ;;  %vm586_vm0 = vweird.f32 %v1091_v19 }
 0x570   :  { %vm587_vm2 = vmor %vm585_vm1, %vm586_vm0 }
 0x571   :  { %v582_v21 = vsub.f32 1.0, %v581_v49 }
 0x573   :  { %v583_v25 = vmul.f32 %v1091_v19, %v582_v21 }
 0x575   :  { %v584_v29 = vadd.f32 %v1091_v19, %v583_v25 }
 0x577   :  { %v588_v61 = vsel %vm587_vm2, %v1091_v19, %v584_v29 }
 0x578   :  { %v593_v32 = vsel %vm590_vm3, %v592_v53, %v588_v61 }
 0x579   :  { %v618_v33 = vmul.f32 %v593_v32, %v1890_v7 }
 0x57b   :  { %635 = vmatmul.f32.vlgmr.msrb.gmra.mxu2 %v618_v33  ;;  %v712_v33 = vrot.slane %v1035_v46, 2 }
 0x57c   :  { %903 = vmatpush.msrb.mxu2 %v1824_v31  ;;  %v1154_v31 = vld [vmem:[%s2068_s1 + $0x58] sm:$0xff] }
 0x57e   :  { %904 = vmatpush.msrb.mxu2 %v1830_v10  ;;  %v1155_v10 = vld [vmem:[%s2068_s1 + $0x48] sm:$0xff] }
 0x580   :  { %905 = vmatpush.msrb.mxu2 %v1836_v12  ;;  %v1156_v12 = vld [vmem:[%s2068_s1 + $0x38] sm:$0xff] }
 0x582   :  { %906 = vmatpush.msrb.mxu2 %v1842_v14  ;;  %v1157_v14 = vld [vmem:[%s2068_s1 + $0x28] sm:$0xff] }
 0x584   :  { %907 = vmatpush.msrb.mxu2 %v1848_v16  ;;  %v1158_v16 = vld [vmem:[%s2068_s1 + $0x18] sm:$0xff] }
 0x586   :  { %908 = vmatpush.msrb.mxu2 %v1854_v18  ;;  %v1159_v18 = vld [vmem:[%s2068_s1 + $0x8] sm:$0xff] }
 0x588   :  { %909 = vmatpush.msrb.mxu2 %v1860_v20  ;;  %v596_v20 = vrot.slane %v1962_v47, 2 }
 0x58a   :  { %910 = vmatpush.msrb.mxu2 %v1866_v22  ;;  %v572_v22 = vpop.f32.mrf.mxu1 }
 0x58c   :  { %911 = vmatpush.msrb.mxu2 %v1872_v52  ;;  %v598_v52 = vadd.f32 %v596_v20, %v572_v22 }
 0x58e   :  { %912 = vmatpush.msrb.mxu2 %v1878_v30  ;;  %v1034_v30 = vmul.f32 -1.442695, %v598_v52 }
 0x590   :  { %913 = vmatpush.msrb.mxu2 %v1154_v31  ;;  %1092 = vpow2.f32 %v1034_v30  ;;  %v755_v30 = vrot.slane %v1035_v46, 4 }
 0x592   :  { %914 = vmatpush.msrb.mxu2 %v1155_v10 }
 0x594   :  { %915 = vmatpush.msrb.mxu2 %v1156_v12 }
 0x596   :  { %916 = vmatpush.msrb.mxu2 %v1157_v14  ;;  %v1093_v2 = vpop.eup %1092 }
 0x597   :  { %v602_v51 = vadd.f32 1.0, %v1093_v2 }
 0x598   :  { %917 = vmatpush.msrb.mxu2 %v1158_v16 }
 0x599   :  { %1094 = vrcp.f32 %v602_v51  ;;  %v614_v5 = vand.u32 2147483648, %v602_v51  ;;  %vm608_vm5 = vweird.f32 %v602_v51  ;;  %v612_v6 = vand.u32 2147483647, %v602_v51 }
 0x59a   :  { %918 = vmatpush.msrb.mxu2 %v1159_v18 }
 0x59b   :  { %v615_v50 = vor.u32 1.1754944e-38, %v614_v5  ;;  %vm613_vm7 = vcmp.eq.f32.partialorder %v612_v6, 8.507059e+37 }
 0x59f   :  { %v1095_v54 = vpop.eup %1094 }
 0x5a0   :  { %v604_v24 = vmul.f32 %v1095_v54, %v602_v51  ;;  %vm609_vm4 = vweird.f32 %v1095_v54 }
 0x5a1   :  { %vm610_vm6 = vmor %vm608_vm5, %vm609_vm4 }
 0x5a2   :  { %v605_v55 = vsub.f32 1.0, %v604_v24 }
 0x5a4   :  { %v606_v26 = vmul.f32 %v1095_v54, %v605_v55 }
 0x5a6   :  { %v607_v28 = vadd.f32 %v1095_v54, %v606_v26 }
 0x5a8   :  { %v611_v60 = vsel %vm610_vm6, %v1095_v54, %v607_v28 }
 0x5a9   :  { %v616_v58 = vsel %vm613_vm7, %v615_v50, %v611_v60  ;;  %v1038_v50 = vld [vmem:[%s2067_s0 + $0x24] sm:$0x3f] }
 0x5aa   :  { %v644_v59 = vsub.f32 1.0, %v616_v58  ;;  %v643_v1 = vmul.f32 %v616_v58, %v1890_v7  ;;  %v1162_v7 = vld [vmem:[%s2069_s2 + $0x68] sm:$0xff] }
 0x5fe   :  { %v636_v8 = vpop.f32.mrf.mxu2 }
 0x5ff   :  { %v641_v57 = vadd.f32 %v639_v56, %v636_v8 }
 0x601   :  { %1096 = vtanh.f32 %v641_v57 }
 0x607   :  { %v1097_v62 = vpop.eup %1096 }
 0x608   :  { %v645_v3 = vmul.f32 %v1097_v62, %v644_v59 }
 0x60a   :  { %v1997_v4 = vadd.f32 %v645_v3, %v643_v1 }
 0x60c   :  { %648 = vst [vmem:[#allocation3 + $0x8] sm:$0x3] %v1997_v4  ;;  %667 = vmatmul.f32.vlgmr.msrb.gmra.mxu3 %v1997_v4  ;;  %687 = vmatmul.f32.vlgmr.msra.gmra.mxu0 %v1997_v4 }
 0x60d   :  { %967 = vmatpush.msrb.mxu3 %v1160_v0 }
 0x60f   :  { %968 = vmatpush.msrb.mxu3 %v1161_v63 }
 0x611   :  { %969 = vmatpush.msrb.mxu3 %v1162_v7 }
 0x613   :  { %970 = vmatpush.msrb.mxu3 %v1163_v9 }
 0x615   :  { %971 = vmatpush.msrb.mxu3 %v1164_v34 }
 0x617   :  { %972 = vmatpush.msrb.mxu3 %v1165_v35 }
 0x619   :  { %973 = vmatpush.msrb.mxu3 %v1166_v36 }
 0x61b   :  { %974 = vmatpush.msrb.mxu3 %v1167_v37 }
 0x61d   :  { %975 = vmatpush.msrb.mxu3 %v1168_v38 }
 0x61f   :  { %976 = vmatpush.msrb.mxu3 %v1169_v39 }
 0x621   :  { %977 = vmatpush.msrb.mxu3 %v1170_v40  ;;  %v828_v40 = vrot.slane %v1038_v50, 2 }
 0x623   :  { %978 = vmatpush.msrb.mxu3 %v1171_v41 }
 0x625   :  { %979 = vmatpush.msrb.mxu3 %v1172_v42 }
 0x627   :  { %980 = vmatpush.msrb.mxu3 %v1173_v43 }
 0x629   :  { %981 = vmatpush.msrb.mxu3 %v1174_v44 }
 0x62b   :  { %982 = vmatpush.msrb.mxu3 %v1175_v45 }
 0x689   :  { %v688_v31 = vpop.f32.mrf.mxu0 }
 0x68a   :  { %v714_v10 = vadd.f32 %v712_v33, %v688_v31  ;;  %v1041_v31 = vld [vmem:[%s2067_s0 + $0x2a] sm:$0x3f]  ;;  %s1203_s0 = smov [#allocation3]  }
 0x68b   :  { %s1003_s12 = sshll.u32 %s1203_s0, 4  ;;  %s1004_s12 = int_to_ptr.vmem [resolvable:$true] %s1003_s12 }
 0x68c   :  { %v1037_v12 = vmul.f32 -1.442695, %v714_v10 }
 0x68f   :  { %v668_v47 = vpop.f32.mrf.mxu3 }
 0x690   :  { %v691_v11 = vadd.f32 %v1035_v46, %v668_v47 }
 0x692   :  { %v1036_v48 = vmul.f32 -1.442695, %v691_v11 }
 0x694   :  { %1098 = vpow2.f32 %v1036_v48 }
 0x69a   :  { %v1099_v13 = vpop.eup %1098 }
 0x69b   :  { %v695_v15 = vadd.f32 1.0, %v1099_v13  ;;  %v871_v13 = vrot.slane %v1038_v50, 4 }
 0x69d   :  { %1100 = vrcp.f32 %v695_v15  ;;  %v707_v21 = vand.u32 2147483648, %v695_v15  ;;  %v705_v25 = vand.u32 2147483647, %v695_v15  ;;  %vm701_vm9 = vweird.f32 %v695_v15 }
 0x69e   :  { %1102 = vpow2.f32 %v1037_v12 }
 0x69f   :  { %v708_v29 = vor.u32 1.1754944e-38, %v707_v21  ;;  %vm706_vm11 = vcmp.eq.f32.partialorder %v705_v25, 8.507059e+37 }
 0x6a3   :  { %v1101_v17 = vpop.eup %1100 }
 0x6a4   :  { %v697_v19 = vmul.f32 %v1101_v17, %v695_v15  ;;  %vm702_vm8 = vweird.f32 %v1101_v17  ;;  %v1103_v14 = vpop.eup %1102 }
 0x6a5   :  { %vm703_vm10 = vmor %vm701_vm9, %vm702_vm8  ;;  %v718_v16 = vadd.f32 1.0, %v1103_v14 }
 0x6a6   :  { %v698_v49 = vsub.f32 1.0, %v697_v19 }
 0x6a7   :  { %1104 = vrcp.f32 %v718_v16  ;;  %v730_v51 = vand.u32 2147483648, %v718_v16  ;;  %vm724_vm13 = vweird.f32 %v718_v16  ;;  %v728_v54 = vand.u32 2147483647, %v718_v16 }
 0x6a8   :  { %v699_v23 = vmul.f32 %v1101_v17, %v698_v49 }
 0x6a9   :  { %v731_v56 = vor.u32 1.1754944e-38, %v730_v51  ;;  %vm729_vm15 = vcmp.eq.f32.partialorder %v728_v54, 8.507059e+37 }
 0x6aa   :  { %v700_v27 = vadd.f32 %v1101_v17, %v699_v23 }
 0x6ac   :  { %v704_v53 = vsel %vm703_vm10, %v1101_v17, %v700_v27 }
 0x6ad   :  { %v709_v61 = vsel %vm706_vm11, %v708_v29, %v704_v53  ;;  %v1105_v18 = vpop.eup %1104 }
 0x6ae   :  { %v734_v32 = vmul.f32 %v709_v61, %v1997_v4  ;;  %v720_v20 = vmul.f32 %v1105_v18, %v718_v16  ;;  %vm725_vm12 = vweird.f32 %v1105_v18 }
 0x6af   :  { %vm726_vm14 = vmor %vm724_vm13, %vm725_vm12 }
 0x6b0   :  { %751 = vmatmul.f32.vlgmr.msra.gmra.mxu1 %v734_v32  ;;  %v721_v22 = vsub.f32 1.0, %v720_v20 }
 0x6b2   :  { %v722_v52 = vmul.f32 %v1105_v18, %v721_v22 }
 0x6b4   :  { %v723_v2 = vadd.f32 %v1105_v18, %v722_v52 }
 0x6b6   :  { %v727_v26 = vsel %vm726_vm14, %v1105_v18, %v723_v2 }
 0x6b7   :  { %v732_v28 = vsel %vm729_vm15, %v731_v56, %v727_v26 }
 0x6b8   :  { %v760_v5 = vsub.f32 1.0, %v732_v28  ;;  %v759_v8 = vmul.f32 %v732_v28, %v1997_v4  ;;  %v944_v28 = vrot.slane %v1041_v31, 2 }
 0x72d   :  { %v752_v24 = vpop.f32.mrf.mxu1 }
 0x72e   :  { %v757_v55 = vadd.f32 %v755_v30, %v752_v24 }
 0x730   :  { %1106 = vtanh.f32 %v757_v55 }
 0x736   :  { %v1107_v6 = vpop.eup %1106 }
 0x737   :  { %v761_v57 = vmul.f32 %v1107_v6, %v760_v5 }
 0x739   :  { %v762_v60 = vadd.f32 %v761_v57, %v759_v8 }
 0x73b   :  { %764 = vst [vmem:[#allocation3 + $0xa] sm:$0x3] %v762_v60  ;;  %783 = vmatmul.f32.vlgmr.msra.gmra.mxu2 %v762_v60  ;;  %803 = vmatmul.f32.vlgmr.msra.gmra.mxu3 %v762_v60 }
 0x7be   :  { %v784_v58 = vpop.f32.mrf.mxu2  ;;  %v804_v41 = vpop.f32.mrf.mxu3 }
 0x7bf   :  { %v807_v59 = vadd.f32 %v1038_v50, %v784_v58  ;;  %v830_v42 = vadd.f32 %v828_v40, %v804_v41 }
 0x7c1   :  { %v1039_v62 = vmul.f32 -1.442695, %v807_v59  ;;  %v1040_v43 = vmul.f32 -1.442695, %v830_v42 }
 0x7c3   :  { %1108 = vpow2.f32 %v1039_v62 }
 0x7c9   :  { %v1109_v1 = vpop.eup %1108 }
 0x7ca   :  { %v811_v3 = vadd.f32 1.0, %v1109_v1  ;;  %v987_v1 = vrot.slane %v1041_v31, 4 }
 0x7cc   :  { %1110 = vrcp.f32 %v811_v3  ;;  %v823_v4 = vand.u32 2147483648, %v811_v3  ;;  %v821_v34 = vand.u32 2147483647, %v811_v3  ;;  %vm817_vm1 = vweird.f32 %v811_v3 }
 0x7cd   :  { %1112 = vpow2.f32 %v1040_v43 }
 0x7ce   :  { %v824_v36 = vor.u32 1.1754944e-38, %v823_v4  ;;  %vm822_vm3 = vcmp.eq.f32.partialorder %v821_v34, 8.507059e+37 }
 0x7d2   :  { %v1111_v0 = vpop.eup %1110 }
 0x7d3   :  { %v813_v63 = vmul.f32 %v1111_v0, %v811_v3  ;;  %vm818_vm0 = vweird.f32 %v1111_v0  ;;  %v1113_v44 = vpop.eup %1112 }
 0x7d4   :  { %vm819_vm2 = vmor %vm817_vm1, %vm818_vm0  ;;  %v834_v45 = vadd.f32 1.0, %v1113_v44 }
 0x7d5   :  { %v814_v7 = vsub.f32 1.0, %v813_v63 }
 0x7d6   :  { %1114 = vrcp.f32 %v834_v45  ;;  %v846_v17 = vand.u32 2147483648, %v834_v45  ;;  %vm840_vm5 = vweird.f32 %v834_v45  ;;  %v844_v19 = vand.u32 2147483647, %v834_v45 }
 0x7d7   :  { %v815_v9 = vmul.f32 %v1111_v0, %v814_v7 }
 0x7d8   :  { %v847_v25 = vor.u32 1.1754944e-38, %v846_v17  ;;  %vm845_vm7 = vcmp.eq.f32.partialorder %v844_v19, 8.507059e+37 }
 0x7d9   :  { %v816_v35 = vadd.f32 %v1111_v0, %v815_v9 }
 0x7db   :  { %v820_v37 = vsel %vm819_vm2, %v1111_v0, %v816_v35 }
 0x7dc   :  { %v825_v38 = vsel %vm822_vm3, %v824_v36, %v820_v37  ;;  %v1115_v46 = vpop.eup %1114 }
 0x7dd   :  { %v850_v39 = vmul.f32 %v825_v38, %v762_v60  ;;  %v836_v47 = vmul.f32 %v1115_v46, %v834_v45  ;;  %vm841_vm4 = vweird.f32 %v1115_v46 }
 0x7de   :  { %vm842_vm6 = vmor %vm840_vm5, %vm841_vm4 }
 0x7df   :  { %867 = vmatmul.f32.vlgmr.msrb.gmra.mxu0 %v850_v39  ;;  %v837_v11 = vsub.f32 1.0, %v836_v47 }
 0x7e1   :  { %v838_v48 = vmul.f32 %v1115_v46, %v837_v11 }
 0x7e3   :  { %v839_v15 = vadd.f32 %v1115_v46, %v838_v48 }
 0x7e5   :  { %v843_v23 = vsel %vm842_vm6, %v1115_v46, %v839_v15 }
 0x7e6   :  { %v848_v27 = vsel %vm845_vm7, %v847_v25, %v843_v23 }
 0x7e7   :  { %v876_v29 = vsub.f32 1.0, %v848_v27  ;;  %v875_v61 = vmul.f32 %v848_v27, %v762_v60 }
 0x85c   :  { %v868_v49 = vpop.f32.mrf.mxu0 }
 0x85d   :  { %v873_v21 = vadd.f32 %v871_v13, %v868_v49 }
 0x85f   :  { %1116 = vtanh.f32 %v873_v21 }
 0x865   :  { %v1117_v53 = vpop.eup %1116 }
 0x866   :  { %v877_v32 = vmul.f32 %v1117_v53, %v876_v29 }
 0x868   :  { %v878_v33 = vadd.f32 %v877_v32, %v875_v61 }
 0x86a   :  { %880 = vst [vmem:[#allocation3 + $0xc] sm:$0x3] %v878_v33  ;;  %899 = vmatmul.f32.vlgmr.msrb.gmra.mxu1 %v878_v33  ;;  %919 = vmatmul.f32.vlgmr.msrb.gmra.mxu2 %v878_v33 }
 0x8e7   :  { %v900_v10 = vpop.f32.mrf.mxu1 }
 0x8e8   :  { %v923_v12 = vadd.f32 %v1041_v31, %v900_v10 }
 0x8ea   :  { %v1042_v14 = vmul.f32 -1.442695, %v923_v12 }
 0x8ec   :  { %1118 = vpow2.f32 %v1042_v14 }
 0x8ed   :  { %v920_v5 = vpop.f32.mrf.mxu2 }
 0x8ee   :  { %v946_v6 = vadd.f32 %v944_v28, %v920_v5 }
 0x8f0   :  { %v1043_v8 = vmul.f32 -1.442695, %v946_v6 }
 0x8f2   :  { %v1119_v16 = vpop.eup %1118 }
 0x8f3   :  { %v927_v18 = vadd.f32 1.0, %v1119_v16 }
 0x8f5   :  { %1120 = vrcp.f32 %v927_v18  ;;  %v939_v30 = vand.u32 2147483648, %v927_v18  ;;  %v937_v51 = vand.u32 2147483647, %v927_v18  ;;  %vm933_vm9 = vweird.f32 %v927_v18 }
 0x8f6   :  { %1122 = vpow2.f32 %v1043_v8 }
 0x8f7   :  { %v940_v24 = vor.u32 1.1754944e-38, %v939_v30  ;;  %vm938_vm11 = vcmp.eq.f32.partialorder %v937_v51, 8.507059e+37 }
 0x8fb   :  { %v1121_v20 = vpop.eup %1120 }
 0x8fc   :  { %v929_v22 = vmul.f32 %v1121_v20, %v927_v18  ;;  %vm934_vm8 = vweird.f32 %v1121_v20  ;;  %v1123_v57 = vpop.eup %1122 }
 0x8fd   :  { %vm935_vm10 = vmor %vm933_vm9, %vm934_vm8  ;;  %v950_v60 = vadd.f32 1.0, %v1123_v57 }
 0x8fe   :  { %v930_v52 = vsub.f32 1.0, %v929_v22 }
 0x8ff   :  { %1124 = vrcp.f32 %v950_v60  ;;  %v962_v0 = vand.u32 2147483648, %v950_v60  ;;  %vm956_vm13 = vweird.f32 %v950_v60  ;;  %v960_v63 = vand.u32 2147483647, %v950_v60 }
 0x900   :  { %v931_v2 = vmul.f32 %v1121_v20, %v930_v52 }
 0x901   :  { %v963_v34 = vor.u32 1.1754944e-38, %v962_v0  ;;  %vm961_vm15 = vcmp.eq.f32.partialorder %v960_v63, 8.507059e+37 }
 0x902   :  { %v932_v54 = vadd.f32 %v1121_v20, %v931_v2 }
 0x904   :  { %v936_v55 = vsel %vm935_vm10, %v1121_v20, %v932_v54 }
 0x905   :  { %v941_v26 = vsel %vm938_vm11, %v940_v24, %v936_v55  ;;  %v1125_v50 = vpop.eup %1124 }
 0x906   :  { %v966_v56 = vmul.f32 %v941_v26, %v878_v33  ;;  %v952_v58 = vmul.f32 %v1125_v50, %v950_v60  ;;  %vm957_vm12 = vweird.f32 %v1125_v50 }
 0x907   :  { %vm958_vm14 = vmor %vm956_vm13, %vm957_vm12 }
 0x908   :  { %983 = vmatmul.f32.vlgmr.msrb.gmra.mxu3 %v966_v56  ;;  %v953_v59 = vsub.f32 1.0, %v952_v58 }
 0x90a   :  { %v954_v62 = vmul.f32 %v1125_v50, %v953_v59 }
 0x90c   :  { %v955_v3 = vadd.f32 %v1125_v50, %v954_v62 }
 0x90e   :  { %v959_v9 = vsel %vm958_vm14, %v1125_v50, %v955_v3 }
 0x90f   :  { %v964_v35 = vsel %vm961_vm15, %v963_v34, %v959_v9 }
 0x910   :  { %v992_v36 = vsub.f32 1.0, %v964_v35  ;;  %v991_v38 = vmul.f32 %v964_v35, %v878_v33 }
 0x98b   :  { %v984_v7 = vpop.f32.mrf.mxu3 }
 0x98c   :  { %v989_v4 = vadd.f32 %v987_v1, %v984_v7 }
 0x98e   :  { %1126 = vtanh.f32 %v989_v4 }
 0x994   :  { %v1127_v37 = vpop.eup %1126 }
 0x995   :  { %v993_v39 = vmul.f32 %v1127_v37, %v992_v36 }
 0x997   :  { %v994_v40 = vadd.f32 %v993_v39, %v991_v38 }
 0x999   :  { %996 = vst [vmem:[#allocation3 + $0xe] sm:$0x3] %v994_v40 }
 0x99a   :  { %997 = vst [vmem:[#allocation2] sm:$0x3] %v994_v40  ;;  %1011 = dma.vmem_to_hbm [thread:$0]  %s1004_s12, 256, %s1006_s15, [#allocation4], %s1204_s16, %s1204_s16, %s1205_s17  }
 0x99b   :  { %998 = vst [vmem:[%s2071_s4] sm:$0x3] %v994_v40 }
 0x99c   :  { %1200 = dma.done.wait [#allocation4], 256  }
 0x99d   :  { %1201 = vsyncadd [#allocation4], 4294967040 }
 0x99e   :  { %1020 = vsyncpa [#allocation4], 1 }

</bundles_post_ra>
